<compile_context>
chip_gen: v7x
topology: tpu7x:2x2x1
jax: 0.10.0
libtpu: 0.0.40
codegen_flags: <defaults>
</compile_context>

<pallas_src>
import functools

import jax
import jax.numpy as jnp
import numpy as np
from jax import lax
from jax.experimental import pallas as pl
from jax.experimental.pallas import tpu as pltpu

LN_EPS = 1e-5
_INV_SQRT2 = 0.7071067811865476


# ----------------------------- in-kernel helpers -----------------------------
def _erf(x):
    # Abramowitz & Stegun 7.1.26 (matches torch.erf to ~1e-7 before the
    # approximate reciprocal; ~1e-3 abs with it, covered by the tolerances).
    # Polynomial stays on the VPU; the exp and the reciprocal go to the EUP.
    a1, a2, a3, a4, a5 = (0.254829592, -0.284496736, 1.421413741,
                          -1.453152027, 1.061405429)
    p = 0.3275911
    sgn = jnp.where(x >= 0.0, 1.0, -1.0)
    ax = jnp.abs(x)
    t = pl.reciprocal(1.0 + p * ax, approx=True)          # divide -> EUP slot
    poly = ((((a5 * t + a4) * t + a3) * t + a2) * t + a1) * t
    return sgn * (1.0 - poly * jnp.exp(-ax * ax))


def _gelu_exact(x):
    # PyTorch nn.GELU() default = exact (erf) form.
    # TODO(synk): on v6e/v7x the polynomial could run in packed bf16 for
    # another ~2x VALU saving; kept f32 for cross-chip simplicity (v5e has no
    # bf16 VPU path).
    return 0.5 * x * (1.0 + _erf(x * _INV_SQRT2))


def _layernorm(x, w, b):
    mu = jnp.mean(x, axis=-1, keepdims=True)
    xc = x - mu
    var = jnp.mean(xc * xc, axis=-1, keepdims=True)
    return xc * lax.rsqrt(var + LN_EPS) * w + b


# --------------------------------- kernel ------------------------------------
def _block_kernel(x_ref, ln1w_ref, ln1b_ref, wqkv_ref, wproj_ref, bproj_ref,
                  ln2w_ref, ln2b_ref, w1_ref, b1_ref, w2_ref, b2_ref,
                  o_ref, *, num_heads):
    x = x_ref[0]                                     # (N, C) f32
    n, c = x.shape
    hd = c // num_heads
    cdt = wqkv_ref.dtype        # MXU input dtype (f32, or bf16 in fast mode)
    f32 = jnp.float32

    # ---------------- attention branch ----------------
    h = _layernorm(x, ln1w_ref[...], ln1b_ref[...])                    # (N, C)
    # Single lane-dense matmul for Q,K,V; attention scale pre-folded into Wq.
    qkv = jnp.dot(h.astype(cdt), wqkv_ref[...],
                  preferred_element_type=f32)                          # (N, 3C)
    qkv_c = qkv.astype(cdt)     # one cast; head slices below are views of it

    attn_acc = None
    for i in range(num_heads):                       # static unroll over heads
        lo = i * hd
        q_h = qkv_c[:, lo:lo + hd]                   # (N, hd), already scaled
        k_h = qkv_c[:, c + lo:c + lo + hd]
        v_h = qkv_c[:, 2 * c + lo:2 * c + lo + hd]
        s = lax.dot_general(q_h, k_h, (((1,), (1,)), ((), ())),
                            preferred_element_type=f32)               # (N, N)
        s = s - jnp.max(s, axis=-1, keepdims=True)
        p = jnp.exp(s)                                                 # <= 1.0
        inv = pl.reciprocal(jnp.sum(p, axis=-1, keepdims=True), approx=True)
        # Deferred normalisation: multiply on (N, hd) instead of (N, N).
        o_h = jnp.dot(p.astype(cdt), v_h, preferred_element_type=f32) * inv
        # Per-head projection accumulation against the matching Wproj rows
        # (loaded straight from VMEM) — no head-output concat / relayout.
        part = jnp.dot(o_h.astype(cdt), wproj_ref[lo:lo + hd, :],
                       preferred_element_type=f32)                    # (N, C)
        attn_acc = part if attn_acc is None else attn_acc + part
    x = x + attn_acc + bproj_ref[...]

    # ---------------- MLP branch ----------------
    h = _layernorm(x, ln2w_ref[...], ln2b_ref[...])
    h = jnp.dot(h.astype(cdt), w1_ref[...],
                preferred_element_type=f32) + b1_ref[...]              # (N, Hid)
    h = _gelu_exact(h)
    h = jnp.dot(h.astype(cdt), w2_ref[...],
                preferred_element_type=f32) + b2_ref[...]              # (N, C)

    o_ref[0] = (x + h).astype(o_ref.dtype)


# --------------------------- VMEM budget estimate ------------------------------
def _vmem_limit_bytes(N, C, hidden, weight_itemsize):
    weights = (3 * C * C + C * C + 2 * C * hidden) * weight_itemsize  # 1-buffered
    small = (6 * C + hidden) * 4                                      # LN/bias f32
    io = 2 * 2 * N * C * 4                                            # x/out, 2-buf
    acts = (3 * N * C            # qkv (f32)
            + 3 * N * C          # qkv cast copy (upper bound)
            + 2 * N * N          # scores + exp
            + 2 * N * hidden     # MLP hidden + GELU
            + 6 * N * C) * 4     # residuals / LN / attention accumulator slack
    est = int((weights + small + io + acts) * 1.25) + (2 << 20)
    # Clamp to a v7x-safe ceiling (64 MiB physical per TC); if the estimate
    # exceeds it at real ViT-B f32, use bf16 weights or split attention / MLP
    # into two pallas_calls.
    return max(32 << 20, min(est, 56 << 20))


# ------------------------------- wrapper --------------------------------------
def block_forward(x, kp, num_heads, *, single_buffer_weights=True):
    B, N, C = x.shape
    hidden = kp['w1'].shape[1]
    kernel = functools.partial(_block_kernel, num_heads=num_heads)

    buffered = getattr(pl, "Buffered", None)

    def resident(shape):
        # Full-array block, constant index map: DMA'd once, resident in VMEM
        # across the batch grid.  Single-buffered (Buffered(1)) when supported
        # — constant-index blocks gain nothing from double-buffering and it
        # would double the resident-weight VMEM.
        idx = lambda b, _n=len(shape): (0,) * _n
        if single_buffer_weights and buffered is not None:
            try:
                return pl.BlockSpec(shape, idx, pipeline_mode=buffered(1))
            except TypeError:
                pass
        return pl.BlockSpec(shape, idx)

    in_specs = [
        pl.BlockSpec((1, N, C), lambda b: (b, 0, 0)),    # x
        resident((1, C)), resident((1, C)),              # ln1 w, b
        resident((C, 3 * C)),                            # Wqkv (q pre-scaled)
        resident((C, C)), resident((1, C)),              # Wproj, proj bias
        resident((1, C)), resident((1, C)),              # ln2 w, b
        resident((C, hidden)), resident((1, hidden)),    # fc1
        resident((hidden, C)), resident((1, C)),         # fc2
    ]

    weight_itemsize = jnp.dtype(kp['wqkv'].dtype).itemsize
    vmem_limit = _vmem_limit_bytes(N, C, hidden, weight_itemsize)

    # grid=(B,) is the megacore "parallel" axis: with B >= 2 both v7x
    # TensorCores are fed; v5e/v6e are single-TC so it is just the batch loop.
    return pl.pallas_call(
        kernel,
        out_shape=jax.ShapeDtypeStruct((B, N, C), x.dtype),
        grid=(B,),
        in_specs=in_specs,
        out_specs=pl.BlockSpec((1, N, C), lambda b: (b, 0, 0)),
        compiler_params=pltpu.CompilerParams(
            dimension_semantics=("parallel",),
            vmem_limit_bytes=vmem_limit),
    )(x, kp['ln1w'], kp['ln1b'], kp['wqkv'], kp['wproj'], kp['bproj'],
      kp['ln2w'], kp['ln2b'], kp['w1'], kp['b1'], kp['w2'], kp['b2'])


# ----------------------- deterministic parameter init -------------------------
def init_raw_params(key, dim, num_heads, mlp_ratio=4.0):
    """PyTorch-default-style init, PyTorch (out, in) Linear weight layout."""
    hidden = int(dim * mlp_ratio)
    ks = jax.random.split(key, 7)

    def unif(k, shape, fan_in):
        bound = 1.0 / np.sqrt(fan_in)
        return jax.random.uniform(k, shape, jnp.float32, -bound, bound)

    return dict(
        ln1w=jnp.ones((dim,), jnp.float32),
        ln1b=jnp.zeros((dim,), jnp.float32),
        qkv_w=unif(ks[0], (3 * dim, dim), dim),      # qkv_bias=False (default)
        proj_w=unif(ks[1], (dim, dim), dim),
        proj_b=unif(ks[2], (dim,), dim),
        ln2w=jnp.ones((dim,), jnp.float32),
        ln2b=jnp.zeros((dim,), jnp.float32),
        fc1_w=unif(ks[3], (hidden, dim), dim),
        fc1_b=unif(ks[4], (hidden,), dim),
        fc2_w=unif(ks[5], (dim, hidden), hidden),
        fc2_b=unif(ks[6], (dim,), hidden),
    )


def pack_kernel_params(raw, num_heads, param_dtype=jnp.float32):
    """Kernel layout: pre-transposed, fused QKV, attention scale folded into Wq.
    Large matmul weights may be cast to bf16 (MXU rate / VMEM); biases and LN
    params stay f32 (added after f32 accumulation).  NOTE: folding the scale
    into Wq is only valid because qkv_bias=False."""
    dim = raw['proj_w'].shape[0]
    hidden = raw['fc1_w'].shape[0]
    hd = dim // num_heads
    scale = hd ** -0.5

    wqkv = raw['qkv_w'].T                      # (dim, 3*dim)
    wqkv = wqkv.at[:, :dim].multiply(scale)    # fold (q @ k.T) * scale into Wq

    return dict(
        ln1w=raw['ln1w'].reshape(1, dim), ln1b=raw['ln1b'].reshape(1, dim),
        wqkv=wqkv.astype(param_dtype),
        wproj=raw['proj_w'].T.astype(param_dtype),
        bproj=raw['proj_b'].reshape(1, dim),
        ln2w=raw['ln2w'].reshape(1, dim), ln2b=raw['ln2b'].reshape(1, dim),
        w1=raw['fc1_w'].T.astype(param_dtype),
        b1=raw['fc1_b'].reshape(1, hidden),
        w2=raw['fc2_w'].T.astype(param_dtype),
        b2=raw['fc2_b'].reshape(1, dim),
    )


# --------------------------- pure-JAX reference --------------------------------
def block_reference(x, raw, num_heads):
    def ln(y, w, b):
        mu = y.mean(-1, keepdims=True)
        var = ((y - mu) ** 2).mean(-1, keepdims=True)
        return (y - mu) / jnp.sqrt(var + LN_EPS) * w + b

    # Force accurate f32 matmuls in the reference (XLA default truncates).
    with jax.default_matmul_precision("float32"):
        B, N, C = x.shape
        hd = C // num_heads
        h = ln(x, raw['ln1w'], raw['ln1b'])
        qkv = h @ raw['qkv_w'].T
        qkv = qkv.reshape(B, N, 3, num_heads, hd).transpose(2, 0, 3, 1, 4)
        q, k, v = qkv[0], qkv[1], qkv[2]
        attn = (q @ jnp.swapaxes(k, -2, -1)) * (hd ** -0.5)
        attn = jax.nn.softmax(attn, axis=-1)
        o = (attn @ v).transpose(0, 2, 1, 3).reshape(B, N, C)
        x = x + (o @ raw['proj_w'].T + raw['proj_b'])
        h = ln(x, raw['ln2w'], raw['ln2b'])
        h = jax.nn.gelu(h @ raw['fc1_w'].T + raw['fc1_b'], approximate=False)
        h = h @ raw['fc2_w'].T + raw['fc2_b']
        return x + h


# ---------------------------------- main ---------------------------------------
if __name__ == "__main__":
    B, N, DIM, HEADS = 2, 8, 32, 8          # head_dim = 4, mlp hidden = 128

    key = jax.random.PRNGKey(0)
    kx, kw = jax.random.split(key)
    x = jax.random.normal(kx, (B, N, DIM), jnp.float32)
    raw = init_raw_params(kw, DIM, HEADS, mlp_ratio=4.0)

    # --- f32 path: exact module semantics ---
    kp32 = pack_kernel_params(raw, HEADS, jnp.float32)
    try:
        out32 = jax.block_until_ready(
            block_forward(x, kp32, HEADS, single_buffer_weights=True))
        sbw = True
    except Exception:
        # Fallback for Mosaic builds without BlockSpec pipeline_mode support.
        out32 = jax.block_until_ready(
            block_forward(x, kp32, HEADS, single_buffer_weights=False))
        sbw = False
    ref32 = jax.block_until_ready(block_reference(x, raw, HEADS))
    assert out32.shape == (B, N, DIM) and out32.dtype == jnp.float32
    err32 = float(jnp.max(jnp.abs(out32 - ref32)))
    # Tolerance covers the EUP approximate reciprocals (softmax denom + erf).
    assert err32 < 2e-2, f"f32 max abs diff too large: {err32}"

    # --- bf16-weight path (MXU perf config for v5e/v6e/v7x) ---
    kp16 = pack_kernel_params(raw, HEADS, jnp.bfloat16)
    out16 = jax.block_until_ready(
        block_forward(x, kp16, HEADS, single_buffer_weights=sbw))
    big = ('qkv_w', 'proj_w', 'fc1_w', 'fc2_w')
    raw16 = {k: (v.astype(jnp.bfloat16).astype(jnp.float32) if k in big else v)
             for k, v in raw.items()}
    ref16 = jax.block_until_ready(block_reference(x, raw16, HEADS))
    err16 = float(jnp.max(jnp.abs(out16 - ref16)))
    # bf16 activation rounding through 5 matmul stages -> looser bound.
    assert err16 < 1e-1, f"bf16 max abs diff too large: {err16}"

    print("KERNEL_OK")
</pallas_src>

<mosaic_0001>
module attributes {stable_mosaic.version = 11 : i64} {
  func.func @_block_kernel(%arg0: i32, %arg1: memref<1x8x32xf32, #tpu.memory_space<vmem>>, %arg2: memref<1x32xf32, #tpu.memory_space<vmem>>, %arg3: memref<1x32xf32, #tpu.memory_space<vmem>>, %arg4: memref<32x96xf32, #tpu.memory_space<vmem>>, %arg5: memref<32x32xf32, #tpu.memory_space<vmem>>, %arg6: memref<1x32xf32, #tpu.memory_space<vmem>>, %arg7: memref<1x32xf32, #tpu.memory_space<vmem>>, %arg8: memref<1x32xf32, #tpu.memory_space<vmem>>, %arg9: memref<32x128xf32, #tpu.memory_space<vmem>>, %arg10: memref<1x128xf32, #tpu.memory_space<vmem>>, %arg11: memref<128x32xf32, #tpu.memory_space<vmem>>, %arg12: memref<1x32xf32, #tpu.memory_space<vmem>>, %arg13: memref<1x8x32xf32, #tpu.memory_space<vmem>>) attributes {dimension_semantics = [#tpu.dimension_semantics<parallel>], iteration_bounds = array<i64: 2>, scalar_prefetch = 0 : i64, scratch_operands = 0 : i64, tpu.core_type = #tpu.core_type<tc>, window_params = [{transform_indices = @transform_0, window_bounds = array<i64: 1, 8, 32>}, {pipeline_mode = #tpu.pipeline_mode<synchronous>, transform_indices = @transform_1, window_bounds = array<i64: 1, 32>}, {pipeline_mode = #tpu.pipeline_mode<synchronous>, transform_indices = @transform_2, window_bounds = array<i64: 1, 32>}, {pipeline_mode = #tpu.pipeline_mode<synchronous>, transform_indices = @transform_3, window_bounds = array<i64: 32, 96>}, {pipeline_mode = #tpu.pipeline_mode<synchronous>, transform_indices = @transform_4, window_bounds = array<i64: 32, 32>}, {pipeline_mode = #tpu.pipeline_mode<synchronous>, transform_indices = @transform_5, window_bounds = array<i64: 1, 32>}, {pipeline_mode = #tpu.pipeline_mode<synchronous>, transform_indices = @transform_6, window_bounds = array<i64: 1, 32>}, {pipeline_mode = #tpu.pipeline_mode<synchronous>, transform_indices = @transform_7, window_bounds = array<i64: 1, 32>}, {pipeline_mode = #tpu.pipeline_mode<synchronous>, transform_indices = @transform_8, window_bounds = array<i64: 32, 128>}, {pipeline_mode = #tpu.pipeline_mode<synchronous>, transform_indices = @transform_9, window_bounds = array<i64: 1, 128>}, {pipeline_mode = #tpu.pipeline_mode<synchronous>, transform_indices = @transform_10, window_bounds = array<i64: 128, 32>}, {pipeline_mode = #tpu.pipeline_mode<synchronous>, transform_indices = @transform_11, window_bounds = array<i64: 1, 32>}, {transform_indices = @transform_12, window_bounds = array<i64: 1, 8, 32>}]} {
    %c0 = arith.constant 0 : index
    %c0_0 = arith.constant 0 : index
    %c0_1 = arith.constant 0 : index
    %0 = vector.load %arg1[%c0, %c0_0, %c0_1] : memref<1x8x32xf32, #tpu.memory_space<vmem>>, vector<1x8x32xf32>
    %1 = vector.shape_cast %0 : vector<1x8x32xf32> to vector<8x32xf32>
    %c0_2 = arith.constant 0 : index
    %c0_3 = arith.constant 0 : index
    %2 = vector.load %arg2[%c0_2, %c0_3] : memref<1x32xf32, #tpu.memory_space<vmem>>, vector<1x32xf32>
    %c0_4 = arith.constant 0 : index
    %c0_5 = arith.constant 0 : index
    %3 = vector.load %arg3[%c0_4, %c0_5] : memref<1x32xf32, #tpu.memory_space<vmem>>, vector<1x32xf32>
    %cst = arith.constant dense<0.000000e+00> : vector<8xf32>
    %4 = vector.multi_reduction <add>, %1, %cst [1] : vector<8x32xf32> to vector<8xf32>
    %5 = vector.shape_cast %4 : vector<8xf32> to vector<8x1xf32>
    %cst_6 = arith.constant 3.200000e+01 : f32
    %6 = vector.broadcast %cst_6 : f32 to vector<8x1xf32>
    %7 = arith.divf %5, %6 : vector<8x1xf32>
    %8 = vector.broadcast %7 : vector<8x1xf32> to vector<8x32xf32>
    %9 = arith.subf %1, %8 : vector<8x32xf32>
    %10 = arith.mulf %9, %9 : vector<8x32xf32>
    %cst_7 = arith.constant dense<0.000000e+00> : vector<8xf32>
    %11 = vector.multi_reduction <add>, %10, %cst_7 [1] : vector<8x32xf32> to vector<8xf32>
    %12 = vector.shape_cast %11 : vector<8xf32> to vector<8x1xf32>
    %cst_8 = arith.constant 3.200000e+01 : f32
    %13 = vector.broadcast %cst_8 : f32 to vector<8x1xf32>
    %14 = arith.divf %12, %13 : vector<8x1xf32>
    %cst_9 = arith.constant 9.99999974E-6 : f32
    %15 = vector.broadcast %cst_9 : f32 to vector<8x1xf32>
    %16 = arith.addf %14, %15 : vector<8x1xf32>
    %17 = math.rsqrt %16 : vector<8x1xf32>
    %18 = vector.broadcast %17 : vector<8x1xf32> to vector<8x32xf32>
    %19 = arith.mulf %9, %18 : vector<8x32xf32>
    %20 = vector.broadcast %2 : vector<1x32xf32> to vector<8x32xf32>
    %21 = arith.mulf %19, %20 : vector<8x32xf32>
    %22 = vector.broadcast %3 : vector<1x32xf32> to vector<8x32xf32>
    %23 = arith.addf %21, %22 : vector<8x32xf32>
    %c0_10 = arith.constant 0 : index
    %c0_11 = arith.constant 0 : index
    %24 = vector.load %arg4[%c0_10, %c0_11] : memref<32x96xf32, #tpu.memory_space<vmem>>, vector<32x96xf32>
    %cst_12 = arith.constant dense<0.000000e+00> : vector<8x96xf32>
    %25 = tpu.matmul %23, %24, %cst_12 {dimension_numbers = #tpu.dot_dimension_numbers<[1], [0], [0], [1], [0, 0, 1, 1], [], []>} : vector<8x32xf32>, vector<32x96xf32>, vector<8x96xf32> -> vector<8x96xf32>
    %26 = vector.extract_strided_slice %25 {offsets = [0, 0], sizes = [8, 4], strides = [1, 1]} : vector<8x96xf32> to vector<8x4xf32>
    %27 = vector.extract_strided_slice %25 {offsets = [0, 32], sizes = [8, 4], strides = [1, 1]} : vector<8x96xf32> to vector<8x4xf32>
    %28 = vector.extract_strided_slice %25 {offsets = [0, 64], sizes = [8, 4], strides = [1, 1]} : vector<8x96xf32> to vector<8x4xf32>
    %cst_13 = arith.constant dense<0.000000e+00> : vector<8x8xf32>
    %29 = tpu.matmul %26, %27, %cst_13 {dimension_numbers = #tpu.dot_dimension_numbers<[1], [1], [0], [0], [0, 0, 1, 0], [], []>} : vector<8x4xf32>, vector<8x4xf32>, vector<8x8xf32> -> vector<8x8xf32>
    %cst_14 = arith.constant dense<0xFF800000> : vector<8xf32>
    %30 = vector.multi_reduction <maximumf>, %29, %cst_14 [1] : vector<8x8xf32> to vector<8xf32>
    %31 = vector.shape_cast %30 : vector<8xf32> to vector<8x1xf32>
    %32 = vector.broadcast %31 : vector<8x1xf32> to vector<8x8xf32>
    %33 = arith.subf %29, %32 : vector<8x8xf32>
    %34 = math.exp %33 : vector<8x8xf32>
    %cst_15 = arith.constant dense<0.000000e+00> : vector<8xf32>
    %35 = vector.multi_reduction <add>, %34, %cst_15 [1] : vector<8x8xf32> to vector<8xf32>
    %36 = vector.shape_cast %35 : vector<8xf32> to vector<8x1xf32>
    %37 = tpu.reciprocal %36 {approx = true} : vector<8x1xf32> -> vector<8x1xf32>
    %cst_16 = arith.constant dense<0.000000e+00> : vector<8x4xf32>
    %38 = tpu.matmul %34, %28, %cst_16 {dimension_numbers = #tpu.dot_dimension_numbers<[1], [0], [0], [1], [0, 0, 1, 1], [], []>} : vector<8x8xf32>, vector<8x4xf32>, vector<8x4xf32> -> vector<8x4xf32>
    %39 = vector.broadcast %37 : vector<8x1xf32> to vector<8x4xf32>
    %40 = arith.mulf %38, %39 : vector<8x4xf32>
    %c0_17 = arith.constant 0 : index
    %c0_18 = arith.constant 0 : index
    %41 = vector.load %arg5[%c0_17, %c0_18] : memref<32x32xf32, #tpu.memory_space<vmem>>, vector<4x32xf32>
    %cst_19 = arith.constant dense<0.000000e+00> : vector<8x32xf32>
    %42 = tpu.matmul %40, %41, %cst_19 {dimension_numbers = #tpu.dot_dimension_numbers<[1], [0], [0], [1], [0, 0, 1, 1], [], []>} : vector<8x4xf32>, vector<4x32xf32>, vector<8x32xf32> -> vector<8x32xf32>
    %43 = vector.extract_strided_slice %25 {offsets = [0, 4], sizes = [8, 4], strides = [1, 1]} : vector<8x96xf32> to vector<8x4xf32>
    %44 = vector.extract_strided_slice %25 {offsets = [0, 36], sizes = [8, 4], strides = [1, 1]} : vector<8x96xf32> to vector<8x4xf32>
    %45 = vector.extract_strided_slice %25 {offsets = [0, 68], sizes = [8, 4], strides = [1, 1]} : vector<8x96xf32> to vector<8x4xf32>
    %cst_20 = arith.constant dense<0.000000e+00> : vector<8x8xf32>
    %46 = tpu.matmul %43, %44, %cst_20 {dimension_numbers = #tpu.dot_dimension_numbers<[1], [1], [0], [0], [0, 0, 1, 0], [], []>} : vector<8x4xf32>, vector<8x4xf32>, vector<8x8xf32> -> vector<8x8xf32>
    %cst_21 = arith.constant dense<0xFF800000> : vector<8xf32>
    %47 = vector.multi_reduction <maximumf>, %46, %cst_21 [1] : vector<8x8xf32> to vector<8xf32>
    %48 = vector.shape_cast %47 : vector<8xf32> to vector<8x1xf32>
    %49 = vector.broadcast %48 : vector<8x1xf32> to vector<8x8xf32>
    %50 = arith.subf %46, %49 : vector<8x8xf32>
    %51 = math.exp %50 : vector<8x8xf32>
    %cst_22 = arith.constant dense<0.000000e+00> : vector<8xf32>
    %52 = vector.multi_reduction <add>, %51, %cst_22 [1] : vector<8x8xf32> to vector<8xf32>
    %53 = vector.shape_cast %52 : vector<8xf32> to vector<8x1xf32>
    %54 = tpu.reciprocal %53 {approx = true} : vector<8x1xf32> -> vector<8x1xf32>
    %cst_23 = arith.constant dense<0.000000e+00> : vector<8x4xf32>
    %55 = tpu.matmul %51, %45, %cst_23 {dimension_numbers = #tpu.dot_dimension_numbers<[1], [0], [0], [1], [0, 0, 1, 1], [], []>} : vector<8x8xf32>, vector<8x4xf32>, vector<8x4xf32> -> vector<8x4xf32>
    %56 = vector.broadcast %54 : vector<8x1xf32> to vector<8x4xf32>
    %57 = arith.mulf %55, %56 : vector<8x4xf32>
    %c4 = arith.constant 4 : index
    %c0_24 = arith.constant 0 : index
    %58 = vector.load %arg5[%c4, %c0_24] : memref<32x32xf32, #tpu.memory_space<vmem>>, vector<4x32xf32>
    %cst_25 = arith.constant dense<0.000000e+00> : vector<8x32xf32>
    %59 = tpu.matmul %57, %58, %cst_25 {dimension_numbers = #tpu.dot_dimension_numbers<[1], [0], [0], [1], [0, 0, 1, 1], [], []>} : vector<8x4xf32>, vector<4x32xf32>, vector<8x32xf32> -> vector<8x32xf32>
    %60 = arith.addf %42, %59 : vector<8x32xf32>
    %61 = vector.extract_strided_slice %25 {offsets = [0, 8], sizes = [8, 4], strides = [1, 1]} : vector<8x96xf32> to vector<8x4xf32>
    %62 = vector.extract_strided_slice %25 {offsets = [0, 40], sizes = [8, 4], strides = [1, 1]} : vector<8x96xf32> to vector<8x4xf32>
    %63 = vector.extract_strided_slice %25 {offsets = [0, 72], sizes = [8, 4], strides = [1, 1]} : vector<8x96xf32> to vector<8x4xf32>
    %cst_26 = arith.constant dense<0.000000e+00> : vector<8x8xf32>
    %64 = tpu.matmul %61, %62, %cst_26 {dimension_numbers = #tpu.dot_dimension_numbers<[1], [1], [0], [0], [0, 0, 1, 0], [], []>} : vector<8x4xf32>, vector<8x4xf32>, vector<8x8xf32> -> vector<8x8xf32>
    %cst_27 = arith.constant dense<0xFF800000> : vector<8xf32>
    %65 = vector.multi_reduction <maximumf>, %64, %cst_27 [1] : vector<8x8xf32> to vector<8xf32>
    %66 = vector.shape_cast %65 : vector<8xf32> to vector<8x1xf32>
    %67 = vector.broadcast %66 : vector<8x1xf32> to vector<8x8xf32>
    %68 = arith.subf %64, %67 : vector<8x8xf32>
    %69 = math.exp %68 : vector<8x8xf32>
    %cst_28 = arith.constant dense<0.000000e+00> : vector<8xf32>
    %70 = vector.multi_reduction <add>, %69, %cst_28 [1] : vector<8x8xf32> to vector<8xf32>
    %71 = vector.shape_cast %70 : vector<8xf32> to vector<8x1xf32>
    %72 = tpu.reciprocal %71 {approx = true} : vector<8x1xf32> -> vector<8x1xf32>
    %cst_29 = arith.constant dense<0.000000e+00> : vector<8x4xf32>
    %73 = tpu.matmul %69, %63, %cst_29 {dimension_numbers = #tpu.dot_dimension_numbers<[1], [0], [0], [1], [0, 0, 1, 1], [], []>} : vector<8x8xf32>, vector<8x4xf32>, vector<8x4xf32> -> vector<8x4xf32>
    %74 = vector.broadcast %72 : vector<8x1xf32> to vector<8x4xf32>
    %75 = arith.mulf %73, %74 : vector<8x4xf32>
    %c8 = arith.constant 8 : index
    %c0_30 = arith.constant 0 : index
    %76 = vector.load %arg5[%c8, %c0_30] : memref<32x32xf32, #tpu.memory_space<vmem>>, vector<4x32xf32>
    %cst_31 = arith.constant dense<0.000000e+00> : vector<8x32xf32>
    %77 = tpu.matmul %75, %76, %cst_31 {dimension_numbers = #tpu.dot_dimension_numbers<[1], [0], [0], [1], [0, 0, 1, 1], [], []>} : vector<8x4xf32>, vector<4x32xf32>, vector<8x32xf32> -> vector<8x32xf32>
    %78 = arith.addf %60, %77 : vector<8x32xf32>
    %79 = vector.extract_strided_slice %25 {offsets = [0, 12], sizes = [8, 4], strides = [1, 1]} : vector<8x96xf32> to vector<8x4xf32>
    %80 = vector.extract_strided_slice %25 {offsets = [0, 44], sizes = [8, 4], strides = [1, 1]} : vector<8x96xf32> to vector<8x4xf32>
    %81 = vector.extract_strided_slice %25 {offsets = [0, 76], sizes = [8, 4], strides = [1, 1]} : vector<8x96xf32> to vector<8x4xf32>
    %cst_32 = arith.constant dense<0.000000e+00> : vector<8x8xf32>
    %82 = tpu.matmul %79, %80, %cst_32 {dimension_numbers = #tpu.dot_dimension_numbers<[1], [1], [0], [0], [0, 0, 1, 0], [], []>} : vector<8x4xf32>, vector<8x4xf32>, vector<8x8xf32> -> vector<8x8xf32>
    %cst_33 = arith.constant dense<0xFF800000> : vector<8xf32>
    %83 = vector.multi_reduction <maximumf>, %82, %cst_33 [1] : vector<8x8xf32> to vector<8xf32>
    %84 = vector.shape_cast %83 : vector<8xf32> to vector<8x1xf32>
    %85 = vector.broadcast %84 : vector<8x1xf32> to vector<8x8xf32>
    %86 = arith.subf %82, %85 : vector<8x8xf32>
    %87 = math.exp %86 : vector<8x8xf32>
    %cst_34 = arith.constant dense<0.000000e+00> : vector<8xf32>
    %88 = vector.multi_reduction <add>, %87, %cst_34 [1] : vector<8x8xf32> to vector<8xf32>
    %89 = vector.shape_cast %88 : vector<8xf32> to vector<8x1xf32>
    %90 = tpu.reciprocal %89 {approx = true} : vector<8x1xf32> -> vector<8x1xf32>
    %cst_35 = arith.constant dense<0.000000e+00> : vector<8x4xf32>
    %91 = tpu.matmul %87, %81, %cst_35 {dimension_numbers = #tpu.dot_dimension_numbers<[1], [0], [0], [1], [0, 0, 1, 1], [], []>} : vector<8x8xf32>, vector<8x4xf32>, vector<8x4xf32> -> vector<8x4xf32>
    %92 = vector.broadcast %90 : vector<8x1xf32> to vector<8x4xf32>
    %93 = arith.mulf %91, %92 : vector<8x4xf32>
    %c12 = arith.constant 12 : index
    %c0_36 = arith.constant 0 : index
    %94 = vector.load %arg5[%c12, %c0_36] : memref<32x32xf32, #tpu.memory_space<vmem>>, vector<4x32xf32>
    %cst_37 = arith.constant dense<0.000000e+00> : vector<8x32xf32>
    %95 = tpu.matmul %93, %94, %cst_37 {dimension_numbers = #tpu.dot_dimension_numbers<[1], [0], [0], [1], [0, 0, 1, 1], [], []>} : vector<8x4xf32>, vector<4x32xf32>, vector<8x32xf32> -> vector<8x32xf32>
    %96 = arith.addf %78, %95 : vector<8x32xf32>
    %97 = vector.extract_strided_slice %25 {offsets = [0, 16], sizes = [8, 4], strides = [1, 1]} : vector<8x96xf32> to vector<8x4xf32>
    %98 = vector.extract_strided_slice %25 {offsets = [0, 48], sizes = [8, 4], strides = [1, 1]} : vector<8x96xf32> to vector<8x4xf32>
    %99 = vector.extract_strided_slice %25 {offsets = [0, 80], sizes = [8, 4], strides = [1, 1]} : vector<8x96xf32> to vector<8x4xf32>
    %cst_38 = arith.constant dense<0.000000e+00> : vector<8x8xf32>
    %100 = tpu.matmul %97, %98, %cst_38 {dimension_numbers = #tpu.dot_dimension_numbers<[1], [1], [0], [0], [0, 0, 1, 0], [], []>} : vector<8x4xf32>, vector<8x4xf32>, vector<8x8xf32> -> vector<8x8xf32>
    %cst_39 = arith.constant dense<0xFF800000> : vector<8xf32>
    %101 = vector.multi_reduction <maximumf>, %100, %cst_39 [1] : vector<8x8xf32> to vector<8xf32>
    %102 = vector.shape_cast %101 : vector<8xf32> to vector<8x1xf32>
    %103 = vector.broadcast %102 : vector<8x1xf32> to vector<8x8xf32>
    %104 = arith.subf %100, %103 : vector<8x8xf32>
    %105 = math.exp %104 : vector<8x8xf32>
    %cst_40 = arith.constant dense<0.000000e+00> : vector<8xf32>
    %106 = vector.multi_reduction <add>, %105, %cst_40 [1] : vector<8x8xf32> to vector<8xf32>
    %107 = vector.shape_cast %106 : vector<8xf32> to vector<8x1xf32>
    %108 = tpu.reciprocal %107 {approx = true} : vector<8x1xf32> -> vector<8x1xf32>
    %cst_41 = arith.constant dense<0.000000e+00> : vector<8x4xf32>
    %109 = tpu.matmul %105, %99, %cst_41 {dimension_numbers = #tpu.dot_dimension_numbers<[1], [0], [0], [1], [0, 0, 1, 1], [], []>} : vector<8x8xf32>, vector<8x4xf32>, vector<8x4xf32> -> vector<8x4xf32>
    %110 = vector.broadcast %108 : vector<8x1xf32> to vector<8x4xf32>
    %111 = arith.mulf %109, %110 : vector<8x4xf32>
    %c16 = arith.constant 16 : index
    %c0_42 = arith.constant 0 : index
    %112 = vector.load %arg5[%c16, %c0_42] : memref<32x32xf32, #tpu.memory_space<vmem>>, vector<4x32xf32>
    %cst_43 = arith.constant dense<0.000000e+00> : vector<8x32xf32>
    %113 = tpu.matmul %111, %112, %cst_43 {dimension_numbers = #tpu.dot_dimension_numbers<[1], [0], [0], [1], [0, 0, 1, 1], [], []>} : vector<8x4xf32>, vector<4x32xf32>, vector<8x32xf32> -> vector<8x32xf32>
    %114 = arith.addf %96, %113 : vector<8x32xf32>
    %115 = vector.extract_strided_slice %25 {offsets = [0, 20], sizes = [8, 4], strides = [1, 1]} : vector<8x96xf32> to vector<8x4xf32>
    %116 = vector.extract_strided_slice %25 {offsets = [0, 52], sizes = [8, 4], strides = [1, 1]} : vector<8x96xf32> to vector<8x4xf32>
    %117 = vector.extract_strided_slice %25 {offsets = [0, 84], sizes = [8, 4], strides = [1, 1]} : vector<8x96xf32> to vector<8x4xf32>
    %cst_44 = arith.constant dense<0.000000e+00> : vector<8x8xf32>
    %118 = tpu.matmul %115, %116, %cst_44 {dimension_numbers = #tpu.dot_dimension_numbers<[1], [1], [0], [0], [0, 0, 1, 0], [], []>} : vector<8x4xf32>, vector<8x4xf32>, vector<8x8xf32> -> vector<8x8xf32>
    %cst_45 = arith.constant dense<0xFF800000> : vector<8xf32>
    %119 = vector.multi_reduction <maximumf>, %118, %cst_45 [1] : vector<8x8xf32> to vector<8xf32>
    %120 = vector.shape_cast %119 : vector<8xf32> to vector<8x1xf32>
    %121 = vector.broadcast %120 : vector<8x1xf32> to vector<8x8xf32>
    %122 = arith.subf %118, %121 : vector<8x8xf32>
    %123 = math.exp %122 : vector<8x8xf32>
    %cst_46 = arith.constant dense<0.000000e+00> : vector<8xf32>
    %124 = vector.multi_reduction <add>, %123, %cst_46 [1] : vector<8x8xf32> to vector<8xf32>
    %125 = vector.shape_cast %124 : vector<8xf32> to vector<8x1xf32>
    %126 = tpu.reciprocal %125 {approx = true} : vector<8x1xf32> -> vector<8x1xf32>
    %cst_47 = arith.constant dense<0.000000e+00> : vector<8x4xf32>
    %127 = tpu.matmul %123, %117, %cst_47 {dimension_numbers = #tpu.dot_dimension_numbers<[1], [0], [0], [1], [0, 0, 1, 1], [], []>} : vector<8x8xf32>, vector<8x4xf32>, vector<8x4xf32> -> vector<8x4xf32>
    %128 = vector.broadcast %126 : vector<8x1xf32> to vector<8x4xf32>
    %129 = arith.mulf %127, %128 : vector<8x4xf32>
    %c20 = arith.constant 20 : index
    %c0_48 = arith.constant 0 : index
    %130 = vector.load %arg5[%c20, %c0_48] : memref<32x32xf32, #tpu.memory_space<vmem>>, vector<4x32xf32>
    %cst_49 = arith.constant dense<0.000000e+00> : vector<8x32xf32>
    %131 = tpu.matmul %129, %130, %cst_49 {dimension_numbers = #tpu.dot_dimension_numbers<[1], [0], [0], [1], [0, 0, 1, 1], [], []>} : vector<8x4xf32>, vector<4x32xf32>, vector<8x32xf32> -> vector<8x32xf32>
    %132 = arith.addf %114, %131 : vector<8x32xf32>
    %133 = vector.extract_strided_slice %25 {offsets = [0, 24], sizes = [8, 4], strides = [1, 1]} : vector<8x96xf32> to vector<8x4xf32>
    %134 = vector.extract_strided_slice %25 {offsets = [0, 56], sizes = [8, 4], strides = [1, 1]} : vector<8x96xf32> to vector<8x4xf32>
    %135 = vector.extract_strided_slice %25 {offsets = [0, 88], sizes = [8, 4], strides = [1, 1]} : vector<8x96xf32> to vector<8x4xf32>
    %cst_50 = arith.constant dense<0.000000e+00> : vector<8x8xf32>
    %136 = tpu.matmul %133, %134, %cst_50 {dimension_numbers = #tpu.dot_dimension_numbers<[1], [1], [0], [0], [0, 0, 1, 0], [], []>} : vector<8x4xf32>, vector<8x4xf32>, vector<8x8xf32> -> vector<8x8xf32>
    %cst_51 = arith.constant dense<0xFF800000> : vector<8xf32>
    %137 = vector.multi_reduction <maximumf>, %136, %cst_51 [1] : vector<8x8xf32> to vector<8xf32>
    %138 = vector.shape_cast %137 : vector<8xf32> to vector<8x1xf32>
    %139 = vector.broadcast %138 : vector<8x1xf32> to vector<8x8xf32>
    %140 = arith.subf %136, %139 : vector<8x8xf32>
    %141 = math.exp %140 : vector<8x8xf32>
    %cst_52 = arith.constant dense<0.000000e+00> : vector<8xf32>
    %142 = vector.multi_reduction <add>, %141, %cst_52 [1] : vector<8x8xf32> to vector<8xf32>
    %143 = vector.shape_cast %142 : vector<8xf32> to vector<8x1xf32>
    %144 = tpu.reciprocal %143 {approx = true} : vector<8x1xf32> -> vector<8x1xf32>
    %cst_53 = arith.constant dense<0.000000e+00> : vector<8x4xf32>
    %145 = tpu.matmul %141, %135, %cst_53 {dimension_numbers = #tpu.dot_dimension_numbers<[1], [0], [0], [1], [0, 0, 1, 1], [], []>} : vector<8x8xf32>, vector<8x4xf32>, vector<8x4xf32> -> vector<8x4xf32>
    %146 = vector.broadcast %144 : vector<8x1xf32> to vector<8x4xf32>
    %147 = arith.mulf %145, %146 : vector<8x4xf32>
    %c24 = arith.constant 24 : index
    %c0_54 = arith.constant 0 : index
    %148 = vector.load %arg5[%c24, %c0_54] : memref<32x32xf32, #tpu.memory_space<vmem>>, vector<4x32xf32>
    %cst_55 = arith.constant dense<0.000000e+00> : vector<8x32xf32>
    %149 = tpu.matmul %147, %148, %cst_55 {dimension_numbers = #tpu.dot_dimension_numbers<[1], [0], [0], [1], [0, 0, 1, 1], [], []>} : vector<8x4xf32>, vector<4x32xf32>, vector<8x32xf32> -> vector<8x32xf32>
    %150 = arith.addf %132, %149 : vector<8x32xf32>
    %151 = vector.extract_strided_slice %25 {offsets = [0, 28], sizes = [8, 4], strides = [1, 1]} : vector<8x96xf32> to vector<8x4xf32>
    %152 = vector.extract_strided_slice %25 {offsets = [0, 60], sizes = [8, 4], strides = [1, 1]} : vector<8x96xf32> to vector<8x4xf32>
    %153 = vector.extract_strided_slice %25 {offsets = [0, 92], sizes = [8, 4], strides = [1, 1]} : vector<8x96xf32> to vector<8x4xf32>
    %cst_56 = arith.constant dense<0.000000e+00> : vector<8x8xf32>
    %154 = tpu.matmul %151, %152, %cst_56 {dimension_numbers = #tpu.dot_dimension_numbers<[1], [1], [0], [0], [0, 0, 1, 0], [], []>} : vector<8x4xf32>, vector<8x4xf32>, vector<8x8xf32> -> vector<8x8xf32>
    %cst_57 = arith.constant dense<0xFF800000> : vector<8xf32>
    %155 = vector.multi_reduction <maximumf>, %154, %cst_57 [1] : vector<8x8xf32> to vector<8xf32>
    %156 = vector.shape_cast %155 : vector<8xf32> to vector<8x1xf32>
    %157 = vector.broadcast %156 : vector<8x1xf32> to vector<8x8xf32>
    %158 = arith.subf %154, %157 : vector<8x8xf32>
    %159 = math.exp %158 : vector<8x8xf32>
    %cst_58 = arith.constant dense<0.000000e+00> : vector<8xf32>
    %160 = vector.multi_reduction <add>, %159, %cst_58 [1] : vector<8x8xf32> to vector<8xf32>
    %161 = vector.shape_cast %160 : vector<8xf32> to vector<8x1xf32>
    %162 = tpu.reciprocal %161 {approx = true} : vector<8x1xf32> -> vector<8x1xf32>
    %cst_59 = arith.constant dense<0.000000e+00> : vector<8x4xf32>
    %163 = tpu.matmul %159, %153, %cst_59 {dimension_numbers = #tpu.dot_dimension_numbers<[1], [0], [0], [1], [0, 0, 1, 1], [], []>} : vector<8x8xf32>, vector<8x4xf32>, vector<8x4xf32> -> vector<8x4xf32>
    %164 = vector.broadcast %162 : vector<8x1xf32> to vector<8x4xf32>
    %165 = arith.mulf %163, %164 : vector<8x4xf32>
    %c28 = arith.constant 28 : index
    %c0_60 = arith.constant 0 : index
    %166 = vector.load %arg5[%c28, %c0_60] : memref<32x32xf32, #tpu.memory_space<vmem>>, vector<4x32xf32>
    %cst_61 = arith.constant dense<0.000000e+00> : vector<8x32xf32>
    %167 = tpu.matmul %165, %166, %cst_61 {dimension_numbers = #tpu.dot_dimension_numbers<[1], [0], [0], [1], [0, 0, 1, 1], [], []>} : vector<8x4xf32>, vector<4x32xf32>, vector<8x32xf32> -> vector<8x32xf32>
    %168 = arith.addf %150, %167 : vector<8x32xf32>
    %169 = arith.addf %1, %168 : vector<8x32xf32>
    %c0_62 = arith.constant 0 : index
    %c0_63 = arith.constant 0 : index
    %170 = vector.load %arg6[%c0_62, %c0_63] : memref<1x32xf32, #tpu.memory_space<vmem>>, vector<1x32xf32>
    %171 = vector.broadcast %170 : vector<1x32xf32> to vector<8x32xf32>
    %172 = arith.addf %169, %171 : vector<8x32xf32>
    %c0_64 = arith.constant 0 : index
    %c0_65 = arith.constant 0 : index
    %173 = vector.load %arg7[%c0_64, %c0_65] : memref<1x32xf32, #tpu.memory_space<vmem>>, vector<1x32xf32>
    %c0_66 = arith.constant 0 : index
    %c0_67 = arith.constant 0 : index
    %174 = vector.load %arg8[%c0_66, %c0_67] : memref<1x32xf32, #tpu.memory_space<vmem>>, vector<1x32xf32>
    %cst_68 = arith.constant dense<0.000000e+00> : vector<8xf32>
    %175 = vector.multi_reduction <add>, %172, %cst_68 [1] : vector<8x32xf32> to vector<8xf32>
    %176 = vector.shape_cast %175 : vector<8xf32> to vector<8x1xf32>
    %cst_69 = arith.constant 3.200000e+01 : f32
    %177 = vector.broadcast %cst_69 : f32 to vector<8x1xf32>
    %178 = arith.divf %176, %177 : vector<8x1xf32>
    %179 = vector.broadcast %178 : vector<8x1xf32> to vector<8x32xf32>
    %180 = arith.subf %172, %179 : vector<8x32xf32>
    %181 = arith.mulf %180, %180 : vector<8x32xf32>
    %cst_70 = arith.constant dense<0.000000e+00> : vector<8xf32>
    %182 = vector.multi_reduction <add>, %181, %cst_70 [1] : vector<8x32xf32> to vector<8xf32>
    %183 = vector.shape_cast %182 : vector<8xf32> to vector<8x1xf32>
    %cst_71 = arith.constant 3.200000e+01 : f32
    %184 = vector.broadcast %cst_71 : f32 to vector<8x1xf32>
    %185 = arith.divf %183, %184 : vector<8x1xf32>
    %cst_72 = arith.constant 9.99999974E-6 : f32
    %186 = vector.broadcast %cst_72 : f32 to vector<8x1xf32>
    %187 = arith.addf %185, %186 : vector<8x1xf32>
    %188 = math.rsqrt %187 : vector<8x1xf32>
    %189 = vector.broadcast %188 : vector<8x1xf32> to vector<8x32xf32>
    %190 = arith.mulf %180, %189 : vector<8x32xf32>
    %191 = vector.broadcast %173 : vector<1x32xf32> to vector<8x32xf32>
    %192 = arith.mulf %190, %191 : vector<8x32xf32>
    %193 = vector.broadcast %174 : vector<1x32xf32> to vector<8x32xf32>
    %194 = arith.addf %192, %193 : vector<8x32xf32>
    %c0_73 = arith.constant 0 : index
    %c0_74 = arith.constant 0 : index
    %195 = vector.load %arg9[%c0_73, %c0_74] : memref<32x128xf32, #tpu.memory_space<vmem>>, vector<32x128xf32>
    %cst_75 = arith.constant dense<0.000000e+00> : vector<8x128xf32>
    %196 = tpu.matmul %194, %195, %cst_75 {dimension_numbers = #tpu.dot_dimension_numbers<[1], [0], [0], [1], [0, 0, 1, 1], [], []>} : vector<8x32xf32>, vector<32x128xf32>, vector<8x128xf32> -> vector<8x128xf32>
    %c0_76 = arith.constant 0 : index
    %c0_77 = arith.constant 0 : index
    %197 = vector.load %arg10[%c0_76, %c0_77] : memref<1x128xf32, #tpu.memory_space<vmem>>, vector<1x128xf32>
    %198 = vector.broadcast %197 : vector<1x128xf32> to vector<8x128xf32>
    %199 = arith.addf %196, %198 : vector<8x128xf32>
    %cst_78 = arith.constant 5.000000e-01 : f32
    %200 = vector.broadcast %cst_78 : f32 to vector<8x128xf32>
    %201 = arith.mulf %200, %199 : vector<8x128xf32>
    %cst_79 = arith.constant 0.707106769 : f32
    %202 = vector.broadcast %cst_79 : f32 to vector<8x128xf32>
    %203 = arith.mulf %199, %202 : vector<8x128xf32>
    %cst_80 = arith.constant 0.000000e+00 : f32
    %204 = vector.broadcast %cst_80 : f32 to vector<8x128xf32>
    %205 = arith.cmpf oge, %203, %204 : vector<8x128xf32>
    %cst_81 = arith.constant 1.000000e+00 : f32
    %cst_82 = arith.constant -1.000000e+00 : f32
    %206 = vector.broadcast %cst_81 : f32 to vector<8x128xf32>
    %207 = vector.broadcast %cst_82 : f32 to vector<8x128xf32>
    %208 = arith.select %205, %206, %207 : vector<8x128xi1>, vector<8x128xf32>
    %209 = math.absf %203 : vector<8x128xf32>
    %cst_83 = arith.constant 0.327591091 : f32
    %210 = vector.broadcast %cst_83 : f32 to vector<8x128xf32>
    %211 = arith.mulf %210, %209 : vector<8x128xf32>
    %cst_84 = arith.constant 1.000000e+00 : f32
    %212 = vector.broadcast %cst_84 : f32 to vector<8x128xf32>
    %213 = arith.addf %212, %211 : vector<8x128xf32>
    %214 = tpu.reciprocal %213 {approx = true} : vector<8x128xf32> -> vector<8x128xf32>
    %cst_85 = arith.constant 1.06140542 : f32
    %215 = vector.broadcast %cst_85 : f32 to vector<8x128xf32>
    %216 = arith.mulf %215, %214 : vector<8x128xf32>
    %cst_86 = arith.constant -1.45315206 : f32
    %217 = vector.broadcast %cst_86 : f32 to vector<8x128xf32>
    %218 = arith.addf %216, %217 : vector<8x128xf32>
    %219 = arith.mulf %218, %214 : vector<8x128xf32>
    %cst_87 = arith.constant 1.42141378 : f32
    %220 = vector.broadcast %cst_87 : f32 to vector<8x128xf32>
    %221 = arith.addf %219, %220 : vector<8x128xf32>
    %222 = arith.mulf %221, %214 : vector<8x128xf32>
    %cst_88 = arith.constant -0.284496725 : f32
    %223 = vector.broadcast %cst_88 : f32 to vector<8x128xf32>
    %224 = arith.addf %222, %223 : vector<8x128xf32>
    %225 = arith.mulf %224, %214 : vector<8x128xf32>
    %cst_89 = arith.constant 0.254829586 : f32
    %226 = vector.broadcast %cst_89 : f32 to vector<8x128xf32>
    %227 = arith.addf %225, %226 : vector<8x128xf32>
    %228 = arith.mulf %227, %214 : vector<8x128xf32>
    %cst_90 = arith.constant 0.000000e+00 : f32
    %229 = vector.broadcast %cst_90 : f32 to vector<8x128xf32>
    %230 = arith.subf %229, %209 : vector<8x128xf32>
    %231 = arith.mulf %230, %209 : vector<8x128xf32>
    %232 = math.exp %231 : vector<8x128xf32>
    %233 = arith.mulf %228, %232 : vector<8x128xf32>
    %cst_91 = arith.constant 1.000000e+00 : f32
    %234 = vector.broadcast %cst_91 : f32 to vector<8x128xf32>
    %235 = arith.subf %234, %233 : vector<8x128xf32>
    %236 = arith.mulf %208, %235 : vector<8x128xf32>
    %cst_92 = arith.constant 1.000000e+00 : f32
    %237 = vector.broadcast %cst_92 : f32 to vector<8x128xf32>
    %238 = arith.addf %237, %236 : vector<8x128xf32>
    %239 = arith.mulf %201, %238 : vector<8x128xf32>
    %c0_93 = arith.constant 0 : index
    %c0_94 = arith.constant 0 : index
    %240 = vector.load %arg11[%c0_93, %c0_94] : memref<128x32xf32, #tpu.memory_space<vmem>>, vector<128x32xf32>
    %cst_95 = arith.constant dense<0.000000e+00> : vector<8x32xf32>
    %241 = tpu.matmul %239, %240, %cst_95 {dimension_numbers = #tpu.dot_dimension_numbers<[1], [0], [0], [1], [0, 0, 1, 1], [], []>} : vector<8x128xf32>, vector<128x32xf32>, vector<8x32xf32> -> vector<8x32xf32>
    %c0_96 = arith.constant 0 : index
    %c0_97 = arith.constant 0 : index
    %242 = vector.load %arg12[%c0_96, %c0_97] : memref<1x32xf32, #tpu.memory_space<vmem>>, vector<1x32xf32>
    %243 = vector.broadcast %242 : vector<1x32xf32> to vector<8x32xf32>
    %244 = arith.addf %241, %243 : vector<8x32xf32>
    %245 = arith.addf %172, %244 : vector<8x32xf32>
    %c0_98 = arith.constant 0 : index
    %c0_99 = arith.constant 0 : index
    %c0_100 = arith.constant 0 : index
    %246 = vector.load %arg13[%c0_98, %c0_99, %c0_100] : memref<1x8x32xf32, #tpu.memory_space<vmem>>, vector<1x8x32xf32>
    %247 = vector.shape_cast %246 : vector<1x8x32xf32> to vector<8x32xf32>
    %248 = vector.shape_cast %245 : vector<8x32xf32> to vector<1x8x32xf32>
    tpu.vector_store %arg13[%c0_98, %c0_99, %c0_100], %248 {strides = array<i32>} : memref<1x8x32xf32, #tpu.memory_space<vmem>>, vector<1x8x32xf32>,
    return
  }
  func.func @transform_0(%arg0: i32) -> (i32, i32, i32) {
    %c0_i32 = arith.constant 0 : i32
    %c0_i32_0 = arith.constant 0 : i32
    %c0_i32_1 = arith.constant 0 : i32
    return %arg0, %c0_i32, %c0_i32_0 : i32, i32, i32
  }
  func.func @transform_1(%arg0: i32) -> (i32, i32) {
    %c0_i32 = arith.constant 0 : i32
    %c0_i32_0 = arith.constant 0 : i32
    %c0_i32_1 = arith.constant 0 : i32
    return %c0_i32, %c0_i32_0 : i32, i32
  }
  func.func @transform_2(%arg0: i32) -> (i32, i32) {
    %c0_i32 = arith.constant 0 : i32
    %c0_i32_0 = arith.constant 0 : i32
    %c0_i32_1 = arith.constant 0 : i32
    return %c0_i32, %c0_i32_0 : i32, i32
  }
  func.func @transform_3(%arg0: i32) -> (i32, i32) {
    %c0_i32 = arith.constant 0 : i32
    %c0_i32_0 = arith.constant 0 : i32
    %c0_i32_1 = arith.constant 0 : i32
    return %c0_i32, %c0_i32_0 : i32, i32
  }
  func.func @transform_4(%arg0: i32) -> (i32, i32) {
    %c0_i32 = arith.constant 0 : i32
    %c0_i32_0 = arith.constant 0 : i32
    %c0_i32_1 = arith.constant 0 : i32
    return %c0_i32, %c0_i32_0 : i32, i32
  }
  func.func @transform_5(%arg0: i32) -> (i32, i32) {
    %c0_i32 = arith.constant 0 : i32
    %c0_i32_0 = arith.constant 0 : i32
    %c0_i32_1 = arith.constant 0 : i32
    return %c0_i32, %c0_i32_0 : i32, i32
  }
  func.func @transform_6(%arg0: i32) -> (i32, i32) {
    %c0_i32 = arith.constant 0 : i32
    %c0_i32_0 = arith.constant 0 : i32
    %c0_i32_1 = arith.constant 0 : i32
    return %c0_i32, %c0_i32_0 : i32, i32
  }
  func.func @transform_7(%arg0: i32) -> (i32, i32) {
    %c0_i32 = arith.constant 0 : i32
    %c0_i32_0 = arith.constant 0 : i32
    %c0_i32_1 = arith.constant 0 : i32
    return %c0_i32, %c0_i32_0 : i32, i32
  }
  func.func @transform_8(%arg0: i32) -> (i32, i32) {
    %c0_i32 = arith.constant 0 : i32
    %c0_i32_0 = arith.constant 0 : i32
    %c0_i32_1 = arith.constant 0 : i32
    return %c0_i32, %c0_i32_0 : i32, i32
  }
  func.func @transform_9(%arg0: i32) -> (i32, i32) {
    %c0_i32 = arith.constant 0 : i32
    %c0_i32_0 = arith.constant 0 : i32
    %c0_i32_1 = arith.constant 0 : i32
    return %c0_i32, %c0_i32_0 : i32, i32
  }
  func.func @transform_10(%arg0: i32) -> (i32, i32) {
    %c0_i32 = arith.constant 0 : i32
    %c0_i32_0 = arith.constant 0 : i32
    %c0_i32_1 = arith.constant 0 : i32
    return %c0_i32, %c0_i32_0 : i32, i32
  }
  func.func @transform_11(%arg0: i32) -> (i32, i32) {
    %c0_i32 = arith.constant 0 : i32
    %c0_i32_0 = arith.constant 0 : i32
    %c0_i32_1 = arith.constant 0 : i32
    return %c0_i32, %c0_i32_0 : i32, i32
  }
  func.func @transform_12(%arg0: i32) -> (i32, i32, i32) {
    %c0_i32 = arith.constant 0 : i32
    %c0_i32_0 = arith.constant 0 : i32
    %c0_i32_1 = arith.constant 0 : i32
    return %arg0, %c0_i32, %c0_i32_0 : i32, i32, i32
  }
}

module attributes {stable_mosaic.version = 11 : i64} {
  func.func @_block_kernel(%arg0: i32, %arg1: memref<1x8x32xf32, #tpu.memory_space<vmem>>, %arg2: memref<1x32xf32, #tpu.memory_space<vmem>>, %arg3: memref<1x32xf32, #tpu.memory_space<vmem>>, %arg4: memref<32x96xf32, #tpu.memory_space<vmem>>, %arg5: memref<32x32xf32, #tpu.memory_space<vmem>>, %arg6: memref<1x32xf32, #tpu.memory_space<vmem>>, %arg7: memref<1x32xf32, #tpu.memory_space<vmem>>, %arg8: memref<1x32xf32, #tpu.memory_space<vmem>>, %arg9: memref<32x128xf32, #tpu.memory_space<vmem>>, %arg10: memref<1x128xf32, #tpu.memory_space<vmem>>, %arg11: memref<128x32xf32, #tpu.memory_space<vmem>>, %arg12: memref<1x32xf32, #tpu.memory_space<vmem>>, %arg13: memref<1x8x32xf32, #tpu.memory_space<vmem>>) attributes {dimension_semantics = [#tpu.dimension_semantics<parallel>], iteration_bounds = array<i64: 2>, scalar_prefetch = 0 : i64, scratch_operands = 0 : i64, tpu.core_type = #tpu.core_type<tc>, window_params = [{transform_indices = @transform_0, window_bounds = array<i64: 1, 8, 32>}, {pipeline_mode = #tpu.pipeline_mode<synchronous>, transform_indices = @transform_1, window_bounds = array<i64: 1, 32>}, {pipeline_mode = #tpu.pipeline_mode<synchronous>, transform_indices = @transform_2, window_bounds = array<i64: 1, 32>}, {pipeline_mode = #tpu.pipeline_mode<synchronous>, transform_indices = @transform_3, window_bounds = array<i64: 32, 96>}, {pipeline_mode = #tpu.pipeline_mode<synchronous>, transform_indices = @transform_4, window_bounds = array<i64: 32, 32>}, {pipeline_mode = #tpu.pipeline_mode<synchronous>, transform_indices = @transform_5, window_bounds = array<i64: 1, 32>}, {pipeline_mode = #tpu.pipeline_mode<synchronous>, transform_indices = @transform_6, window_bounds = array<i64: 1, 32>}, {pipeline_mode = #tpu.pipeline_mode<synchronous>, transform_indices = @transform_7, window_bounds = array<i64: 1, 32>}, {pipeline_mode = #tpu.pipeline_mode<synchronous>, transform_indices = @transform_8, window_bounds = array<i64: 32, 128>}, {pipeline_mode = #tpu.pipeline_mode<synchronous>, transform_indices = @transform_9, window_bounds = array<i64: 1, 128>}, {pipeline_mode = #tpu.pipeline_mode<synchronous>, transform_indices = @transform_10, window_bounds = array<i64: 128, 32>}, {pipeline_mode = #tpu.pipeline_mode<synchronous>, transform_indices = @transform_11, window_bounds = array<i64: 1, 32>}, {transform_indices = @transform_12, window_bounds = array<i64: 1, 8, 32>}]} {
    %c0 = arith.constant 0 : index
    %c0_0 = arith.constant 0 : index
    %c0_1 = arith.constant 0 : index
    %0 = vector.load %arg1[%c0, %c0_0, %c0_1] : memref<1x8x32xf32, #tpu.memory_space<vmem>>, vector<1x8x32xf32>
    %1 = vector.shape_cast %0 : vector<1x8x32xf32> to vector<8x32xf32>
    %c0_2 = arith.constant 0 : index
    %c0_3 = arith.constant 0 : index
    %2 = vector.load %arg2[%c0_2, %c0_3] : memref<1x32xf32, #tpu.memory_space<vmem>>, vector<1x32xf32>
    %c0_4 = arith.constant 0 : index
    %c0_5 = arith.constant 0 : index
    %3 = vector.load %arg3[%c0_4, %c0_5] : memref<1x32xf32, #tpu.memory_space<vmem>>, vector<1x32xf32>
    %cst = arith.constant dense<0.000000e+00> : vector<8xf32>
    %4 = vector.multi_reduction <add>, %1, %cst [1] : vector<8x32xf32> to vector<8xf32>
    %5 = vector.shape_cast %4 : vector<8xf32> to vector<8x1xf32>
    %cst_6 = arith.constant 3.200000e+01 : f32
    %6 = vector.broadcast %cst_6 : f32 to vector<8x1xf32>
    %7 = arith.divf %5, %6 : vector<8x1xf32>
    %8 = vector.broadcast %7 : vector<8x1xf32> to vector<8x32xf32>
    %9 = arith.subf %1, %8 : vector<8x32xf32>
    %10 = arith.mulf %9, %9 : vector<8x32xf32>
    %cst_7 = arith.constant dense<0.000000e+00> : vector<8xf32>
    %11 = vector.multi_reduction <add>, %10, %cst_7 [1] : vector<8x32xf32> to vector<8xf32>
    %12 = vector.shape_cast %11 : vector<8xf32> to vector<8x1xf32>
    %cst_8 = arith.constant 3.200000e+01 : f32
    %13 = vector.broadcast %cst_8 : f32 to vector<8x1xf32>
    %14 = arith.divf %12, %13 : vector<8x1xf32>
    %cst_9 = arith.constant 9.99999974E-6 : f32
    %15 = vector.broadcast %cst_9 : f32 to vector<8x1xf32>
    %16 = arith.addf %14, %15 : vector<8x1xf32>
    %17 = math.rsqrt %16 : vector<8x1xf32>
    %18 = vector.broadcast %17 : vector<8x1xf32> to vector<8x32xf32>
    %19 = arith.mulf %9, %18 : vector<8x32xf32>
    %20 = vector.broadcast %2 : vector<1x32xf32> to vector<8x32xf32>
    %21 = arith.mulf %19, %20 : vector<8x32xf32>
    %22 = vector.broadcast %3 : vector<1x32xf32> to vector<8x32xf32>
    %23 = arith.addf %21, %22 : vector<8x32xf32>
    %c0_10 = arith.constant 0 : index
    %c0_11 = arith.constant 0 : index
    %24 = vector.load %arg4[%c0_10, %c0_11] : memref<32x96xf32, #tpu.memory_space<vmem>>, vector<32x96xf32>
    %cst_12 = arith.constant dense<0.000000e+00> : vector<8x96xf32>
    %25 = tpu.matmul %23, %24, %cst_12 {dimension_numbers = #tpu.dot_dimension_numbers<[1], [0], [0], [1], [0, 0, 1, 1], [], []>} : vector<8x32xf32>, vector<32x96xf32>, vector<8x96xf32> -> vector<8x96xf32>
    %26 = vector.extract_strided_slice %25 {offsets = [0, 0], sizes = [8, 4], strides = [1, 1]} : vector<8x96xf32> to vector<8x4xf32>
    %27 = vector.extract_strided_slice %25 {offsets = [0, 32], sizes = [8, 4], strides = [1, 1]} : vector<8x96xf32> to vector<8x4xf32>
    %28 = vector.extract_strided_slice %25 {offsets = [0, 64], sizes = [8, 4], strides = [1, 1]} : vector<8x96xf32> to vector<8x4xf32>
    %cst_13 = arith.constant dense<0.000000e+00> : vector<8x8xf32>
    %29 = tpu.matmul %26, %27, %cst_13 {dimension_numbers = #tpu.dot_dimension_numbers<[1], [1], [0], [0], [0, 0, 1, 0], [], []>} : vector<8x4xf32>, vector<8x4xf32>, vector<8x8xf32> -> vector<8x8xf32>
    %cst_14 = arith.constant dense<0xFF800000> : vector<8xf32>
    %30 = vector.multi_reduction <maximumf>, %29, %cst_14 [1] : vector<8x8xf32> to vector<8xf32>
    %31 = vector.shape_cast %30 : vector<8xf32> to vector<8x1xf32>
    %32 = vector.broadcast %31 : vector<8x1xf32> to vector<8x8xf32>
    %33 = arith.subf %29, %32 : vector<8x8xf32>
    %34 = math.exp %33 : vector<8x8xf32>
    %cst_15 = arith.constant dense<0.000000e+00> : vector<8xf32>
    %35 = vector.multi_reduction <add>, %34, %cst_15 [1] : vector<8x8xf32> to vector<8xf32>
    %36 = vector.shape_cast %35 : vector<8xf32> to vector<8x1xf32>
    %37 = tpu.reciprocal %36 {approx = true} : vector<8x1xf32> -> vector<8x1xf32>
    %cst_16 = arith.constant dense<0.000000e+00> : vector<8x4xf32>
    %38 = tpu.matmul %34, %28, %cst_16 {dimension_numbers = #tpu.dot_dimension_numbers<[1], [0], [0], [1], [0, 0, 1, 1], [], []>} : vector<8x8xf32>, vector<8x4xf32>, vector<8x4xf32> -> vector<8x4xf32>
    %39 = vector.broadcast %37 : vector<8x1xf32> to vector<8x4xf32>
    %40 = arith.mulf %38, %39 : vector<8x4xf32>
    %c0_17 = arith.constant 0 : index
    %c0_18 = arith.constant 0 : index
    %41 = vector.load %arg5[%c0_17, %c0_18] : memref<32x32xf32, #tpu.memory_space<vmem>>, vector<4x32xf32>
    %cst_19 = arith.constant dense<0.000000e+00> : vector<8x32xf32>
    %42 = tpu.matmul %40, %41, %cst_19 {dimension_numbers = #tpu.dot_dimension_numbers<[1], [0], [0], [1], [0, 0, 1, 1], [], []>} : vector<8x4xf32>, vector<4x32xf32>, vector<8x32xf32> -> vector<8x32xf32>
    %43 = vector.extract_strided_slice %25 {offsets = [0, 4], sizes = [8, 4], strides = [1, 1]} : vector<8x96xf32> to vector<8x4xf32>
    %44 = vector.extract_strided_slice %25 {offsets = [0, 36], sizes = [8, 4], strides = [1, 1]} : vector<8x96xf32> to vector<8x4xf32>
    %45 = vector.extract_strided_slice %25 {offsets = [0, 68], sizes = [8, 4], strides = [1, 1]} : vector<8x96xf32> to vector<8x4xf32>
    %cst_20 = arith.constant dense<0.000000e+00> : vector<8x8xf32>
    %46 = tpu.matmul %43, %44, %cst_20 {dimension_numbers = #tpu.dot_dimension_numbers<[1], [1], [0], [0], [0, 0, 1, 0], [], []>} : vector<8x4xf32>, vector<8x4xf32>, vector<8x8xf32> -> vector<8x8xf32>
    %cst_21 = arith.constant dense<0xFF800000> : vector<8xf32>
    %47 = vector.multi_reduction <maximumf>, %46, %cst_21 [1] : vector<8x8xf32> to vector<8xf32>
    %48 = vector.shape_cast %47 : vector<8xf32> to vector<8x1xf32>
    %49 = vector.broadcast %48 : vector<8x1xf32> to vector<8x8xf32>
    %50 = arith.subf %46, %49 : vector<8x8xf32>
    %51 = math.exp %50 : vector<8x8xf32>
    %cst_22 = arith.constant dense<0.000000e+00> : vector<8xf32>
    %52 = vector.multi_reduction <add>, %51, %cst_22 [1] : vector<8x8xf32> to vector<8xf32>
    %53 = vector.shape_cast %52 : vector<8xf32> to vector<8x1xf32>
    %54 = tpu.reciprocal %53 {approx = true} : vector<8x1xf32> -> vector<8x1xf32>
    %cst_23 = arith.constant dense<0.000000e+00> : vector<8x4xf32>
    %55 = tpu.matmul %51, %45, %cst_23 {dimension_numbers = #tpu.dot_dimension_numbers<[1], [0], [0], [1], [0, 0, 1, 1], [], []>} : vector<8x8xf32>, vector<8x4xf32>, vector<8x4xf32> -> vector<8x4xf32>
    %56 = vector.broadcast %54 : vector<8x1xf32> to vector<8x4xf32>
    %57 = arith.mulf %55, %56 : vector<8x4xf32>
    %c4 = arith.constant 4 : index
    %c0_24 = arith.constant 0 : index
    %58 = vector.load %arg5[%c4, %c0_24] : memref<32x32xf32, #tpu.memory_space<vmem>>, vector<4x32xf32>
    %cst_25 = arith.constant dense<0.000000e+00> : vector<8x32xf32>
    %59 = tpu.matmul %57, %58, %cst_25 {dimension_numbers = #tpu.dot_dimension_numbers<[1], [0], [0], [1], [0, 0, 1, 1], [], []>} : vector<8x4xf32>, vector<4x32xf32>, vector<8x32xf32> -> vector<8x32xf32>
    %60 = arith.addf %42, %59 : vector<8x32xf32>
    %61 = vector.extract_strided_slice %25 {offsets = [0, 8], sizes = [8, 4], strides = [1, 1]} : vector<8x96xf32> to vector<8x4xf32>
    %62 = vector.extract_strided_slice %25 {offsets = [0, 40], sizes = [8, 4], strides = [1, 1]} : vector<8x96xf32> to vector<8x4xf32>
    %63 = vector.extract_strided_slice %25 {offsets = [0, 72], sizes = [8, 4], strides = [1, 1]} : vector<8x96xf32> to vector<8x4xf32>
    %cst_26 = arith.constant dense<0.000000e+00> : vector<8x8xf32>
    %64 = tpu.matmul %61, %62, %cst_26 {dimension_numbers = #tpu.dot_dimension_numbers<[1], [1], [0], [0], [0, 0, 1, 0], [], []>} : vector<8x4xf32>, vector<8x4xf32>, vector<8x8xf32> -> vector<8x8xf32>
    %cst_27 = arith.constant dense<0xFF800000> : vector<8xf32>
    %65 = vector.multi_reduction <maximumf>, %64, %cst_27 [1] : vector<8x8xf32> to vector<8xf32>
    %66 = vector.shape_cast %65 : vector<8xf32> to vector<8x1xf32>
    %67 = vector.broadcast %66 : vector<8x1xf32> to vector<8x8xf32>
    %68 = arith.subf %64, %67 : vector<8x8xf32>
    %69 = math.exp %68 : vector<8x8xf32>
    %cst_28 = arith.constant dense<0.000000e+00> : vector<8xf32>
    %70 = vector.multi_reduction <add>, %69, %cst_28 [1] : vector<8x8xf32> to vector<8xf32>
    %71 = vector.shape_cast %70 : vector<8xf32> to vector<8x1xf32>
    %72 = tpu.reciprocal %71 {approx = true} : vector<8x1xf32> -> vector<8x1xf32>
    %cst_29 = arith.constant dense<0.000000e+00> : vector<8x4xf32>
    %73 = tpu.matmul %69, %63, %cst_29 {dimension_numbers = #tpu.dot_dimension_numbers<[1], [0], [0], [1], [0, 0, 1, 1], [], []>} : vector<8x8xf32>, vector<8x4xf32>, vector<8x4xf32> -> vector<8x4xf32>
    %74 = vector.broadcast %72 : vector<8x1xf32> to vector<8x4xf32>
    %75 = arith.mulf %73, %74 : vector<8x4xf32>
    %c8 = arith.constant 8 : index
    %c0_30 = arith.constant 0 : index
    %76 = vector.load %arg5[%c8, %c0_30] : memref<32x32xf32, #tpu.memory_space<vmem>>, vector<4x32xf32>
    %cst_31 = arith.constant dense<0.000000e+00> : vector<8x32xf32>
    %77 = tpu.matmul %75, %76, %cst_31 {dimension_numbers = #tpu.dot_dimension_numbers<[1], [0], [0], [1], [0, 0, 1, 1], [], []>} : vector<8x4xf32>, vector<4x32xf32>, vector<8x32xf32> -> vector<8x32xf32>
    %78 = arith.addf %60, %77 : vector<8x32xf32>
    %79 = vector.extract_strided_slice %25 {offsets = [0, 12], sizes = [8, 4], strides = [1, 1]} : vector<8x96xf32> to vector<8x4xf32>
    %80 = vector.extract_strided_slice %25 {offsets = [0, 44], sizes = [8, 4], strides = [1, 1]} : vector<8x96xf32> to vector<8x4xf32>
    %81 = vector.extract_strided_slice %25 {offsets = [0, 76], sizes = [8, 4], strides = [1, 1]} : vector<8x96xf32> to vector<8x4xf32>
    %cst_32 = arith.constant dense<0.000000e+00> : vector<8x8xf32>
    %82 = tpu.matmul %79, %80, %cst_32 {dimension_numbers = #tpu.dot_dimension_numbers<[1], [1], [0], [0], [0, 0, 1, 0], [], []>} : vector<8x4xf32>, vector<8x4xf32>, vector<8x8xf32> -> vector<8x8xf32>
    %cst_33 = arith.constant dense<0xFF800000> : vector<8xf32>
    %83 = vector.multi_reduction <maximumf>, %82, %cst_33 [1] : vector<8x8xf32> to vector<8xf32>
    %84 = vector.shape_cast %83 : vector<8xf32> to vector<8x1xf32>
    %85 = vector.broadcast %84 : vector<8x1xf32> to vector<8x8xf32>
    %86 = arith.subf %82, %85 : vector<8x8xf32>
    %87 = math.exp %86 : vector<8x8xf32>
    %cst_34 = arith.constant dense<0.000000e+00> : vector<8xf32>
    %88 = vector.multi_reduction <add>, %87, %cst_34 [1] : vector<8x8xf32> to vector<8xf32>
    %89 = vector.shape_cast %88 : vector<8xf32> to vector<8x1xf32>
    %90 = tpu.reciprocal %89 {approx = true} : vector<8x1xf32> -> vector<8x1xf32>
    %cst_35 = arith.constant dense<0.000000e+00> : vector<8x4xf32>
    %91 = tpu.matmul %87, %81, %cst_35 {dimension_numbers = #tpu.dot_dimension_numbers<[1], [0], [0], [1], [0, 0, 1, 1], [], []>} : vector<8x8xf32>, vector<8x4xf32>, vector<8x4xf32> -> vector<8x4xf32>
    %92 = vector.broadcast %90 : vector<8x1xf32> to vector<8x4xf32>
    %93 = arith.mulf %91, %92 : vector<8x4xf32>
    %c12 = arith.constant 12 : index
    %c0_36 = arith.constant 0 : index
    %94 = vector.load %arg5[%c12, %c0_36] : memref<32x32xf32, #tpu.memory_space<vmem>>, vector<4x32xf32>
    %cst_37 = arith.constant dense<0.000000e+00> : vector<8x32xf32>
    %95 = tpu.matmul %93, %94, %cst_37 {dimension_numbers = #tpu.dot_dimension_numbers<[1], [0], [0], [1], [0, 0, 1, 1], [], []>} : vector<8x4xf32>, vector<4x32xf32>, vector<8x32xf32> -> vector<8x32xf32>
    %96 = arith.addf %78, %95 : vector<8x32xf32>
    %97 = vector.extract_strided_slice %25 {offsets = [0, 16], sizes = [8, 4], strides = [1, 1]} : vector<8x96xf32> to vector<8x4xf32>
    %98 = vector.extract_strided_slice %25 {offsets = [0, 48], sizes = [8, 4], strides = [1, 1]} : vector<8x96xf32> to vector<8x4xf32>
    %99 = vector.extract_strided_slice %25 {offsets = [0, 80], sizes = [8, 4], strides = [1, 1]} : vector<8x96xf32> to vector<8x4xf32>
    %cst_38 = arith.constant dense<0.000000e+00> : vector<8x8xf32>
    %100 = tpu.matmul %97, %98, %cst_38 {dimension_numbers = #tpu.dot_dimension_numbers<[1], [1], [0], [0], [0, 0, 1, 0], [], []>} : vector<8x4xf32>, vector<8x4xf32>, vector<8x8xf32> -> vector<8x8xf32>
    %cst_39 = arith.constant dense<0xFF800000> : vector<8xf32>
    %101 = vector.multi_reduction <maximumf>, %100, %cst_39 [1] : vector<8x8xf32> to vector<8xf32>
    %102 = vector.shape_cast %101 : vector<8xf32> to vector<8x1xf32>
    %103 = vector.broadcast %102 : vector<8x1xf32> to vector<8x8xf32>
    %104 = arith.subf %100, %103 : vector<8x8xf32>
    %105 = math.exp %104 : vector<8x8xf32>
    %cst_40 = arith.constant dense<0.000000e+00> : vector<8xf32>
    %106 = vector.multi_reduction <add>, %105, %cst_40 [1] : vector<8x8xf32> to vector<8xf32>
    %107 = vector.shape_cast %106 : vector<8xf32> to vector<8x1xf32>
    %108 = tpu.reciprocal %107 {approx = true} : vector<8x1xf32> -> vector<8x1xf32>
    %cst_41 = arith.constant dense<0.000000e+00> : vector<8x4xf32>
    %109 = tpu.matmul %105, %99, %cst_41 {dimension_numbers = #tpu.dot_dimension_numbers<[1], [0], [0], [1], [0, 0, 1, 1], [], []>} : vector<8x8xf32>, vector<8x4xf32>, vector<8x4xf32> -> vector<8x4xf32>
    %110 = vector.broadcast %108 : vector<8x1xf32> to vector<8x4xf32>
    %111 = arith.mulf %109, %110 : vector<8x4xf32>
    %c16 = arith.constant 16 : index
    %c0_42 = arith.constant 0 : index
    %112 = vector.load %arg5[%c16, %c0_42] : memref<32x32xf32, #tpu.memory_space<vmem>>, vector<4x32xf32>
    %cst_43 = arith.constant dense<0.000000e+00> : vector<8x32xf32>
    %113 = tpu.matmul %111, %112, %cst_43 {dimension_numbers = #tpu.dot_dimension_numbers<[1], [0], [0], [1], [0, 0, 1, 1], [], []>} : vector<8x4xf32>, vector<4x32xf32>, vector<8x32xf32> -> vector<8x32xf32>
    %114 = arith.addf %96, %113 : vector<8x32xf32>
    %115 = vector.extract_strided_slice %25 {offsets = [0, 20], sizes = [8, 4], strides = [1, 1]} : vector<8x96xf32> to vector<8x4xf32>
    %116 = vector.extract_strided_slice %25 {offsets = [0, 52], sizes = [8, 4], strides = [1, 1]} : vector<8x96xf32> to vector<8x4xf32>
    %117 = vector.extract_strided_slice %25 {offsets = [0, 84], sizes = [8, 4], strides = [1, 1]} : vector<8x96xf32> to vector<8x4xf32>
    %cst_44 = arith.constant dense<0.000000e+00> : vector<8x8xf32>
    %118 = tpu.matmul %115, %116, %cst_44 {dimension_numbers = #tpu.dot_dimension_numbers<[1], [1], [0], [0], [0, 0, 1, 0], [], []>} : vector<8x4xf32>, vector<8x4xf32>, vector<8x8xf32> -> vector<8x8xf32>
    %cst_45 = arith.constant dense<0xFF800000> : vector<8xf32>
    %119 = vector.multi_reduction <maximumf>, %118, %cst_45 [1] : vector<8x8xf32> to vector<8xf32>
    %120 = vector.shape_cast %119 : vector<8xf32> to vector<8x1xf32>
    %121 = vector.broadcast %120 : vector<8x1xf32> to vector<8x8xf32>
    %122 = arith.subf %118, %121 : vector<8x8xf32>
    %123 = math.exp %122 : vector<8x8xf32>
    %cst_46 = arith.constant dense<0.000000e+00> : vector<8xf32>
    %124 = vector.multi_reduction <add>, %123, %cst_46 [1] : vector<8x8xf32> to vector<8xf32>
    %125 = vector.shape_cast %124 : vector<8xf32> to vector<8x1xf32>
    %126 = tpu.reciprocal %125 {approx = true} : vector<8x1xf32> -> vector<8x1xf32>
    %cst_47 = arith.constant dense<0.000000e+00> : vector<8x4xf32>
    %127 = tpu.matmul %123, %117, %cst_47 {dimension_numbers = #tpu.dot_dimension_numbers<[1], [0], [0], [1], [0, 0, 1, 1], [], []>} : vector<8x8xf32>, vector<8x4xf32>, vector<8x4xf32> -> vector<8x4xf32>
    %128 = vector.broadcast %126 : vector<8x1xf32> to vector<8x4xf32>
    %129 = arith.mulf %127, %128 : vector<8x4xf32>
    %c20 = arith.constant 20 : index
    %c0_48 = arith.constant 0 : index
    %130 = vector.load %arg5[%c20, %c0_48] : memref<32x32xf32, #tpu.memory_space<vmem>>, vector<4x32xf32>
    %cst_49 = arith.constant dense<0.000000e+00> : vector<8x32xf32>
    %131 = tpu.matmul %129, %130, %cst_49 {dimension_numbers = #tpu.dot_dimension_numbers<[1], [0], [0], [1], [0, 0, 1, 1], [], []>} : vector<8x4xf32>, vector<4x32xf32>, vector<8x32xf32> -> vector<8x32xf32>
    %132 = arith.addf %114, %131 : vector<8x32xf32>
    %133 = vector.extract_strided_slice %25 {offsets = [0, 24], sizes = [8, 4], strides = [1, 1]} : vector<8x96xf32> to vector<8x4xf32>
    %134 = vector.extract_strided_slice %25 {offsets = [0, 56], sizes = [8, 4], strides = [1, 1]} : vector<8x96xf32> to vector<8x4xf32>
    %135 = vector.extract_strided_slice %25 {offsets = [0, 88], sizes = [8, 4], strides = [1, 1]} : vector<8x96xf32> to vector<8x4xf32>
    %cst_50 = arith.constant dense<0.000000e+00> : vector<8x8xf32>
    %136 = tpu.matmul %133, %134, %cst_50 {dimension_numbers = #tpu.dot_dimension_numbers<[1], [1], [0], [0], [0, 0, 1, 0], [], []>} : vector<8x4xf32>, vector<8x4xf32>, vector<8x8xf32> -> vector<8x8xf32>
    %cst_51 = arith.constant dense<0xFF800000> : vector<8xf32>
    %137 = vector.multi_reduction <maximumf>, %136, %cst_51 [1] : vector<8x8xf32> to vector<8xf32>
    %138 = vector.shape_cast %137 : vector<8xf32> to vector<8x1xf32>
    %139 = vector.broadcast %138 : vector<8x1xf32> to vector<8x8xf32>
    %140 = arith.subf %136, %139 : vector<8x8xf32>
    %141 = math.exp %140 : vector<8x8xf32>
    %cst_52 = arith.constant dense<0.000000e+00> : vector<8xf32>
    %142 = vector.multi_reduction <add>, %141, %cst_52 [1] : vector<8x8xf32> to vector<8xf32>
    %143 = vector.shape_cast %142 : vector<8xf32> to vector<8x1xf32>
    %144 = tpu.reciprocal %143 {approx = true} : vector<8x1xf32> -> vector<8x1xf32>
    %cst_53 = arith.constant dense<0.000000e+00> : vector<8x4xf32>
    %145 = tpu.matmul %141, %135, %cst_53 {dimension_numbers = #tpu.dot_dimension_numbers<[1], [0], [0], [1], [0, 0, 1, 1], [], []>} : vector<8x8xf32>, vector<8x4xf32>, vector<8x4xf32> -> vector<8x4xf32>
    %146 = vector.broadcast %144 : vector<8x1xf32> to vector<8x4xf32>
    %147 = arith.mulf %145, %146 : vector<8x4xf32>
    %c24 = arith.constant 24 : index
    %c0_54 = arith.constant 0 : index
    %148 = vector.load %arg5[%c24, %c0_54] : memref<32x32xf32, #tpu.memory_space<vmem>>, vector<4x32xf32>
    %cst_55 = arith.constant dense<0.000000e+00> : vector<8x32xf32>
    %149 = tpu.matmul %147, %148, %cst_55 {dimension_numbers = #tpu.dot_dimension_numbers<[1], [0], [0], [1], [0, 0, 1, 1], [], []>} : vector<8x4xf32>, vector<4x32xf32>, vector<8x32xf32> -> vector<8x32xf32>
    %150 = arith.addf %132, %149 : vector<8x32xf32>
    %151 = vector.extract_strided_slice %25 {offsets = [0, 28], sizes = [8, 4], strides = [1, 1]} : vector<8x96xf32> to vector<8x4xf32>
    %152 = vector.extract_strided_slice %25 {offsets = [0, 60], sizes = [8, 4], strides = [1, 1]} : vector<8x96xf32> to vector<8x4xf32>
    %153 = vector.extract_strided_slice %25 {offsets = [0, 92], sizes = [8, 4], strides = [1, 1]} : vector<8x96xf32> to vector<8x4xf32>
    %cst_56 = arith.constant dense<0.000000e+00> : vector<8x8xf32>
    %154 = tpu.matmul %151, %152, %cst_56 {dimension_numbers = #tpu.dot_dimension_numbers<[1], [1], [0], [0], [0, 0, 1, 0], [], []>} : vector<8x4xf32>, vector<8x4xf32>, vector<8x8xf32> -> vector<8x8xf32>
    %cst_57 = arith.constant dense<0xFF800000> : vector<8xf32>
    %155 = vector.multi_reduction <maximumf>, %154, %cst_57 [1] : vector<8x8xf32> to vector<8xf32>
    %156 = vector.shape_cast %155 : vector<8xf32> to vector<8x1xf32>
    %157 = vector.broadcast %156 : vector<8x1xf32> to vector<8x8xf32>
    %158 = arith.subf %154, %157 : vector<8x8xf32>
    %159 = math.exp %158 : vector<8x8xf32>
    %cst_58 = arith.constant dense<0.000000e+00> : vector<8xf32>
    %160 = vector.multi_reduction <add>, %159, %cst_58 [1] : vector<8x8xf32> to vector<8xf32>
    %161 = vector.shape_cast %160 : vector<8xf32> to vector<8x1xf32>
    %162 = tpu.reciprocal %161 {approx = true} : vector<8x1xf32> -> vector<8x1xf32>
    %cst_59 = arith.constant dense<0.000000e+00> : vector<8x4xf32>
    %163 = tpu.matmul %159, %153, %cst_59 {dimension_numbers = #tpu.dot_dimension_numbers<[1], [0], [0], [1], [0, 0, 1, 1], [], []>} : vector<8x8xf32>, vector<8x4xf32>, vector<8x4xf32> -> vector<8x4xf32>
    %164 = vector.broadcast %162 : vector<8x1xf32> to vector<8x4xf32>
    %165 = arith.mulf %163, %164 : vector<8x4xf32>
    %c28 = arith.constant 28 : index
    %c0_60 = arith.constant 0 : index
    %166 = vector.load %arg5[%c28, %c0_60] : memref<32x32xf32, #tpu.memory_space<vmem>>, vector<4x32xf32>
    %cst_61 = arith.constant dense<0.000000e+00> : vector<8x32xf32>
    %167 = tpu.matmul %165, %166, %cst_61 {dimension_numbers = #tpu.dot_dimension_numbers<[1], [0], [0], [1], [0, 0, 1, 1], [], []>} : vector<8x4xf32>, vector<4x32xf32>, vector<8x32xf32> -> vector<8x32xf32>
    %168 = arith.addf %150, %167 : vector<8x32xf32>
    %169 = arith.addf %1, %168 : vector<8x32xf32>
    %c0_62 = arith.constant 0 : index
    %c0_63 = arith.constant 0 : index
    %170 = vector.load %arg6[%c0_62, %c0_63] : memref<1x32xf32, #tpu.memory_space<vmem>>, vector<1x32xf32>
    %171 = vector.broadcast %170 : vector<1x32xf32> to vector<8x32xf32>
    %172 = arith.addf %169, %171 : vector<8x32xf32>
    %c0_64 = arith.constant 0 : index
    %c0_65 = arith.constant 0 : index
    %173 = vector.load %arg7[%c0_64, %c0_65] : memref<1x32xf32, #tpu.memory_space<vmem>>, vector<1x32xf32>
    %c0_66 = arith.constant 0 : index
    %c0_67 = arith.constant 0 : index
    %174 = vector.load %arg8[%c0_66, %c0_67] : memref<1x32xf32, #tpu.memory_space<vmem>>, vector<1x32xf32>
    %cst_68 = arith.constant dense<0.000000e+00> : vector<8xf32>
    %175 = vector.multi_reduction <add>, %172, %cst_68 [1] : vector<8x32xf32> to vector<8xf32>
    %176 = vector.shape_cast %175 : vector<8xf32> to vector<8x1xf32>
    %cst_69 = arith.constant 3.200000e+01 : f32
    %177 = vector.broadcast %cst_69 : f32 to vector<8x1xf32>
    %178 = arith.divf %176, %177 : vector<8x1xf32>
    %179 = vector.broadcast %178 : vector<8x1xf32> to vector<8x32xf32>
    %180 = arith.subf %172, %179 : vector<8x32xf32>
    %181 = arith.mulf %180, %180 : vector<8x32xf32>
    %cst_70 = arith.constant dense<0.000000e+00> : vector<8xf32>
    %182 = vector.multi_reduction <add>, %181, %cst_70 [1] : vector<8x32xf32> to vector<8xf32>
    %183 = vector.shape_cast %182 : vector<8xf32> to vector<8x1xf32>
    %cst_71 = arith.constant 3.200000e+01 : f32
    %184 = vector.broadcast %cst_71 : f32 to vector<8x1xf32>
    %185 = arith.divf %183, %184 : vector<8x1xf32>
    %cst_72 = arith.constant 9.99999974E-6 : f32
    %186 = vector.broadcast %cst_72 : f32 to vector<8x1xf32>
    %187 = arith.addf %185, %186 : vector<8x1xf32>
    %188 = math.rsqrt %187 : vector<8x1xf32>
    %189 = vector.broadcast %188 : vector<8x1xf32> to vector<8x32xf32>
    %190 = arith.mulf %180, %189 : vector<8x32xf32>
    %191 = vector.broadcast %173 : vector<1x32xf32> to vector<8x32xf32>
    %192 = arith.mulf %190, %191 : vector<8x32xf32>
    %193 = vector.broadcast %174 : vector<1x32xf32> to vector<8x32xf32>
    %194 = arith.addf %192, %193 : vector<8x32xf32>
    %c0_73 = arith.constant 0 : index
    %c0_74 = arith.constant 0 : index
    %195 = vector.load %arg9[%c0_73, %c0_74] : memref<32x128xf32, #tpu.memory_space<vmem>>, vector<32x128xf32>
    %cst_75 = arith.constant dense<0.000000e+00> : vector<8x128xf32>
    %196 = tpu.matmul %194, %195, %cst_75 {dimension_numbers = #tpu.dot_dimension_numbers<[1], [0], [0], [1], [0, 0, 1, 1], [], []>} : vector<8x32xf32>, vector<32x128xf32>, vector<8x128xf32> -> vector<8x128xf32>
    %c0_76 = arith.constant 0 : index
    %c0_77 = arith.constant 0 : index
    %197 = vector.load %arg10[%c0_76, %c0_77] : memref<1x128xf32, #tpu.memory_space<vmem>>, vector<1x128xf32>
    %198 = vector.broadcast %197 : vector<1x128xf32> to vector<8x128xf32>
    %199 = arith.addf %196, %198 : vector<8x128xf32>
    %cst_78 = arith.constant 5.000000e-01 : f32
    %200 = vector.broadcast %cst_78 : f32 to vector<8x128xf32>
    %201 = arith.mulf %200, %199 : vector<8x128xf32>
    %cst_79 = arith.constant 0.707106769 : f32
    %202 = vector.broadcast %cst_79 : f32 to vector<8x128xf32>
    %203 = arith.mulf %199, %202 : vector<8x128xf32>
    %cst_80 = arith.constant 0.000000e+00 : f32
    %204 = vector.broadcast %cst_80 : f32 to vector<8x128xf32>
    %205 = arith.cmpf oge, %203, %204 : vector<8x128xf32>
    %cst_81 = arith.constant 1.000000e+00 : f32
    %cst_82 = arith.constant -1.000000e+00 : f32
    %206 = vector.broadcast %cst_81 : f32 to vector<8x128xf32>
    %207 = vector.broadcast %cst_82 : f32 to vector<8x128xf32>
    %208 = arith.select %205, %206, %207 : vector<8x128xi1>, vector<8x128xf32>
    %209 = math.absf %203 : vector<8x128xf32>
    %cst_83 = arith.constant 0.327591091 : f32
    %210 = vector.broadcast %cst_83 : f32 to vector<8x128xf32>
    %211 = arith.mulf %210, %209 : vector<8x128xf32>
    %cst_84 = arith.constant 1.000000e+00 : f32
    %212 = vector.broadcast %cst_84 : f32 to vector<8x128xf32>
    %213 = arith.addf %212, %211 : vector<8x128xf32>
    %214 = tpu.reciprocal %213 {approx = true} : vector<8x128xf32> -> vector<8x128xf32>
    %cst_85 = arith.constant 1.06140542 : f32
    %215 = vector.broadcast %cst_85 : f32 to vector<8x128xf32>
    %216 = arith.mulf %215, %214 : vector<8x128xf32>
    %cst_86 = arith.constant -1.45315206 : f32
    %217 = vector.broadcast %cst_86 : f32 to vector<8x128xf32>
    %218 = arith.addf %216, %217 : vector<8x128xf32>
    %219 = arith.mulf %218, %214 : vector<8x128xf32>
    %cst_87 = arith.constant 1.42141378 : f32
    %220 = vector.broadcast %cst_87 : f32 to vector<8x128xf32>
    %221 = arith.addf %219, %220 : vector<8x128xf32>
    %222 = arith.mulf %221, %214 : vector<8x128xf32>
    %cst_88 = arith.constant -0.284496725 : f32
    %223 = vector.broadcast %cst_88 : f32 to vector<8x128xf32>
    %224 = arith.addf %222, %223 : vector<8x128xf32>
    %225 = arith.mulf %224, %214 : vector<8x128xf32>
    %cst_89 = arith.constant 0.254829586 : f32
    %226 = vector.broadcast %cst_89 : f32 to vector<8x128xf32>
    %227 = arith.addf %225, %226 : vector<8x128xf32>
    %228 = arith.mulf %227, %214 : vector<8x128xf32>
    %cst_90 = arith.constant 0.000000e+00 : f32
    %229 = vector.broadcast %cst_90 : f32 to vector<8x128xf32>
    %230 = arith.subf %229, %209 : vector<8x128xf32>
    %231 = arith.mulf %230, %209 : vector<8x128xf32>
    %232 = math.exp %231 : vector<8x128xf32>
    %233 = arith.mulf %228, %232 : vector<8x128xf32>
    %cst_91 = arith.constant 1.000000e+00 : f32
    %234 = vector.broadcast %cst_91 : f32 to vector<8x128xf32>
    %235 = arith.subf %234, %233 : vector<8x128xf32>
    %236 = arith.mulf %208, %235 : vector<8x128xf32>
    %cst_92 = arith.constant 1.000000e+00 : f32
    %237 = vector.broadcast %cst_92 : f32 to vector<8x128xf32>
    %238 = arith.addf %237, %236 : vector<8x128xf32>
    %239 = arith.mulf %201, %238 : vector<8x128xf32>
    %c0_93 = arith.constant 0 : index
    %c0_94 = arith.constant 0 : index
    %240 = vector.load %arg11[%c0_93, %c0_94] : memref<128x32xf32, #tpu.memory_space<vmem>>, vector<128x32xf32>
    %cst_95 = arith.constant dense<0.000000e+00> : vector<8x32xf32>
    %241 = tpu.matmul %239, %240, %cst_95 {dimension_numbers = #tpu.dot_dimension_numbers<[1], [0], [0], [1], [0, 0, 1, 1], [], []>} : vector<8x128xf32>, vector<128x32xf32>, vector<8x32xf32> -> vector<8x32xf32>
    %c0_96 = arith.constant 0 : index
    %c0_97 = arith.constant 0 : index
    %242 = vector.load %arg12[%c0_96, %c0_97] : memref<1x32xf32, #tpu.memory_space<vmem>>, vector<1x32xf32>
    %243 = vector.broadcast %242 : vector<1x32xf32> to vector<8x32xf32>
    %244 = arith.addf %241, %243 : vector<8x32xf32>
    %245 = arith.addf %172, %244 : vector<8x32xf32>
    %c0_98 = arith.constant 0 : index
    %c0_99 = arith.constant 0 : index
    %c0_100 = arith.constant 0 : index
    %246 = vector.load %arg13[%c0_98, %c0_99, %c0_100] : memref<1x8x32xf32, #tpu.memory_space<vmem>>, vector<1x8x32xf32>
    %247 = vector.shape_cast %246 : vector<1x8x32xf32> to vector<8x32xf32>
    %248 = vector.shape_cast %245 : vector<8x32xf32> to vector<1x8x32xf32>
    tpu.vector_store %arg13[%c0_98, %c0_99, %c0_100], %248 {strides = array<i32>} : memref<1x8x32xf32, #tpu.memory_space<vmem>>, vector<1x8x32xf32>,
    return
  }
  func.func @transform_0(%arg0: i32) -> (i32, i32, i32) {
    %c0_i32 = arith.constant 0 : i32
    %c0_i32_0 = arith.constant 0 : i32
    %c0_i32_1 = arith.constant 0 : i32
    return %arg0, %c0_i32, %c0_i32_0 : i32, i32, i32
  }
  func.func @transform_1(%arg0: i32) -> (i32, i32) {
    %c0_i32 = arith.constant 0 : i32
    %c0_i32_0 = arith.constant 0 : i32
    %c0_i32_1 = arith.constant 0 : i32
    return %c0_i32, %c0_i32_0 : i32, i32
  }
  func.func @transform_2(%arg0: i32) -> (i32, i32) {
    %c0_i32 = arith.constant 0 : i32
    %c0_i32_0 = arith.constant 0 : i32
    %c0_i32_1 = arith.constant 0 : i32
    return %c0_i32, %c0_i32_0 : i32, i32
  }
  func.func @transform_3(%arg0: i32) -> (i32, i32) {
    %c0_i32 = arith.constant 0 : i32
    %c0_i32_0 = arith.constant 0 : i32
    %c0_i32_1 = arith.constant 0 : i32
    return %c0_i32, %c0_i32_0 : i32, i32
  }
  func.func @transform_4(%arg0: i32) -> (i32, i32) {
    %c0_i32 = arith.constant 0 : i32
    %c0_i32_0 = arith.constant 0 : i32
    %c0_i32_1 = arith.constant 0 : i32
    return %c0_i32, %c0_i32_0 : i32, i32
  }
  func.func @transform_5(%arg0: i32) -> (i32, i32) {
    %c0_i32 = arith.constant 0 : i32
    %c0_i32_0 = arith.constant 0 : i32
    %c0_i32_1 = arith.constant 0 : i32
    return %c0_i32, %c0_i32_0 : i32, i32
  }
  func.func @transform_6(%arg0: i32) -> (i32, i32) {
    %c0_i32 = arith.constant 0 : i32
    %c0_i32_0 = arith.constant 0 : i32
    %c0_i32_1 = arith.constant 0 : i32
    return %c0_i32, %c0_i32_0 : i32, i32
  }
  func.func @transform_7(%arg0: i32) -> (i32, i32) {
    %c0_i32 = arith.constant 0 : i32
    %c0_i32_0 = arith.constant 0 : i32
    %c0_i32_1 = arith.constant 0 : i32
    return %c0_i32, %c0_i32_0 : i32, i32
  }
  func.func @transform_8(%arg0: i32) -> (i32, i32) {
    %c0_i32 = arith.constant 0 : i32
    %c0_i32_0 = arith.constant 0 : i32
    %c0_i32_1 = arith.constant 0 : i32
    return %c0_i32, %c0_i32_0 : i32, i32
  }
  func.func @transform_9(%arg0: i32) -> (i32, i32) {
    %c0_i32 = arith.constant 0 : i32
    %c0_i32_0 = arith.constant 0 : i32
    %c0_i32_1 = arith.constant 0 : i32
    return %c0_i32, %c0_i32_0 : i32, i32
  }
  func.func @transform_10(%arg0: i32) -> (i32, i32) {
    %c0_i32 = arith.constant 0 : i32
    %c0_i32_0 = arith.constant 0 : i32
    %c0_i32_1 = arith.constant 0 : i32
    return %c0_i32, %c0_i32_0 : i32, i32
  }
  func.func @transform_11(%arg0: i32) -> (i32, i32) {
    %c0_i32 = arith.constant 0 : i32
    %c0_i32_0 = arith.constant 0 : i32
    %c0_i32_1 = arith.constant 0 : i32
    return %c0_i32, %c0_i32_0 : i32, i32
  }
  func.func @transform_12(%arg0: i32) -> (i32, i32, i32) {
    %c0_i32 = arith.constant 0 : i32
    %c0_i32_0 = arith.constant 0 : i32
    %c0_i32_1 = arith.constant 0 : i32
    return %arg0, %c0_i32, %c0_i32_0 : i32, i32, i32
  }
}

</mosaic_0001>

<bundles_post_ra>
// kernel: tpu_custom_call.1
= control target key start
LH: loop header
LB: loop body
LE: loop exit
PB: predicated region body
PF: predicated region fallthrough
CT: control target
= control target key end

     0   :  { %s3797_s0 = inlined_call_operand.vmem [shape: f32[2,8,32], index: 0, kind: input, shape index: {}]   ;;  %s3798_s1 = inlined_call_operand.vmem [shape: f32[1,32], index: 1, kind: input, shape index: {}]   ;;  %s3799_s2 = inlined_call_operand.vmem [shape: f32[1,32], index: 2, kind: input, shape index: {}]   ;;  %s3800_s3 = inlined_call_operand.vmem [shape: f32[32,96], index: 3, kind: input, shape index: {}]   ;;  %s3801_s4 = inlined_call_operand.vmem [shape: f32[32,32], index: 4, kind: input, shape index: {}]   ;;  %s3802_s5 = inlined_call_operand.vmem [shape: f32[1,32], index: 5, kind: input, shape index: {}]   ;;  %s3803_s6 = inlined_call_operand.vmem [shape: f32[1,32], index: 6, kind: input, shape index: {}]   ;;  %s3804_s7 = inlined_call_operand.vmem [shape: f32[1,32], index: 7, kind: input, shape index: {}]   ;;  %s3805_s8 = inlined_call_operand.vmem [shape: f32[32,128], index: 8, kind: input, shape index: {}]   ;;  %s3806_s9 = inlined_call_operand.vmem [shape: f32[1,128], index: 9, kind: input, shape index: {}]   ;;  %s3807_s10 = inlined_call_operand.vmem [shape: f32[128,32], index: 10, kind: input, shape index: {}]   ;;  %s3808_s11 = inlined_call_operand.vmem [shape: f32[1,32], index: 11, kind: input, shape index: {}]   ;;  %s3809_s12 = inlined_call_operand.hbm [shape: f32[2,8,32], index: 12, kind: output, shape index: {}]  }
   0x1   :  { %3810 = sst [smem:[#allocation5_spill]] %s3797_s0 }
   0x2   :  { %3811 = sst [smem:[#allocation6_spill]] %s3798_s1 }
   0x3   :  { %17 = vsyncpa [#allocation3], 0 }
   0x4   :  { %19 = vsyncpa [#allocation3 + $0x1], 0  ;;  %s3388_s21 = smov 0   ;;  %s3390_s22 = smov 0  }
   0x5   :  { %s3392_s23 = smov 0   ;;  %s3394_s24 = smov 0  }
   0x6 LB: > { %s3409_s25 = sadd.s32 4294967295, %s3293_s24   ;;  %s2778_s26 = sadd.s32 4294967294, %s3293_s24   ;;  %s3293_s24 = sphi %s3394_s24, %s3819_s24   ;;  %s3289_s23 = sphi %s3392_s23, %s3818_s23   ;;  %s3285_s22 = sphi %s3390_s22, %s3817_s22   ;;  %s3281_s21 = sphi %s3388_s21, %s3816_s21  }
   0x7   : > { %s3413_s27 = sadd.s32 1, %s3293_s24   ;;  %s289_s28 = sadd.s32 1, %s3289_s23 }
   0x8   : > { %s286_s29 = ssub.s32 %s3293_s24, %s3413_s27  ;;  %p299_p0 = scmp.ne.s32.totalorder %s3289_s23, %s3285_s22 }
   0x9   : > { %p287_p1 = scmp.eq.s32.totalorder %s286_s29, 0  ;;  %p300_p2 = scmp.eq.s32.totalorder %s3409_s25, 1 }
   0xa   : > { %p305_p3 = scmp.ne.s32.totalorder %s3285_s22, %s3281_s21  ;;  %p306_p4 = scmp.eq.s32.totalorder %s2778_s26, 1 }
   0xb   : > { %s3424_s30 = scalar_select %p287_p1, %s3289_s23, %s289_s28  }
   0xc   : > { %p3426_p5 = por %p300_p2, %p299_p0  ;;  %p3430_p6 = por %p306_p4, %p305_p3 }
   0xd   : > { %p2781_p7 = scmp.ge.s32.totalorder %s3293_s24, 1  ;;  %p364_p8 = scmp.lt.s32.totalorder %s3293_s24, 3 }
   0xf   : > { %p365_p9 = pnand %p2781_p7, %p364_p8 }
  0x10   : > { %p405_p10 = scmp.lt.s32.totalorder (!%p365_p9), %s3409_s25, 1  ;;  %vm412_vm0 = vcmask (!%p365_p9), 261120   ;;  %s3814_s0 = sld [smem:[#allocation5_spill]] (!%p365_p9)  ;;  %v441_v7 = vld [vmem:[%s3800_s3] sm:$0xff] (!%p365_p9)  ;;  %v442_v8 = vld [vmem:[%s3800_s3 + $0x8] sm:$0xff] (!%p365_p9)  ;;  %v443_v9 = vld [vmem:[%s3800_s3 + $0x10] sm:$0xff] (!%p365_p9) }
  0x11   : > { %368 = sbr.rel (%p365_p9) target bundleno = 5110 (0x13f6), region = 68  ;;  %v3295_v10 = vmov (!%p365_p9), 0.0|0.0   ;;  %v3090_v11 = vpack.c.bf16 (!%p365_p9), %v442_v8, %v441_v7  ;;  %v444_v12 = vld [vmem:[%s3800_s3 + $0x18] sm:$0xff] (!%p365_p9)  ;;  %vm3296_vm1 = vmmov (!%p365_p9), 0   ;;  %v3297_v13 = vmov (!%p365_p9), 0.0   ;;  %s3815_s1 = sld [smem:[#allocation6_spill]] (!%p365_p9) }
  0x12   : > { %3089 = vmatprep.subr.bf16.mxu0 (!%p365_p9), %v3295_v10  ;;  %2920 = vmatprep.mubr.msk.f32.mxu0 (!%p365_p9), %vm3296_vm1, %v3297_v13  ;;  %v3093_v14 = vpack.c.bf16 (!%p365_p9), %v444_v12, %v443_v9  ;;  %v2785_v21 = vld [vmem:[%s3799_s2] ss:$0 sm:$0xff] (!%p365_p9)  ;;  %s3298_s29 = smov (!%p365_p9), 64   ;;  %s3301_s17 = smov (!%p365_p9), 124   ;;  %vm521_vm2 = vcmask (!%p365_p9), 31744   ;;  %vm596_vm3 = vcmask (!%p365_p9), 64512  }
  0x13   : > { %2948 = vmatprep.subr.mxu1 (!%p365_p9), %v3297_v13  ;;  %2950 = vmatprep.mubr.msk.f32.mxu1 (!%p365_p9), %vm3296_vm1, %v3297_v13  ;;  %s3302_s18 = smov (!%p365_p9), 60   ;;  %s3304_s20 = smov (!%p365_p9), 120   ;;  %v684_v49 = vld [vmem:[%s3801_s4] sm:$0xf] (!%p365_p9)  ;;  %vm854_vm4 = vcmask (!%p365_p9), 1043456  }
  0x14   : > { %3091 = vmatpush3.bf16.msra.mxu0 (!%p365_p9), %v3090_v11  ;;  %s3305_s26 = smov (!%p365_p9), 56   ;;  %s3306_s28 = smov (!%p365_p9), 84   ;;  %2949 = vmatpush3.msk.msra.mxu1 (!%p365_p9), %vm854_vm4, %v684_v49  ;;  %v850_v50 = vld [vmem:[%s3801_s4 + $0x4] sm:$0xf] (!%p365_p9) }
  0x15   : > { %3092 = vmatprep.subr.bf16.mxu0 (!%p365_p9), %v3295_v10  ;;  %2958 = vmatprep.subr.mxu1 (!%p365_p9), %v3297_v13 }
  0x17   : > { %v2784_v19 = vld [vmem:[%s3815_s1] ss:$0 sm:$0xff] (!%p365_p9) }
  0x18   : > { %s406_s15 = scalar_select %p405_p10, %s3409_s25, 1  ;;  %3094 = vmatpush3.bf16.msra.mxu0 %v3093_v14 }
  0x19   : > { %2923 = vmatprep.subr.mxu0 %v3297_v13 }
  0x1a   : > { %s2783_s16 = sshll.u32 %s406_s15, 3  ;;  %s3299_s15 = smov 96  }
  0x1b   : > { %s408_s19 = scalar_lea.vmem %s3814_s0, %s2783_s16  ;;  %s3300_s16 = smov 92  }
  0x1c   : > { %v3441_v0 = vld [vmem:[%s408_s19] sm:$0xff]  ;;  %s3303_s19 = smov 88  }
  0x1d   : > { %v413_v1 = vsel %vm412_vm0, %v3441_v0, 0.0 }
  0x1e   : > { %414 = vadd.xlane.f32.xlu0 %v413_v1 }
  0xab   : > { %v415_v2 = vpop.xlane.xlu0 %414 }
  0xac   : > { %v417_v3 = vmul.f32 0.03125, %v415_v2 }
  0xae   : > { %v418_v4 = vsub.f32 %v3441_v0, %v417_v3 }
  0xb0   : > { %v419_v5 = vmul.f32 %v418_v4, %v418_v4 }
  0xb2   : > { %v420_v6 = vsel %vm412_vm0, %v419_v5, 0.0 }
  0xb3   : > { %421 = vadd.xlane.f32.xlu0 %v420_v6 }
 0x140   : > { %v422_v15 = vpop.xlane.xlu0 %421 }
 0x141   : > { %v423_v16 = vmul.f32 0.03125, %v422_v15 }
 0x143   : > { %v424_v17 = vadd.f32 1e-05, %v423_v16  ;;  %v1169_v16 = vld [vmem:[%s3801_s4 + $0x8] sm:$0xf] }
 0x145   : > { %3191 = vrsqrt.f32 %v424_v17 }
 0x14f   : > { %v3192_v18 = vpop.eup %3191 }
 0x150   : > { %v426_v20 = vmul.f32 %v3192_v18, %v418_v4 }
 0x152   : > { %v433_v22 = vmul.f32 %v2784_v19, %v426_v20 }
 0x154   : > { %v440_v23 = vadd.f32 %v2785_v21, %v433_v22 }
 0x156   : > { %2921 = vmatmul.mubr.msk.f32.vlgmr.msra.gmra.mrb[0].mxu0 %vm412_vm0, %v440_v23 }
 0x157   : > { %2925 = vmatprep.mubr.msk.f32.mxu0 %vm3296_vm1, %v3297_v13 }
 0x229   : > { %v3476_v24 = vpop.f32.mrb[0].mxu0 }
 0x22a   : > { %607 = vrot.lane.b32.xlu0 %v3476_v24, %s3298_s29  ;;  %519 = vrot.lane.b32.xlu1 %v3476_v24, %s3299_s15  ;;  %v2922_v25 = vpop.f32.mrb[1].mxu0  ;;  %s3310_s29 = smov 112   ;;  %s3311_s15 = smov 48  }
 0x22e   : > { %687 = vrot.lane.b32.xlu0 %v3476_v24, %s3300_s16  ;;  %s3307_s16 = smov 116  }
 0x232   : > { %685 = vrot.lane.b32.xlu0 %v3476_v24, %s3301_s17  ;;  %s3313_s17 = smov 108  }
 0x29c   : > { %v520_v26 = vpop.permute.xlu1 %519  ;;  %v608_v27 = vpop.permute.xlu0 %607 }
 0x29d   : > { %2924 = vmatpush3.xpose.msk.msra.mxu0 %vm521_vm2, %v520_v26 }
 0x29e   : > { %2928 = vmatprep.subr.mxu0 %v3297_v13 }
 0x2a0   : > { %2926 = vmatmul.mubr.msk.f32.vlgmr.msra.gmra.mrb[2].mxu0 %vm521_vm2, %v3476_v24  ;;  %v688_v34 = vpop.permute.xlu0 %687 }
 0x2a1   : > { %2929 = vmatpush3.msra.mxu0 %v608_v27  ;;  %2930 = vmatprep.mubr.msk.f32.mxu0 %vm3296_vm1, %v3297_v13 }
 0x2a2   : > { %2933 = vmatprep.subr.mxu0 %v3297_v13 }
 0x2a4   : > { %v686_v36 = vpop.permute.xlu0 %685 }
 0x373   : > { %v592_v28 = vpop.f32.mrb[2].mxu0 }
 0x374   : > { %v2927_v29 = vpop.f32.mrb[3].mxu0  ;;  %v597_v30 = vsel %vm596_vm3, %v592_v28, -inf }
 0x375   : > { %598 = vmax.xlane.f32.xlu1 %v597_v30 }
 0x386   : > { %773 = vrot.lane.b32.xlu1 %v3476_v24, %s3302_s18  ;;  %s3319_s18 = smov 100  }
 0x402   : > { %v599_v31 = vpop.xlane.xlu1 %598 }
 0x403   : > { %v600_v32 = vsub.f32 %v592_v28, %v599_v31 }
 0x405   : > { %v601_v33 = vmul.f32 1.442695, %v600_v32 }
 0x406   : > { %v774_v37 = vpop.permute.xlu1 %773 }
 0x407   : > { %3193 = vpow2.f32 %v601_v33 }
 0x411   : > { %v3194_v35 = vpop.eup %3193 }
 0x412   : > { %2931 = vmatmul.mubr.msk.f32.vlgmr.msra.gmra.mrb[4].mxu0 %vm596_vm3, %v3194_v35  ;;  %v603_v48 = vsel %vm596_vm3, %v3194_v35, 0.0 }
 0x413   : > { %2934 = vmatpush3.xpose.msk.msra.mxu0 %vm521_vm2, %v688_v34  ;;  %2935 = vmatprep.mubr.msk.f32.mxu0 %vm3296_vm1, %v3297_v13 }
 0x414   : > { %2938 = vmatprep.subr.mxu0 %v3297_v13 }
 0x416   : > { %2936 = vmatmul.mubr.msk.f32.vlgmr.msra.gmra.mrb[6].mxu0 %vm521_vm2, %v686_v36 }
 0x417   : > { %2939 = vmatpush3.msra.mxu0 %v774_v37  ;;  %2940 = vmatprep.mubr.msk.f32.mxu0 %vm3296_vm1, %v3297_v13  ;;  %v1412_v37 = vld [vmem:[%s3801_s4 + $0xc] sm:$0xf] }
 0x418   : > { %2943 = vmatprep.subr.mxu0 %v3297_v13 }
 0x4e5   : > { %v679_v38 = vpop.f32.mrb[4].mxu0 }
 0x4e6   : > { %v2932_v39 = vpop.f32.mrb[5].mxu0 }
 0x4e9   : > { %v759_v40 = vpop.f32.mrb[6].mxu0 }
 0x4ea   : > { %v2937_v41 = vpop.f32.mrb[7].mxu0  ;;  %v763_v42 = vsel %vm596_vm3, %v759_v40, -inf }
 0x4eb   : > { %764 = vmax.xlane.f32.xlu0 %v763_v42 }
 0x501   : > { %1006 = vrot.lane.b32.xlu0 %v3476_v24, %s3303_s19  ;;  %s3308_s19 = smov 52  }
 0x505   : > { %1004 = vrot.lane.b32.xlu0 %v3476_v24, %s3304_s20  ;;  %s3314_s20 = smov 44  }
 0x578   : > { %v765_v43 = vpop.xlane.xlu0 %764 }
 0x579   : > { %v766_v44 = vsub.f32 %v759_v40, %v765_v43 }
 0x57b   : > { %v767_v45 = vmul.f32 1.442695, %v766_v44 }
 0x57c   : > { %v1007_v57 = vpop.permute.xlu0 %1006 }
 0x57d   : > { %3195 = vpow2.f32 %v767_v45 }
 0x580   : > { %v1005_v61 = vpop.permute.xlu0 %1004 }
 0x587   : > { %v3196_v46 = vpop.eup %3195 }
 0x588   : > { %2941 = vmatmul.mubr.msk.f32.vlgmr.msra.gmra.mrb[8].mxu0 %vm596_vm3, %v3196_v46  ;;  %v769_v47 = vsel %vm596_vm3, %v3196_v46, 0.0 }
 0x589   : > { %770 = vadd.xlane.f32.xlu1 %v769_v47  ;;  %2945 = vmatprep.mubr.msk.f32.mxu0 %vm3296_vm1, %v3297_v13 }
 0x58a   : > { %2944 = vmatpush3.msk.msra.mxu0 %vm854_vm4, %v850_v50 }
 0x58b   : > { %2953 = vmatprep.subr.mxu0 %v3297_v13 }
 0x58d   : > { %604 = vadd.xlane.f32.xlu1 %v603_v48 }
 0x59e   : > { %1092 = vrot.lane.b32.xlu1 %v3476_v24, %s3305_s26 }
 0x5a2   : > { %1249 = vrot.lane.b32.xlu1 %v3476_v24, %s3306_s28  ;;  %s3309_s28 = smov 80  }
 0x5a6   : > { %1247 = vrot.lane.b32.xlu1 %v3476_v24, %s3307_s16  ;;  %s3312_s16 = smov 76  }
 0x616   : > { %v771_v51 = vpop.xlane.xlu1 %770 }
 0x61a   : > { %v605_v52 = vpop.xlane.xlu1 %604 }
 0x61b   : > { %3197 = vrcp.f32 %v605_v52 }
 0x61c   : > { %3199 = vrcp.f32 %v771_v51 }
 0x61e   : > { %v1093_v55 = vpop.permute.xlu1 %1092 }
 0x622   : > { %v1250_v11 = vpop.permute.xlu1 %1249 }
 0x625   : > { %v3198_v53 = vpop.eup %3197 }
 0x626   : > { %v683_v54 = vmul.f32 %v3198_v53, %v679_v38  ;;  %v3200_v56 = vpop.eup %3199  ;;  %v1248_v15 = vpop.permute.xlu1 %1247 }
 0x628   : > { %2951 = vmatmul.mubr.msk.f32.vlgmr.msra.gmra.mrb[0].mxu1 %vm521_vm2, %v683_v54 }
 0x629   : > { %2959 = vmatpush3.msra.mxu1 %v1093_v55  ;;  %2960 = vmatprep.mubr.msk.f32.mxu1 %vm3296_vm1, %v3297_v13 }
 0x62a   : > { %2968 = vmatprep.subr.mxu1 %v3297_v13 }
 0x65b   : > { %v845_v58 = vpop.f32.mrb[8].mxu0 }
 0x65c   : > { %v849_v59 = vmul.f32 %v3200_v56, %v845_v58  ;;  %v2942_v60 = vpop.f32.mrb[9].mxu0 }
 0x65e   : > { %2946 = vmatmul.mubr.msk.f32.vlgmr.msra.gmra.mrb[10].mxu0 %vm521_vm2, %v849_v59 }
 0x65f   : > { %2954 = vmatpush3.xpose.msk.msra.mxu0 %vm521_vm2, %v1007_v57  ;;  %2955 = vmatprep.mubr.msk.f32.mxu0 %vm3296_vm1, %v3297_v13  ;;  %v1655_v57 = vld [vmem:[%s3801_s4 + $0x10] sm:$0xf] }
 0x660   : > { %2963 = vmatprep.subr.mxu0 %v3297_v13 }
 0x662   : > { %2956 = vmatmul.mubr.msk.f32.vlgmr.msra.gmra.mrb[12].mxu0 %vm521_vm2, %v1005_v61 }
 0x663   : > { %2965 = vmatprep.mubr.msk.f32.mxu0 %vm3296_vm1, %v3297_v13  ;;  %2964 = vmatpush3.msk.msra.mxu0 %vm854_vm4, %v1169_v16  ;;  %v1898_v16 = vld [vmem:[%s3801_s4 + $0x14] sm:$0xf] }
 0x664   : > { %2973 = vmatprep.subr.mxu0 %v3297_v13 }
 0x6fb   : > { %v1000_v62 = vpop.f32.mrb[0].mxu1 }
 0x6fc   : > { %v2952_v63 = vpop.f32.mrb[1].mxu1 }
 0x731   : > { %v924_v1 = vpop.f32.mrb[10].mxu0 }
 0x732   : > { %v3533_v2 = vadd.f32 %v1000_v62, %v924_v1  ;;  %v2947_v3 = vpop.f32.mrb[11].mxu0 }
 0x735   : > { %v1078_v4 = vpop.f32.mrb[12].mxu0 }
 0x736   : > { %v2957_v5 = vpop.f32.mrb[13].mxu0  ;;  %v1082_v6 = vsel %vm596_vm3, %v1078_v4, -inf }
 0x737   : > { %1083 = vmax.xlane.f32.xlu0 %v1082_v6 }
 0x74d   : > { %1335 = vrot.lane.b32.xlu0 %v3476_v24, %s3308_s19 }
 0x7c4   : > { %v1084_v7 = vpop.xlane.xlu0 %1083 }
 0x7c5   : > { %v1085_v8 = vsub.f32 %v1078_v4, %v1084_v7 }
 0x7c7   : > { %v1086_v9 = vmul.f32 1.442695, %v1085_v8 }
 0x7c8   : > { %v1336_v22 = vpop.permute.xlu0 %1335 }
 0x7c9   : > { %3201 = vpow2.f32 %v1086_v9 }
 0x7d3   : > { %v3202_v12 = vpop.eup %3201 }
 0x7d4   : > { %2961 = vmatmul.mubr.msk.f32.vlgmr.msra.gmra.mrb[2].mxu1 %vm596_vm3, %v3202_v12  ;;  %v1088_v14 = vsel %vm596_vm3, %v3202_v12, 0.0 }
 0x7d5   : > { %2969 = vmatpush3.xpose.msk.msra.mxu1 %vm521_vm2, %v1250_v11  ;;  %1089 = vadd.xlane.f32.xlu1 %v1088_v14 }
 0x7d6   : > { %2970 = vmatprep.mubr.msk.f32.mxu1 %vm3296_vm1, %v3297_v13  ;;  %2978 = vmatprep.subr.mxu1 %v3297_v13 }
 0x7d8   : > { %2971 = vmatmul.mubr.msk.f32.vlgmr.msra.gmra.mrb[4].mxu1 %vm521_vm2, %v1248_v15 }
 0x7d9   : > { %2980 = vmatprep.mubr.msk.f32.mxu1 %vm3296_vm1, %v3297_v13  ;;  %2979 = vmatpush3.msk.msra.mxu1 %vm854_vm4, %v1412_v37  ;;  %v2141_v37 = vld [vmem:[%s3801_s4 + $0x18] sm:$0xf] }
 0x7da   : > { %2988 = vmatprep.subr.mxu1 %v3297_v13 }
 0x862   : > { %v1090_v17 = vpop.xlane.xlu1 %1089 }
 0x863   : > { %3203 = vrcp.f32 %v1090_v17 }
 0x86d   : > { %v3204_v18 = vpop.eup %3203 }
 0x8a7   : > { %v1164_v19 = vpop.f32.mrb[2].mxu1 }
 0x8a8   : > { %v1168_v20 = vmul.f32 %v3204_v18, %v1164_v19  ;;  %v2962_v21 = vpop.f32.mrb[3].mxu1 }
 0x8aa   : > { %2966 = vmatmul.mubr.msk.f32.vlgmr.msra.gmra.mrb[14].mxu0 %vm521_vm2, %v1168_v20 }
 0x8ab   : > { %2974 = vmatpush3.msra.mxu0 %v1336_v22  ;;  %v1321_v23 = vpop.f32.mrb[4].mxu1  ;;  %2975 = vmatprep.mubr.msk.f32.mxu0 %vm3296_vm1, %v3297_v13 }
 0x8ac   : > { %v2972_v25 = vpop.f32.mrb[5].mxu1  ;;  %v1325_v26 = vsel %vm596_vm3, %v1321_v23, -inf  ;;  %2983 = vmatprep.subr.mxu0 %v3297_v13 }
 0x8ad   : > { %1326 = vmax.xlane.f32.xlu0 %v1325_v26 }
 0x8c3   : > { %1492 = vrot.lane.b32.xlu0 %v3476_v24, %s3309_s28 }
 0x8c7   : > { %1490 = vrot.lane.b32.xlu0 %v3476_v24, %s3310_s29  ;;  %s3315_s29 = smov 72  }
 0x93a   : > { %v1327_v27 = vpop.xlane.xlu0 %1326 }
 0x93b   : > { %v1328_v28 = vsub.f32 %v1321_v23, %v1327_v27 }
 0x93d   : > { %v1329_v29 = vmul.f32 1.442695, %v1328_v28 }
 0x93e   : > { %v1493_v30 = vpop.permute.xlu0 %1492 }
 0x93f   : > { %3205 = vpow2.f32 %v1329_v29 }
 0x942   : > { %v1491_v33 = vpop.permute.xlu0 %1490 }
 0x949   : > { %v3206_v31 = vpop.eup %3205 }
 0x94a   : > { %2976 = vmatmul.mubr.msk.f32.vlgmr.msra.gmra.mrb[16].mxu0 %vm596_vm3, %v3206_v31  ;;  %v1331_v32 = vsel %vm596_vm3, %v3206_v31, 0.0 }
 0x94b   : > { %2984 = vmatpush3.xpose.msk.msra.mxu0 %vm521_vm2, %v1493_v30  ;;  %1332 = vadd.xlane.f32.xlu1 %v1331_v32 }
 0x94c   : > { %2985 = vmatprep.mubr.msk.f32.mxu0 %vm3296_vm1, %v3297_v13  ;;  %2993 = vmatprep.subr.mxu0 %v3297_v13 }
 0x94e   : > { %2986 = vmatmul.mubr.msk.f32.vlgmr.msra.gmra.mrb[18].mxu0 %vm521_vm2, %v1491_v33 }
 0x94f   : > { %2995 = vmatprep.mubr.msk.f32.mxu0 %vm3296_vm1, %v3297_v13  ;;  %2994 = vmatpush3.msk.msra.mxu0 %vm854_vm4, %v1655_v57 }
 0x950   : > { %3003 = vmatprep.subr.mxu0 %v3297_v13 }
 0x95c   : > { %1578 = vrot.lane.b32.xlu1 %v3476_v24, %s3311_s15  ;;  %s3316_s15 = smov 104  }
 0x960   : > { %1735 = vrot.lane.b32.xlu1 %v3476_v24, %s3312_s16  ;;  %s3317_s16 = smov 40  }
 0x964   : > { %1733 = vrot.lane.b32.xlu1 %v3476_v24, %s3313_s17  ;;  %s3318_s17 = smov 68  }
 0x97d   : > { %v1242_v34 = vpop.f32.mrb[14].mxu0 }
 0x97e   : > { %v1246_v35 = vadd.f32 %v1242_v34, %v3533_v2  ;;  %v2967_v36 = vpop.f32.mrb[15].mxu0 }
 0x9d8   : > { %v1333_v38 = vpop.xlane.xlu1 %1332 }
 0x9d9   : > { %3207 = vrcp.f32 %v1333_v38 }
 0x9dc   : > { %v1579_v43 = vpop.permute.xlu1 %1578 }
 0x9e0   : > { %v1736_v50 = vpop.permute.xlu1 %1735 }
 0x9e3   : > { %v3208_v39 = vpop.eup %3207 }
 0x9e4   : > { %v1734_v53 = vpop.permute.xlu1 %1733 }
 0xa1d   : > { %v1407_v40 = vpop.f32.mrb[16].mxu0 }
 0xa1e   : > { %v1411_v41 = vmul.f32 %v3208_v39, %v1407_v40  ;;  %v2977_v42 = vpop.f32.mrb[17].mxu0 }
 0xa20   : > { %2981 = vmatmul.mubr.msk.f32.vlgmr.msra.gmra.mrb[6].mxu1 %vm521_vm2, %v1411_v41 }
 0xa21   : > { %2989 = vmatpush3.msra.mxu1 %v1579_v43  ;;  %v1564_v44 = vpop.f32.mrb[18].mxu0  ;;  %2990 = vmatprep.mubr.msk.f32.mxu1 %vm3296_vm1, %v3297_v13 }
 0xa22   : > { %v2987_v45 = vpop.f32.mrb[19].mxu0  ;;  %v1568_v46 = vsel %vm596_vm3, %v1564_v44, -inf  ;;  %2998 = vmatprep.subr.mxu1 %v3297_v13 }
 0xa23   : > { %1569 = vmax.xlane.f32.xlu0 %v1568_v46 }
 0xa39   : > { %1821 = vrot.lane.b32.xlu0 %v3476_v24, %s3314_s20  ;;  %s402_s20 = sand.u32 1, %s3285_s22  }
 0xa3a   : > { %s2782_s26 = sshll.u32 %s402_s20, 3  ;;  %s2706_s28 = scalar_lea.sflag [#allocation3], %s402_s20 }
 0xab0   : > { %v1570_v47 = vpop.xlane.xlu0 %1569 }
 0xab1   : > { %v1571_v48 = vsub.f32 %v1564_v44, %v1570_v47 }
 0xab3   : > { %v1572_v49 = vmul.f32 1.442695, %v1571_v48 }
 0xab4   : > { %v1822_v63 = vpop.permute.xlu0 %1821 }
 0xab5   : > { %3209 = vpow2.f32 %v1572_v49 }
 0xabf   : > { %v3210_v51 = vpop.eup %3209 }
 0xac0   : > { %2991 = vmatmul.mubr.msk.f32.vlgmr.msra.gmra.mrb[8].mxu1 %vm596_vm3, %v3210_v51  ;;  %v1574_v52 = vsel %vm596_vm3, %v3210_v51, 0.0 }
 0xac1   : > { %2999 = vmatpush3.xpose.msk.msra.mxu1 %vm521_vm2, %v1736_v50  ;;  %1575 = vadd.xlane.f32.xlu1 %v1574_v52 }
 0xac2   : > { %3000 = vmatprep.mubr.msk.f32.mxu1 %vm3296_vm1, %v3297_v13  ;;  %3008 = vmatprep.subr.mxu1 %v3297_v13 }
 0xac4   : > { %3001 = vmatmul.mubr.msk.f32.vlgmr.msra.gmra.mrb[10].mxu1 %vm521_vm2, %v1734_v53 }
 0xac5   : > { %3010 = vmatprep.mubr.msk.f32.mxu1 %vm3296_vm1, %v3297_v13  ;;  %3009 = vmatpush3.msk.msra.mxu1 %vm854_vm4, %v1898_v16 }
 0xac6   : > { %3018 = vmatprep.subr.mxu1 %v3297_v13 }
 0xaf3   : > { %v1485_v54 = vpop.f32.mrb[6].mxu1 }
 0xaf4   : > { %v1489_v55 = vadd.f32 %v1485_v54, %v1246_v35  ;;  %v2982_v56 = vpop.f32.mrb[7].mxu1  ;;  %v2384_v54 = vld [vmem:[%s3801_s4 + $0x1c] sm:$0xf] }
 0xb4e   : > { %v1576_v58 = vpop.xlane.xlu1 %1575 }
 0xb4f   : > { %3211 = vrcp.f32 %v1576_v58 }
 0xb59   : > { %v3212_v59 = vpop.eup %3211 }
 0xb93   : > { %v1650_v60 = vpop.f32.mrb[8].mxu1 }
 0xb94   : > { %v1654_v61 = vmul.f32 %v3212_v59, %v1650_v60  ;;  %v2992_v62 = vpop.f32.mrb[9].mxu1 }
 0xb96   : > { %2996 = vmatmul.mubr.msk.f32.vlgmr.msra.gmra.mrb[20].mxu0 %vm521_vm2, %v1654_v61 }
 0xb97   : > { %3004 = vmatpush3.msra.mxu0 %v1822_v63  ;;  %v1807_v1 = vpop.f32.mrb[10].mxu1  ;;  %3005 = vmatprep.mubr.msk.f32.mxu0 %vm3296_vm1, %v3297_v13  ;;  %v2827_v63 = vld [vmem:[%s3802_s5] ss:$0 sm:$0xff] }
 0xb98   : > { %v3002_v2 = vpop.f32.mrb[11].mxu1  ;;  %v1811_v3 = vsel %vm596_vm3, %v1807_v1, -inf  ;;  %3013 = vmatprep.subr.mxu0 %v3297_v13 }
 0xb99   : > { %1812 = vmax.xlane.f32.xlu0 %v1811_v3 }
 0xbaf   : > { %1978 = vrot.lane.b32.xlu0 %v3476_v24, %s3315_s29  ;;  %s3320_s29 = smov 36  }
 0xbb3   : > { %1976 = vrot.lane.b32.xlu0 %v3476_v24, %s3316_s15  ;;  %s2834_s15 = sshll.u32 %s3409_s25, 7 }
 0xbb4   : > { %s3754_s0 = scalar_lea.hbm %s3809_s12, %s2834_s15 }
 0xc26   : > { %v1813_v4 = vpop.xlane.xlu0 %1812 }
 0xc27   : > { %v1814_v5 = vsub.f32 %v1807_v1, %v1813_v4 }
 0xc29   : > { %v1815_v6 = vmul.f32 1.442695, %v1814_v5 }
 0xc2a   : > { %v1979_v7 = vpop.permute.xlu0 %1978 }
 0xc2b   : > { %3213 = vpow2.f32 %v1815_v6 }
 0xc2e   : > { %v1977_v11 = vpop.permute.xlu0 %1976 }
 0xc35   : > { %v3214_v8 = vpop.eup %3213 }
 0xc36   : > { %3006 = vmatmul.mubr.msk.f32.vlgmr.msra.gmra.mrb[22].mxu0 %vm596_vm3, %v3214_v8  ;;  %v1817_v9 = vsel %vm596_vm3, %v3214_v8, 0.0  ;;  %v2500_v8 = vld [vmem:[%s3805_s8] sm:$0xff] }
 0xc37   : > { %3014 = vmatpush3.xpose.msk.msra.mxu0 %vm521_vm2, %v1979_v7  ;;  %1818 = vadd.xlane.f32.xlu1 %v1817_v9 }
 0xc38   : > { %3015 = vmatprep.mubr.msk.f32.mxu0 %vm3296_vm1, %v3297_v13  ;;  %3023 = vmatprep.subr.mxu0 %v3297_v13 }
 0xc3a   : > { %3016 = vmatmul.mubr.msk.f32.vlgmr.msra.gmra.mrb[24].mxu0 %vm521_vm2, %v1977_v11  ;;  %v2502_v11 = vld [vmem:[%s3805_s8 + $0x10] sm:$0xff] }
 0xc3b   : > { %3025 = vmatprep.mubr.msk.f32.mxu0 %vm3296_vm1, %v3297_v13  ;;  %3024 = vmatpush3.msk.msra.mxu0 %vm854_vm4, %v2141_v37  ;;  %v2618_v37 = vld [vmem:[%s3807_s10 + $0x40] sm:$0xff] }
 0xc3c   : > { %3033 = vmatprep.subr.mxu0 %v3297_v13 }
 0xc48   : > { %2064 = vrot.lane.b32.xlu1 %v3476_v24, %s3317_s16  ;;  %s404_s16 = scalar_lea.vmem [#allocation2], %s2782_s26  ;;  %s3322_s26 = smov [#allocation2]  }
 0xc4c   : > { %2221 = vrot.lane.b32.xlu1 %v3476_v24, %s3318_s17  ;;  %s2719_s17 = sshll.u32 %s404_s16, 4  ;;  %s3756_s17 = int_to_ptr.vmem [resolvable:$true] %s2719_s17 }
 0xc4d   : > { %s3231_s25 = scalar_lea.vmem %s3756_s17, 128 }
 0xc4e   : > { %p3232_p11 = scmp.ne.s32.totalorder %s3756_s17, %s3231_s25 }
 0xc50   : > { %2219 = vrot.lane.b32.xlu1 %v3476_v24, %s3319_s18  ;;  %p3233_p12 = pnand %p3232_p11, %p3426_p5 }
 0xc52   : > { %p3234_p13 = pneg %p3233_p12 }
 0xc69   : > { %v1728_v12 = vpop.f32.mrb[20].mxu0 }
 0xc6a   : > { %v1732_v14 = vadd.f32 %v1728_v12, %v1489_v55  ;;  %v2997_v15 = vpop.f32.mrb[21].mxu0  ;;  %v2503_v12 = vld [vmem:[%s3805_s8 + $0x18] sm:$0xff] }
 0xcc4   : > { %v1819_v17 = vpop.xlane.xlu1 %1818 }
 0xcc5   : > { %3215 = vrcp.f32 %v1819_v17 }
 0xcc8   : > { %v2065_v22 = vpop.permute.xlu1 %2064 }
 0xccc   : > { %v2222_v30 = vpop.permute.xlu1 %2221 }
 0xccf   : > { %v3216_v18 = vpop.eup %3215 }
 0xcd0   : > { %v2220_v33 = vpop.permute.xlu1 %2219 }
 0xd09   : > { %v1893_v19 = vpop.f32.mrb[22].mxu0 }
 0xd0a   : > { %v1897_v20 = vmul.f32 %v3216_v18, %v1893_v19  ;;  %v3007_v21 = vpop.f32.mrb[23].mxu0  ;;  %v2828_v19 = vld [vmem:[%s3803_s6] ss:$0 sm:$0xff] }
 0xd0b   : > { %v2829_v21 = vld [vmem:[%s3804_s7] ss:$0 sm:$0xff] }
 0xd0c   : > { %3011 = vmatmul.mubr.msk.f32.vlgmr.msra.gmra.mrb[12].mxu1 %vm521_vm2, %v1897_v20 }
 0xd0d   : > { %3019 = vmatpush3.msra.mxu1 %v2065_v22  ;;  %v2050_v23 = vpop.f32.mrb[24].mxu0  ;;  %3020 = vmatprep.mubr.msk.f32.mxu1 %vm3296_vm1, %v3297_v13 }
 0xd0e   : > { %v3017_v25 = vpop.f32.mrb[25].mxu0  ;;  %v2054_v26 = vsel %vm596_vm3, %v2050_v23, -inf  ;;  %3028 = vmatprep.subr.mxu1 %v3297_v13 }
 0xd0f   : > { %2055 = vmax.xlane.f32.xlu0 %v2054_v26  ;;  %v2610_v25 = vld [vmem:[%s3807_s10] sm:$0xff]  ;;  %v2611_v26 = vld [vmem:[%s3807_s10 + $0x8] sm:$0xff] }
 0xd9c   : > { %v2056_v27 = vpop.xlane.xlu0 %2055 }
 0xd9d   : > { %v2057_v28 = vsub.f32 %v2050_v23, %v2056_v27  ;;  %v3102_v27 = vpack.c.bf16 %v2611_v26, %v2610_v25 }
 0xd9f   : > { %v2058_v29 = vmul.f32 1.442695, %v2057_v28  ;;  %v2612_v28 = vld [vmem:[%s3807_s10 + $0x10] sm:$0xff] }
 0xda1   : > { %3217 = vpow2.f32 %v2058_v29  ;;  %v2613_v29 = vld [vmem:[%s3807_s10 + $0x18] sm:$0xff] }
 0xdab   : > { %v3218_v31 = vpop.eup %3217 }
 0xdac   : > { %3021 = vmatmul.mubr.msk.f32.vlgmr.msra.gmra.mrb[14].mxu1 %vm596_vm3, %v3218_v31  ;;  %v2060_v32 = vsel %vm596_vm3, %v3218_v31, 0.0  ;;  %v2614_v31 = vld [vmem:[%s3807_s10 + $0x20] sm:$0xff] }
 0xdad   : > { %3029 = vmatpush3.xpose.msk.msra.mxu1 %vm521_vm2, %v2222_v30  ;;  %2061 = vadd.xlane.f32.xlu1 %v2060_v32  ;;  %v3105_v30 = vpack.c.bf16 %v2613_v29, %v2612_v28  ;;  %v2615_v32 = vld [vmem:[%s3807_s10 + $0x28] sm:$0xff] }
 0xdae   : > { %3030 = vmatprep.mubr.msk.f32.mxu1 %vm3296_vm1, %v3297_v13  ;;  %3038 = vmatprep.subr.mxu1 %v3297_v13 }
 0xdb0   : > { %3031 = vmatmul.mubr.msk.f32.vlgmr.msra.gmra.mrb[16].mxu1 %vm521_vm2, %v2220_v33  ;;  %v3108_v33 = vpack.c.bf16 %v2615_v32, %v2614_v31 }
 0xdb1   : > { %3040 = vmatprep.mubr.msk.f32.mxu1 %vm3296_vm1, %v3297_v13  ;;  %3039 = vmatpush3.msk.msra.mxu1 %vm854_vm4, %v2384_v54 }
 0xdb2   : > { %3101 = vmatprep.subr.bf16.mxu1 %v3295_v10 }
 0xddf   : > { %v1971_v34 = vpop.f32.mrb[12].mxu1 }
 0xde0   : > { %v1975_v35 = vadd.f32 %v1971_v34, %v1732_v14  ;;  %v3012_v36 = vpop.f32.mrb[13].mxu1  ;;  %v3099_v14 = vpack.c.bf16 %v2503_v12, %v2502_v11  ;;  %v2616_v34 = vld [vmem:[%s3807_s10 + $0x30] sm:$0xff] }
 0xe3a   : > { %v2062_v38 = vpop.xlane.xlu1 %2061 }
 0xe3b   : > { %3219 = vrcp.f32 %v2062_v38  ;;  %v2619_v38 = vld [vmem:[%s3807_s10 + $0x48] sm:$0xff] }
 0xe45   : > { %v3220_v39 = vpop.eup %3219 }
 0xe7f   : > { %v2136_v40 = vpop.f32.mrb[14].mxu1 }
 0xe80   : > { %v2140_v41 = vmul.f32 %v3220_v39, %v2136_v40  ;;  %v3022_v42 = vpop.f32.mrb[15].mxu1  ;;  %v3114_v39 = vpack.c.bf16 %v2619_v38, %v2618_v37  ;;  %v2620_v40 = vld [vmem:[%s3807_s10 + $0x50] sm:$0xff] }
 0xe82   : > { %3026 = vmatmul.mubr.msk.f32.vlgmr.msra.gmra.mrb[26].mxu0 %vm521_vm2, %v2140_v41  ;;  %v2621_v41 = vld [vmem:[%s3807_s10 + $0x58] sm:$0xff] }
 0xe83   : > { %v2293_v43 = vpop.f32.mrb[16].mxu1  ;;  %3035 = vmatprep.mubr.msk.f32.mxu0 %vm3296_vm1, %v3297_v13  ;;  %v3117_v42 = vpack.c.bf16 %v2621_v41, %v2620_v40 }
 0xe84   : > { %v3032_v44 = vpop.f32.mrb[17].mxu1  ;;  %v2297_v45 = vsel %vm596_vm3, %v2293_v43, -inf }
 0xe85   : > { %2298 = vmax.xlane.f32.xlu0 %v2297_v45  ;;  %v2623_v44 = vld [vmem:[%s3807_s10 + $0x68] sm:$0xff] }
 0xe9b   : > { %2307 = vrot.lane.b32.xlu0 %v3476_v24, %s3320_s29  ;;  %s3235_s29 = sshll.u32 %s3322_s26, 4  ;;  %s3236_s29 = int_to_ptr.vmem [resolvable:$false] %s3235_s29 }
 0xe9c   : > { %s3237_s1 = scalar_lea.vmem %s3236_s29, 256  ;;  %p3238_p0 = scmp.lt.s32.totalorder %s3756_s17, %s3236_s29 }
 0xe9d   : > { %p3239_p1 = scmp.lt.s32.totalorder %s3237_s1, %s3231_s25 }
 0xe9f   : > { %p3240_p2 = por %p3239_p1, %p3238_p0 }
 0xea1   : > { %p3241_p3 = pnand %p3240_p2, %p3234_p13 }
 0xf12   : > { %v2299_v46 = vpop.xlane.xlu0 %2298 }
 0xf13   : > { %v2300_v47 = vsub.f32 %v2293_v43, %v2299_v46  ;;  %v2622_v43 = vld [vmem:[%s3807_s10 + $0x60] sm:$0xff]  ;;  %v2624_v46 = vld [vmem:[%s3807_s10 + $0x70] sm:$0xff] }
 0xf14   : > { %v3120_v45 = vpack.c.bf16 %v2623_v44, %v2622_v43 }
 0xf15   : > { %v2301_v48 = vmul.f32 1.442695, %v2300_v47  ;;  %v2625_v47 = vld [vmem:[%s3807_s10 + $0x78] sm:$0xff] }
 0xf16   : > { %v2308_v49 = vpop.permute.xlu0 %2307 }
 0xf17   : > { %3221 = vpow2.f32 %v2301_v48  ;;  %3034 = vmatpush3.msra.mxu0 %v2308_v49  ;;  %v3123_v48 = vpack.c.bf16 %v2625_v47, %v2624_v46  ;;  %v2830_v49 = vld [vmem:[%s3806_s9] ss:$0 sm:$0xff] }
 0xf18   : > { %3095 = vmatprep.subr.bf16.mxu0 %v3295_v10 }
 0xf21   : > { %v3222_v50 = vpop.eup %3221 }
 0xf22   : > { %3036 = vmatmul.mubr.msk.f32.vlgmr.msra.gmra.mrb[28].mxu0 %vm596_vm3, %v3222_v50  ;;  %v2303_v51 = vsel %vm596_vm3, %v3222_v50, 0.0 }
 0xf23   : > { %2304 = vadd.xlane.f32.xlu0 %v2303_v51  ;;  %3051 = vmatprep.mubr.msk.f32.mxu0 %vm3296_vm1, %v3297_v13 }
 0xf55   : > { %v2214_v52 = vpop.f32.mrb[26].mxu0 }
 0xf56   : > { %v2218_v53 = vadd.f32 %v2214_v52, %v1975_v35  ;;  %v3027_v24 = vpop.f32.mrb[27].mxu0  ;;  %v2617_v35 = vld [vmem:[%s3807_s10 + $0x38] sm:$0xff] }
 0xf57   : > { %v3111_v36 = vpack.c.bf16 %v2617_v35, %v2616_v34 }
 0xfb0   : > { %v2305_v55 = vpop.xlane.xlu0 %2304 }
 0xfb1   : > { %3223 = vrcp.f32 %v2305_v55 }
 0xfbb   : > { %v3224_v56 = vpop.eup %3223 }
 0xff5   : > { %v2379_v57 = vpop.f32.mrb[28].mxu0 }
 0xff6   : > { %v2383_v58 = vmul.f32 %v3224_v56, %v2379_v57  ;;  %v3037_v59 = vpop.f32.mrb[29].mxu0 }
 0xff8   : > { %3041 = vmatmul.mubr.msk.f32.vlgmr.msra.gmra.mrb[18].mxu1 %vm521_vm2, %v2383_v58 }
 0xff9   : > { %3086 = vmatprep.mubr.msk.f32.mxu1 %vm3296_vm1, %v3297_v13  ;;  %3103 = vmatpush3.bf16.msra.mxu1 %v3102_v27 }
 0xffa   : > { %3104 = vmatprep.subr.bf16.mxu1 %v3295_v10 }
 0xffd   : > { %3106 = vmatpush3.bf16.msra.mxu1 %v3105_v30 }
 0xffe   : > { %3107 = vmatprep.subr.bf16.mxu1 %v3295_v10 }
0x1001   : > { %3109 = vmatpush3.bf16.msra.mxu1 %v3108_v33 }
0x1002   : > { %3110 = vmatprep.subr.bf16.mxu1 %v3295_v10 }
0x1005   : > { %3112 = vmatpush3.bf16.msra.mxu1 %v3111_v36 }
0x1006   : > { %3113 = vmatprep.subr.bf16.mxu1 %v3295_v10 }
0x1009   : > { %3115 = vmatpush3.bf16.msra.mxu1 %v3114_v39 }
0x100a   : > { %3116 = vmatprep.subr.bf16.mxu1 %v3295_v10 }
0x100d   : > { %3118 = vmatpush3.bf16.msra.mxu1 %v3117_v42 }
0x100e   : > { %3119 = vmatprep.subr.bf16.mxu1 %v3295_v10 }
0x1011   : > { %3121 = vmatpush3.bf16.msra.mxu1 %v3120_v45 }
0x1012   : > { %3122 = vmatprep.subr.bf16.mxu1 %v3295_v10 }
0x1015   : > { %3124 = vmatpush3.bf16.msra.mxu1 %v3123_v48 }
0x10cb   : > { %v2457_v60 = vpop.f32.mrb[18].mxu1 }
0x10cc   : > { %v2461_v61 = vadd.f32 %v2457_v60, %v2218_v53  ;;  %v3042_v62 = vpop.f32.mrb[19].mxu1 }
0x10ce   : > { %v2462_v1 = vadd.f32 %v2461_v61, %v3441_v0  ;;  %v2501_v0 = vld [vmem:[%s3805_s8 + $0x8] sm:$0xff] }
0x10cf   : > { %v3096_v9 = vpack.c.bf16 %v2501_v0, %v2500_v8  ;;  %v3321_v8 = vmov -1.0  }
0x10d0   : > { %v3661_v2 = vadd.f32 %v2827_v63, %v2462_v1 }
0x10d1   : > { %3097 = vmatpush3.bf16.msra.mxu0 %v3096_v9 }
0x10d2   : > { %v2473_v3 = vsel %vm412_vm0, %v3661_v2, 0.0  ;;  %3098 = vmatprep.subr.bf16.mxu0 %v3295_v10 }
0x10d3   : > { %2474 = vadd.xlane.f32.xlu1 %v2473_v3 }
0x10d5   : > { %3100 = vmatpush3.bf16.msra.mxu0 %v3099_v14 }
0x1160   : > { %v2475_v4 = vpop.xlane.xlu1 %2474 }
0x1161   : > { %v2476_v5 = vmul.f32 0.03125, %v2475_v4 }
0x1163   : > { %v2477_v6 = vsub.f32 %v3661_v2, %v2476_v5 }
0x1165   : > { %v2478_v13 = vmul.f32 %v2477_v6, %v2477_v6 }
0x1167   : > { %v2479_v7 = vsel %vm412_vm0, %v2478_v13, 0.0 }
0x1168   : > { %2480 = vadd.xlane.f32.xlu1 %v2479_v7 }
0x11f5   : > { %v2481_v15 = vpop.xlane.xlu1 %2480 }
0x11f6   : > { %v2482_v16 = vmul.f32 0.03125, %v2481_v15  ;;  %v2832_v15 = vld [vmem:[%s3808_s11] ss:$0 sm:$0xff] }
0x11f8   : > { %v2483_v17 = vadd.f32 1e-05, %v2482_v16 }
0x11fa   : > { %3225 = vrsqrt.f32 %v2483_v17 }
0x1204   : > { %v3226_v18 = vpop.eup %3225 }
0x1205   : > { %v2485_v20 = vmul.f32 %v3226_v18, %v2477_v6 }
0x1207   : > { %v2492_v22 = vmul.f32 %v2828_v19, %v2485_v20 }
0x1209   : > { %v2499_v23 = vadd.f32 %v2829_v21, %v2492_v22 }
0x120b   : > { %3052 = vmatmul.mubr.msk.f32.vlgmr.msra.gmra.mrb[30].mxu0 %vm412_vm0, %v2499_v23 }
0x12de   : > { %v2580_v50 = vpop.f32.mrb[30].mxu0 }
0x12df   : > { %v2581_v51 = vadd.f32 %v2830_v49, %v2580_v50  ;;  %v3053_v52 = vpop.f32.mrb[31].mxu0 }
0x12e1   : > { %v2585_v53 = vmul.f32 0.70710677, %v2581_v51  ;;  %v2584_v11 = vmul.f32 0.5, %v2581_v51 }
0x12e3   : > { %v2588_v24 = vand.u32 2147483647, %v2585_v53  ;;  %vm2586_vm5 = vcmp.ge.f32.partialorder %v2585_v53, 0.0 }
0x12e4   : > { %v2587_v0 = vsel %vm2586_vm5, 1.0, %v3321_v8 }
0x12e5   : > { %v2589_v10 = vmul.f32 0.3275911, %v2588_v24  ;;  %v2601_v55 = vsub.f32 0.0, %v2588_v24 }
0x12e7   : > { %v2590_v54 = vadd.f32 1.0, %v2589_v10  ;;  %v2602_v57 = vmul.f32 %v2601_v55, %v2588_v24 }
0x12e9   : > { %3227 = vrcp.f32 %v2590_v54  ;;  %v2603_v60 = vmul.f32 1.442695, %v2602_v57 }
0x12eb   : > { %3229 = vpow2.f32 %v2603_v60 }
0x12f3   : > { %v3228_v56 = vpop.eup %3227 }
0x12f4   : > { %v2592_v58 = vmul.f32 1.0614054, %v3228_v56 }
0x12f5   : > { %v3230_v6 = vpop.eup %3229 }
0x12f6   : > { %v2593_v59 = vadd.f32 -1.4531521, %v2592_v58 }
0x12f8   : > { %v2594_v61 = vmul.f32 %v3228_v56, %v2593_v59 }
0x12fa   : > { %v2595_v62 = vadd.f32 1.4214138, %v2594_v61 }
0x12fc   : > { %v2596_v63 = vmul.f32 %v3228_v56, %v2595_v62 }
0x12fe   : > { %v2597_v1 = vadd.f32 -0.28449672, %v2596_v63 }
0x1300   : > { %v2598_v3 = vmul.f32 %v3228_v56, %v2597_v1 }
0x1302   : > { %v2599_v4 = vadd.f32 0.2548296, %v2598_v3 }
0x1304   : > { %v2600_v5 = vmul.f32 %v3228_v56, %v2599_v4 }
0x1306   : > { %v2605_v13 = vmul.f32 %v3230_v6, %v2600_v5 }
0x1308   : > { %v2606_v7 = vsub.f32 1.0, %v2605_v13 }
0x130a   : > { %v2607_v9 = vmul.f32 %v2606_v7, %v2587_v0 }
0x130c   : > { %v2608_v12 = vadd.f32 1.0, %v2607_v9 }
0x130e   : > { %v2609_v14 = vmul.f32 %v2608_v12, %v2584_v11 }
0x1310   : > { %3087 = vmatmul.mubr.f32.vlgmr.msra.gmra.mrb[20].mxu1 %v2609_v14 }
0x13e3   : > { %v2699_v16 = vpop.f32.mrb[20].mxu1 }
0x13e4   : > { %v2700_v17 = vadd.f32 %v2832_v15, %v2699_v16  ;;  %v3088_v18 = vpop.f32.mrb[21].mxu1 }
0x13e6   : > { %v2703_v19 = vadd.f32 %v2700_v17, %v3661_v2 }
0x13e8   : > { %2704 = vst.msk [vmem:[%s404_s16] sm:$0xff] %vm412_vm0, %v2703_v19 }
0x13e9   : > { %3244 = shalt.err (!%p3241_p3)
}
0x13ea   : > { %s3245_s20 = scalar_lea.hbm %s3754_s0, 128  ;;  %s3249_s18 = scalar_lea.hbm %s3809_s12, 256 }
0x13eb   : > { %p3246_p4 = scmp.ne.s32.totalorder %s3754_s0, %s3245_s20  ;;  %p3250_p9 = scmp.lt.u32.totalorder %s3754_s0, %s3809_s12 }
0x13ec   : > { %p3251_p10 = scmp.lt.u32.totalorder %s3249_s18, %s3245_s20  ;;  %p3253_p12 = scmp.lt.u32.totalorder %s3245_s20, %s3754_s0 }
0x13ed   : > { %p3247_p7 = pnand %p3246_p4, %p3426_p5 }
0x13ee   : > { %p3252_p11 = por %p3251_p10, %p3250_p9 }
0x13ef   : > { %p3248_p8 = pneg %p3247_p7 }
0x13f0   : > { %p3254_p13 = por %p3253_p12, %p3252_p11 }
0x13f2   : > { %p3255_p0 = pnand %p3254_p13, %p3248_p8 }
0x13f4   : > { %3258 = shalt.err (!%p3255_p0)
}
0x13f5   : > { %3125 = dma.vmem_to_hbm [thread:$0]  (%p3426_p5), %s3756_s17, 128, %s3754_s0, %s2706_s28  }
0x13f6 PF: > { %p3131_p1 = scmp.ge.s32.totalorder %s3293_s24, 2  ;;  %s2731_s1 = sand.u32 1, %s3281_s21  }
0x13f7   : > { %s2732_s25 = scalar_lea.sflag [#allocation3], %s2731_s1 }
0x13f8   : > { %p3128_p2 = pnand %p3131_p1, %p3430_p6 }
0x13fa   : > { %3276 = dma.done.wait (!%p3128_p2), %s2732_s25, 128  }
0x13fb   : > { %3278 = vsyncadd (!%p3128_p2), %s2732_s25, 4294967168  ;;  %p22_p3 = scmp.ge.s32.totalorder %s3413_s27, 4   ;;  %s3816_s21 = smov %s3285_s22 }
0x13fc   : > { %s3817_s22 = smov %s3289_s23  ;;  %s3818_s23 = smov %s3424_s30 }
0x13fd   : > { %s3819_s24 = smov %s3413_s27  ;;  %24 = sbr.rel (!%p22_p3) target bundleno = 6 (0x6), region = 103 }
0x1404   :  { %2737 = vsyncpa [#allocation3], 1 }
0x1405   :  { %2739 = vsyncpa [#allocation3 + $0x1], 1 }

// kernel: tpu_custom_call.1
= control target key start
LH: loop header
LB: loop body
LE: loop exit
PB: predicated region body
PF: predicated region fallthrough
CT: control target
= control target key end

     0   :  { %s3797_s0 = inlined_call_operand.vmem [shape: f32[2,8,32], index: 0, kind: input, shape index: {}]   ;;  %s3798_s1 = inlined_call_operand.vmem [shape: f32[1,32], index: 1, kind: input, shape index: {}]   ;;  %s3799_s2 = inlined_call_operand.vmem [shape: f32[1,32], index: 2, kind: input, shape index: {}]   ;;  %s3800_s3 = inlined_call_operand.vmem [shape: f32[32,96], index: 3, kind: input, shape index: {}]   ;;  %s3801_s4 = inlined_call_operand.vmem [shape: f32[32,32], index: 4, kind: input, shape index: {}]   ;;  %s3802_s5 = inlined_call_operand.vmem [shape: f32[1,32], index: 5, kind: input, shape index: {}]   ;;  %s3803_s6 = inlined_call_operand.vmem [shape: f32[1,32], index: 6, kind: input, shape index: {}]   ;;  %s3804_s7 = inlined_call_operand.vmem [shape: f32[1,32], index: 7, kind: input, shape index: {}]   ;;  %s3805_s8 = inlined_call_operand.vmem [shape: f32[32,128], index: 8, kind: input, shape index: {}]   ;;  %s3806_s9 = inlined_call_operand.vmem [shape: f32[1,128], index: 9, kind: input, shape index: {}]   ;;  %s3807_s10 = inlined_call_operand.vmem [shape: f32[128,32], index: 10, kind: input, shape index: {}]   ;;  %s3808_s11 = inlined_call_operand.vmem [shape: f32[1,32], index: 11, kind: input, shape index: {}]   ;;  %s3809_s12 = inlined_call_operand.hbm [shape: f32[2,8,32], index: 12, kind: output, shape index: {}]  }
   0x1   :  { %3810 = sst [smem:[#allocation5_spill]] %s3797_s0 }
   0x2   :  { %3811 = sst [smem:[#allocation6_spill]] %s3798_s1 }
   0x3   :  { %17 = vsyncpa [#allocation3], 0 }
   0x4   :  { %19 = vsyncpa [#allocation3 + $0x1], 0  ;;  %s3388_s21 = smov 0   ;;  %s3390_s22 = smov 0  }
   0x5   :  { %s3392_s23 = smov 0   ;;  %s3394_s24 = smov 0  }
   0x6 LB: > { %s3409_s25 = sadd.s32 4294967295, %s3293_s24   ;;  %s2778_s26 = sadd.s32 4294967294, %s3293_s24   ;;  %s3293_s24 = sphi %s3394_s24, %s3819_s24   ;;  %s3289_s23 = sphi %s3392_s23, %s3818_s23   ;;  %s3285_s22 = sphi %s3390_s22, %s3817_s22   ;;  %s3281_s21 = sphi %s3388_s21, %s3816_s21  }
   0x7   : > { %s3413_s27 = sadd.s32 1, %s3293_s24   ;;  %s289_s28 = sadd.s32 1, %s3289_s23 }
   0x8   : > { %s286_s29 = ssub.s32 %s3293_s24, %s3413_s27  ;;  %p299_p0 = scmp.ne.s32.totalorder %s3289_s23, %s3285_s22 }
   0x9   : > { %p287_p1 = scmp.eq.s32.totalorder %s286_s29, 0  ;;  %p300_p2 = scmp.eq.s32.totalorder %s3409_s25, 1 }
   0xa   : > { %p305_p3 = scmp.ne.s32.totalorder %s3285_s22, %s3281_s21  ;;  %p306_p4 = scmp.eq.s32.totalorder %s2778_s26, 1 }
   0xb   : > { %s3424_s30 = scalar_select %p287_p1, %s3289_s23, %s289_s28  }
   0xc   : > { %p3426_p5 = por %p300_p2, %p299_p0  ;;  %p3430_p6 = por %p306_p4, %p305_p3 }
   0xd   : > { %p2781_p7 = scmp.ge.s32.totalorder %s3293_s24, 1  ;;  %p364_p8 = scmp.lt.s32.totalorder %s3293_s24, 3 }
   0xf   : > { %p365_p9 = pnand %p2781_p7, %p364_p8 }
  0x10   : > { %p405_p10 = scmp.lt.s32.totalorder (!%p365_p9), %s3409_s25, 1  ;;  %vm412_vm0 = vcmask (!%p365_p9), 261120   ;;  %s3814_s0 = sld [smem:[#allocation5_spill]] (!%p365_p9)  ;;  %v441_v7 = vld [vmem:[%s3800_s3] sm:$0xff] (!%p365_p9)  ;;  %v442_v8 = vld [vmem:[%s3800_s3 + $0x8] sm:$0xff] (!%p365_p9)  ;;  %v443_v9 = vld [vmem:[%s3800_s3 + $0x10] sm:$0xff] (!%p365_p9) }
  0x11   : > { %368 = sbr.rel (%p365_p9) target bundleno = 5110 (0x13f6), region = 68  ;;  %v3295_v10 = vmov (!%p365_p9), 0.0|0.0   ;;  %v3090_v11 = vpack.c.bf16 (!%p365_p9), %v442_v8, %v441_v7  ;;  %v444_v12 = vld [vmem:[%s3800_s3 + $0x18] sm:$0xff] (!%p365_p9)  ;;  %vm3296_vm1 = vmmov (!%p365_p9), 0   ;;  %v3297_v13 = vmov (!%p365_p9), 0.0   ;;  %s3815_s1 = sld [smem:[#allocation6_spill]] (!%p365_p9) }
  0x12   : > { %3089 = vmatprep.subr.bf16.mxu0 (!%p365_p9), %v3295_v10  ;;  %2920 = vmatprep.mubr.msk.f32.mxu0 (!%p365_p9), %vm3296_vm1, %v3297_v13  ;;  %v3093_v14 = vpack.c.bf16 (!%p365_p9), %v444_v12, %v443_v9  ;;  %v2785_v21 = vld [vmem:[%s3799_s2] ss:$0 sm:$0xff] (!%p365_p9)  ;;  %s3298_s29 = smov (!%p365_p9), 64   ;;  %s3301_s17 = smov (!%p365_p9), 124   ;;  %vm521_vm2 = vcmask (!%p365_p9), 31744   ;;  %vm596_vm3 = vcmask (!%p365_p9), 64512  }
  0x13   : > { %2948 = vmatprep.subr.mxu1 (!%p365_p9), %v3297_v13  ;;  %2950 = vmatprep.mubr.msk.f32.mxu1 (!%p365_p9), %vm3296_vm1, %v3297_v13  ;;  %s3302_s18 = smov (!%p365_p9), 60   ;;  %s3304_s20 = smov (!%p365_p9), 120   ;;  %v684_v49 = vld [vmem:[%s3801_s4] sm:$0xf] (!%p365_p9)  ;;  %vm854_vm4 = vcmask (!%p365_p9), 1043456  }
  0x14   : > { %3091 = vmatpush3.bf16.msra.mxu0 (!%p365_p9), %v3090_v11  ;;  %s3305_s26 = smov (!%p365_p9), 56   ;;  %s3306_s28 = smov (!%p365_p9), 84   ;;  %2949 = vmatpush3.msk.msra.mxu1 (!%p365_p9), %vm854_vm4, %v684_v49  ;;  %v850_v50 = vld [vmem:[%s3801_s4 + $0x4] sm:$0xf] (!%p365_p9) }
  0x15   : > { %3092 = vmatprep.subr.bf16.mxu0 (!%p365_p9), %v3295_v10  ;;  %2958 = vmatprep.subr.mxu1 (!%p365_p9), %v3297_v13 }
  0x17   : > { %v2784_v19 = vld [vmem:[%s3815_s1] ss:$0 sm:$0xff] (!%p365_p9) }
  0x18   : > { %s406_s15 = scalar_select %p405_p10, %s3409_s25, 1  ;;  %3094 = vmatpush3.bf16.msra.mxu0 %v3093_v14 }
  0x19   : > { %2923 = vmatprep.subr.mxu0 %v3297_v13 }
  0x1a   : > { %s2783_s16 = sshll.u32 %s406_s15, 3  ;;  %s3299_s15 = smov 96  }
  0x1b   : > { %s408_s19 = scalar_lea.vmem %s3814_s0, %s2783_s16  ;;  %s3300_s16 = smov 92  }
  0x1c   : > { %v3441_v0 = vld [vmem:[%s408_s19] sm:$0xff]  ;;  %s3303_s19 = smov 88  }
  0x1d   : > { %v413_v1 = vsel %vm412_vm0, %v3441_v0, 0.0 }
  0x1e   : > { %414 = vadd.xlane.f32.xlu0 %v413_v1 }
  0xab   : > { %v415_v2 = vpop.xlane.xlu0 %414 }
  0xac   : > { %v417_v3 = vmul.f32 0.03125, %v415_v2 }
  0xae   : > { %v418_v4 = vsub.f32 %v3441_v0, %v417_v3 }
  0xb0   : > { %v419_v5 = vmul.f32 %v418_v4, %v418_v4 }
  0xb2   : > { %v420_v6 = vsel %vm412_vm0, %v419_v5, 0.0 }
  0xb3   : > { %421 = vadd.xlane.f32.xlu0 %v420_v6 }
 0x140   : > { %v422_v15 = vpop.xlane.xlu0 %421 }
 0x141   : > { %v423_v16 = vmul.f32 0.03125, %v422_v15 }
 0x143   : > { %v424_v17 = vadd.f32 1e-05, %v423_v16  ;;  %v1169_v16 = vld [vmem:[%s3801_s4 + $0x8] sm:$0xf] }
 0x145   : > { %3191 = vrsqrt.f32 %v424_v17 }
 0x14f   : > { %v3192_v18 = vpop.eup %3191 }
 0x150   : > { %v426_v20 = vmul.f32 %v3192_v18, %v418_v4 }
 0x152   : > { %v433_v22 = vmul.f32 %v2784_v19, %v426_v20 }
 0x154   : > { %v440_v23 = vadd.f32 %v2785_v21, %v433_v22 }
 0x156   : > { %2921 = vmatmul.mubr.msk.f32.vlgmr.msra.gmra.mrb[0].mxu0 %vm412_vm0, %v440_v23 }
 0x157   : > { %2925 = vmatprep.mubr.msk.f32.mxu0 %vm3296_vm1, %v3297_v13 }
 0x229   : > { %v3476_v24 = vpop.f32.mrb[0].mxu0 }
 0x22a   : > { %607 = vrot.lane.b32.xlu0 %v3476_v24, %s3298_s29  ;;  %519 = vrot.lane.b32.xlu1 %v3476_v24, %s3299_s15  ;;  %v2922_v25 = vpop.f32.mrb[1].mxu0  ;;  %s3310_s29 = smov 112   ;;  %s3311_s15 = smov 48  }
 0x22e   : > { %687 = vrot.lane.b32.xlu0 %v3476_v24, %s3300_s16  ;;  %s3307_s16 = smov 116  }
 0x232   : > { %685 = vrot.lane.b32.xlu0 %v3476_v24, %s3301_s17  ;;  %s3313_s17 = smov 108  }
 0x29c   : > { %v520_v26 = vpop.permute.xlu1 %519  ;;  %v608_v27 = vpop.permute.xlu0 %607 }
 0x29d   : > { %2924 = vmatpush3.xpose.msk.msra.mxu0 %vm521_vm2, %v520_v26 }
 0x29e   : > { %2928 = vmatprep.subr.mxu0 %v3297_v13 }
 0x2a0   : > { %2926 = vmatmul.mubr.msk.f32.vlgmr.msra.gmra.mrb[2].mxu0 %vm521_vm2, %v3476_v24  ;;  %v688_v34 = vpop.permute.xlu0 %687 }
 0x2a1   : > { %2929 = vmatpush3.msra.mxu0 %v608_v27  ;;  %2930 = vmatprep.mubr.msk.f32.mxu0 %vm3296_vm1, %v3297_v13 }
 0x2a2   : > { %2933 = vmatprep.subr.mxu0 %v3297_v13 }
 0x2a4   : > { %v686_v36 = vpop.permute.xlu0 %685 }
 0x373   : > { %v592_v28 = vpop.f32.mrb[2].mxu0 }
 0x374   : > { %v2927_v29 = vpop.f32.mrb[3].mxu0  ;;  %v597_v30 = vsel %vm596_vm3, %v592_v28, -inf }
 0x375   : > { %598 = vmax.xlane.f32.xlu1 %v597_v30 }
 0x386   : > { %773 = vrot.lane.b32.xlu1 %v3476_v24, %s3302_s18  ;;  %s3319_s18 = smov 100  }
 0x402   : > { %v599_v31 = vpop.xlane.xlu1 %598 }
 0x403   : > { %v600_v32 = vsub.f32 %v592_v28, %v599_v31 }
 0x405   : > { %v601_v33 = vmul.f32 1.442695, %v600_v32 }
 0x406   : > { %v774_v37 = vpop.permute.xlu1 %773 }
 0x407   : > { %3193 = vpow2.f32 %v601_v33 }
 0x411   : > { %v3194_v35 = vpop.eup %3193 }
 0x412   : > { %2931 = vmatmul.mubr.msk.f32.vlgmr.msra.gmra.mrb[4].mxu0 %vm596_vm3, %v3194_v35  ;;  %v603_v48 = vsel %vm596_vm3, %v3194_v35, 0.0 }
 0x413   : > { %2934 = vmatpush3.xpose.msk.msra.mxu0 %vm521_vm2, %v688_v34  ;;  %2935 = vmatprep.mubr.msk.f32.mxu0 %vm3296_vm1, %v3297_v13 }
 0x414   : > { %2938 = vmatprep.subr.mxu0 %v3297_v13 }
 0x416   : > { %2936 = vmatmul.mubr.msk.f32.vlgmr.msra.gmra.mrb[6].mxu0 %vm521_vm2, %v686_v36 }
 0x417   : > { %2939 = vmatpush3.msra.mxu0 %v774_v37  ;;  %2940 = vmatprep.mubr.msk.f32.mxu0 %vm3296_vm1, %v3297_v13  ;;  %v1412_v37 = vld [vmem:[%s3801_s4 + $0xc] sm:$0xf] }
 0x418   : > { %2943 = vmatprep.subr.mxu0 %v3297_v13 }
 0x4e5   : > { %v679_v38 = vpop.f32.mrb[4].mxu0 }
 0x4e6   : > { %v2932_v39 = vpop.f32.mrb[5].mxu0 }
 0x4e9   : > { %v759_v40 = vpop.f32.mrb[6].mxu0 }
 0x4ea   : > { %v2937_v41 = vpop.f32.mrb[7].mxu0  ;;  %v763_v42 = vsel %vm596_vm3, %v759_v40, -inf }
 0x4eb   : > { %764 = vmax.xlane.f32.xlu0 %v763_v42 }
 0x501   : > { %1006 = vrot.lane.b32.xlu0 %v3476_v24, %s3303_s19  ;;  %s3308_s19 = smov 52  }
 0x505   : > { %1004 = vrot.lane.b32.xlu0 %v3476_v24, %s3304_s20  ;;  %s3314_s20 = smov 44  }
 0x578   : > { %v765_v43 = vpop.xlane.xlu0 %764 }
 0x579   : > { %v766_v44 = vsub.f32 %v759_v40, %v765_v43 }
 0x57b   : > { %v767_v45 = vmul.f32 1.442695, %v766_v44 }
 0x57c   : > { %v1007_v57 = vpop.permute.xlu0 %1006 }
 0x57d   : > { %3195 = vpow2.f32 %v767_v45 }
 0x580   : > { %v1005_v61 = vpop.permute.xlu0 %1004 }
 0x587   : > { %v3196_v46 = vpop.eup %3195 }
 0x588   : > { %2941 = vmatmul.mubr.msk.f32.vlgmr.msra.gmra.mrb[8].mxu0 %vm596_vm3, %v3196_v46  ;;  %v769_v47 = vsel %vm596_vm3, %v3196_v46, 0.0 }
 0x589   : > { %770 = vadd.xlane.f32.xlu1 %v769_v47  ;;  %2945 = vmatprep.mubr.msk.f32.mxu0 %vm3296_vm1, %v3297_v13 }
 0x58a   : > { %2944 = vmatpush3.msk.msra.mxu0 %vm854_vm4, %v850_v50 }
 0x58b   : > { %2953 = vmatprep.subr.mxu0 %v3297_v13 }
 0x58d   : > { %604 = vadd.xlane.f32.xlu1 %v603_v48 }
 0x59e   : > { %1092 = vrot.lane.b32.xlu1 %v3476_v24, %s3305_s26 }
 0x5a2   : > { %1249 = vrot.lane.b32.xlu1 %v3476_v24, %s3306_s28  ;;  %s3309_s28 = smov 80  }
 0x5a6   : > { %1247 = vrot.lane.b32.xlu1 %v3476_v24, %s3307_s16  ;;  %s3312_s16 = smov 76  }
 0x616   : > { %v771_v51 = vpop.xlane.xlu1 %770 }
 0x61a   : > { %v605_v52 = vpop.xlane.xlu1 %604 }
 0x61b   : > { %3197 = vrcp.f32 %v605_v52 }
 0x61c   : > { %3199 = vrcp.f32 %v771_v51 }
 0x61e   : > { %v1093_v55 = vpop.permute.xlu1 %1092 }
 0x622   : > { %v1250_v11 = vpop.permute.xlu1 %1249 }
 0x625   : > { %v3198_v53 = vpop.eup %3197 }
 0x626   : > { %v683_v54 = vmul.f32 %v3198_v53, %v679_v38  ;;  %v3200_v56 = vpop.eup %3199  ;;  %v1248_v15 = vpop.permute.xlu1 %1247 }
 0x628   : > { %2951 = vmatmul.mubr.msk.f32.vlgmr.msra.gmra.mrb[0].mxu1 %vm521_vm2, %v683_v54 }
 0x629   : > { %2959 = vmatpush3.msra.mxu1 %v1093_v55  ;;  %2960 = vmatprep.mubr.msk.f32.mxu1 %vm3296_vm1, %v3297_v13 }
 0x62a   : > { %2968 = vmatprep.subr.mxu1 %v3297_v13 }
 0x65b   : > { %v845_v58 = vpop.f32.mrb[8].mxu0 }
 0x65c   : > { %v849_v59 = vmul.f32 %v3200_v56, %v845_v58  ;;  %v2942_v60 = vpop.f32.mrb[9].mxu0 }
 0x65e   : > { %2946 = vmatmul.mubr.msk.f32.vlgmr.msra.gmra.mrb[10].mxu0 %vm521_vm2, %v849_v59 }
 0x65f   : > { %2954 = vmatpush3.xpose.msk.msra.mxu0 %vm521_vm2, %v1007_v57  ;;  %2955 = vmatprep.mubr.msk.f32.mxu0 %vm3296_vm1, %v3297_v13  ;;  %v1655_v57 = vld [vmem:[%s3801_s4 + $0x10] sm:$0xf] }
 0x660   : > { %2963 = vmatprep.subr.mxu0 %v3297_v13 }
 0x662   : > { %2956 = vmatmul.mubr.msk.f32.vlgmr.msra.gmra.mrb[12].mxu0 %vm521_vm2, %v1005_v61 }
 0x663   : > { %2965 = vmatprep.mubr.msk.f32.mxu0 %vm3296_vm1, %v3297_v13  ;;  %2964 = vmatpush3.msk.msra.mxu0 %vm854_vm4, %v1169_v16  ;;  %v1898_v16 = vld [vmem:[%s3801_s4 + $0x14] sm:$0xf] }
 0x664   : > { %2973 = vmatprep.subr.mxu0 %v3297_v13 }
 0x6fb   : > { %v1000_v62 = vpop.f32.mrb[0].mxu1 }
 0x6fc   : > { %v2952_v63 = vpop.f32.mrb[1].mxu1 }
 0x731   : > { %v924_v1 = vpop.f32.mrb[10].mxu0 }
 0x732   : > { %v3533_v2 = vadd.f32 %v1000_v62, %v924_v1  ;;  %v2947_v3 = vpop.f32.mrb[11].mxu0 }
 0x735   : > { %v1078_v4 = vpop.f32.mrb[12].mxu0 }
 0x736   : > { %v2957_v5 = vpop.f32.mrb[13].mxu0  ;;  %v1082_v6 = vsel %vm596_vm3, %v1078_v4, -inf }
 0x737   : > { %1083 = vmax.xlane.f32.xlu0 %v1082_v6 }
 0x74d   : > { %1335 = vrot.lane.b32.xlu0 %v3476_v24, %s3308_s19 }
 0x7c4   : > { %v1084_v7 = vpop.xlane.xlu0 %1083 }
 0x7c5   : > { %v1085_v8 = vsub.f32 %v1078_v4, %v1084_v7 }
 0x7c7   : > { %v1086_v9 = vmul.f32 1.442695, %v1085_v8 }
 0x7c8   : > { %v1336_v22 = vpop.permute.xlu0 %1335 }
 0x7c9   : > { %3201 = vpow2.f32 %v1086_v9 }
 0x7d3   : > { %v3202_v12 = vpop.eup %3201 }
 0x7d4   : > { %2961 = vmatmul.mubr.msk.f32.vlgmr.msra.gmra.mrb[2].mxu1 %vm596_vm3, %v3202_v12  ;;  %v1088_v14 = vsel %vm596_vm3, %v3202_v12, 0.0 }
 0x7d5   : > { %2969 = vmatpush3.xpose.msk.msra.mxu1 %vm521_vm2, %v1250_v11  ;;  %1089 = vadd.xlane.f32.xlu1 %v1088_v14 }
 0x7d6   : > { %2970 = vmatprep.mubr.msk.f32.mxu1 %vm3296_vm1, %v3297_v13  ;;  %2978 = vmatprep.subr.mxu1 %v3297_v13 }
 0x7d8   : > { %2971 = vmatmul.mubr.msk.f32.vlgmr.msra.gmra.mrb[4].mxu1 %vm521_vm2, %v1248_v15 }
 0x7d9   : > { %2980 = vmatprep.mubr.msk.f32.mxu1 %vm3296_vm1, %v3297_v13  ;;  %2979 = vmatpush3.msk.msra.mxu1 %vm854_vm4, %v1412_v37  ;;  %v2141_v37 = vld [vmem:[%s3801_s4 + $0x18] sm:$0xf] }
 0x7da   : > { %2988 = vmatprep.subr.mxu1 %v3297_v13 }
 0x862   : > { %v1090_v17 = vpop.xlane.xlu1 %1089 }
 0x863   : > { %3203 = vrcp.f32 %v1090_v17 }
 0x86d   : > { %v3204_v18 = vpop.eup %3203 }
 0x8a7   : > { %v1164_v19 = vpop.f32.mrb[2].mxu1 }
 0x8a8   : > { %v1168_v20 = vmul.f32 %v3204_v18, %v1164_v19  ;;  %v2962_v21 = vpop.f32.mrb[3].mxu1 }
 0x8aa   : > { %2966 = vmatmul.mubr.msk.f32.vlgmr.msra.gmra.mrb[14].mxu0 %vm521_vm2, %v1168_v20 }
 0x8ab   : > { %2974 = vmatpush3.msra.mxu0 %v1336_v22  ;;  %v1321_v23 = vpop.f32.mrb[4].mxu1  ;;  %2975 = vmatprep.mubr.msk.f32.mxu0 %vm3296_vm1, %v3297_v13 }
 0x8ac   : > { %v2972_v25 = vpop.f32.mrb[5].mxu1  ;;  %v1325_v26 = vsel %vm596_vm3, %v1321_v23, -inf  ;;  %2983 = vmatprep.subr.mxu0 %v3297_v13 }
 0x8ad   : > { %1326 = vmax.xlane.f32.xlu0 %v1325_v26 }
 0x8c3   : > { %1492 = vrot.lane.b32.xlu0 %v3476_v24, %s3309_s28 }
 0x8c7   : > { %1490 = vrot.lane.b32.xlu0 %v3476_v24, %s3310_s29  ;;  %s3315_s29 = smov 72  }
 0x93a   : > { %v1327_v27 = vpop.xlane.xlu0 %1326 }
 0x93b   : > { %v1328_v28 = vsub.f32 %v1321_v23, %v1327_v27 }
 0x93d   : > { %v1329_v29 = vmul.f32 1.442695, %v1328_v28 }
 0x93e   : > { %v1493_v30 = vpop.permute.xlu0 %1492 }
 0x93f   : > { %3205 = vpow2.f32 %v1329_v29 }
 0x942   : > { %v1491_v33 = vpop.permute.xlu0 %1490 }
 0x949   : > { %v3206_v31 = vpop.eup %3205 }
 0x94a   : > { %2976 = vmatmul.mubr.msk.f32.vlgmr.msra.gmra.mrb[16].mxu0 %vm596_vm3, %v3206_v31  ;;  %v1331_v32 = vsel %vm596_vm3, %v3206_v31, 0.0 }
 0x94b   : > { %2984 = vmatpush3.xpose.msk.msra.mxu0 %vm521_vm2, %v1493_v30  ;;  %1332 = vadd.xlane.f32.xlu1 %v1331_v32 }
 0x94c   : > { %2985 = vmatprep.mubr.msk.f32.mxu0 %vm3296_vm1, %v3297_v13  ;;  %2993 = vmatprep.subr.mxu0 %v3297_v13 }
 0x94e   : > { %2986 = vmatmul.mubr.msk.f32.vlgmr.msra.gmra.mrb[18].mxu0 %vm521_vm2, %v1491_v33 }
 0x94f   : > { %2995 = vmatprep.mubr.msk.f32.mxu0 %vm3296_vm1, %v3297_v13  ;;  %2994 = vmatpush3.msk.msra.mxu0 %vm854_vm4, %v1655_v57 }
 0x950   : > { %3003 = vmatprep.subr.mxu0 %v3297_v13 }
 0x95c   : > { %1578 = vrot.lane.b32.xlu1 %v3476_v24, %s3311_s15  ;;  %s3316_s15 = smov 104  }
 0x960   : > { %1735 = vrot.lane.b32.xlu1 %v3476_v24, %s3312_s16  ;;  %s3317_s16 = smov 40  }
 0x964   : > { %1733 = vrot.lane.b32.xlu1 %v3476_v24, %s3313_s17  ;;  %s3318_s17 = smov 68  }
 0x97d   : > { %v1242_v34 = vpop.f32.mrb[14].mxu0 }
 0x97e   : > { %v1246_v35 = vadd.f32 %v1242_v34, %v3533_v2  ;;  %v2967_v36 = vpop.f32.mrb[15].mxu0 }
 0x9d8   : > { %v1333_v38 = vpop.xlane.xlu1 %1332 }
 0x9d9   : > { %3207 = vrcp.f32 %v1333_v38 }
 0x9dc   : > { %v1579_v43 = vpop.permute.xlu1 %1578 }
 0x9e0   : > { %v1736_v50 = vpop.permute.xlu1 %1735 }
 0x9e3   : > { %v3208_v39 = vpop.eup %3207 }
 0x9e4   : > { %v1734_v53 = vpop.permute.xlu1 %1733 }
 0xa1d   : > { %v1407_v40 = vpop.f32.mrb[16].mxu0 }
 0xa1e   : > { %v1411_v41 = vmul.f32 %v3208_v39, %v1407_v40  ;;  %v2977_v42 = vpop.f32.mrb[17].mxu0 }
 0xa20   : > { %2981 = vmatmul.mubr.msk.f32.vlgmr.msra.gmra.mrb[6].mxu1 %vm521_vm2, %v1411_v41 }
 0xa21   : > { %2989 = vmatpush3.msra.mxu1 %v1579_v43  ;;  %v1564_v44 = vpop.f32.mrb[18].mxu0  ;;  %2990 = vmatprep.mubr.msk.f32.mxu1 %vm3296_vm1, %v3297_v13 }
 0xa22   : > { %v2987_v45 = vpop.f32.mrb[19].mxu0  ;;  %v1568_v46 = vsel %vm596_vm3, %v1564_v44, -inf  ;;  %2998 = vmatprep.subr.mxu1 %v3297_v13 }
 0xa23   : > { %1569 = vmax.xlane.f32.xlu0 %v1568_v46 }
 0xa39   : > { %1821 = vrot.lane.b32.xlu0 %v3476_v24, %s3314_s20  ;;  %s402_s20 = sand.u32 1, %s3285_s22  }
 0xa3a   : > { %s2782_s26 = sshll.u32 %s402_s20, 3  ;;  %s2706_s28 = scalar_lea.sflag [#allocation3], %s402_s20 }
 0xab0   : > { %v1570_v47 = vpop.xlane.xlu0 %1569 }
 0xab1   : > { %v1571_v48 = vsub.f32 %v1564_v44, %v1570_v47 }
 0xab3   : > { %v1572_v49 = vmul.f32 1.442695, %v1571_v48 }
 0xab4   : > { %v1822_v63 = vpop.permute.xlu0 %1821 }
 0xab5   : > { %3209 = vpow2.f32 %v1572_v49 }
 0xabf   : > { %v3210_v51 = vpop.eup %3209 }
 0xac0   : > { %2991 = vmatmul.mubr.msk.f32.vlgmr.msra.gmra.mrb[8].mxu1 %vm596_vm3, %v3210_v51  ;;  %v1574_v52 = vsel %vm596_vm3, %v3210_v51, 0.0 }
 0xac1   : > { %2999 = vmatpush3.xpose.msk.msra.mxu1 %vm521_vm2, %v1736_v50  ;;  %1575 = vadd.xlane.f32.xlu1 %v1574_v52 }
 0xac2   : > { %3000 = vmatprep.mubr.msk.f32.mxu1 %vm3296_vm1, %v3297_v13  ;;  %3008 = vmatprep.subr.mxu1 %v3297_v13 }
 0xac4   : > { %3001 = vmatmul.mubr.msk.f32.vlgmr.msra.gmra.mrb[10].mxu1 %vm521_vm2, %v1734_v53 }
 0xac5   : > { %3010 = vmatprep.mubr.msk.f32.mxu1 %vm3296_vm1, %v3297_v13  ;;  %3009 = vmatpush3.msk.msra.mxu1 %vm854_vm4, %v1898_v16 }
 0xac6   : > { %3018 = vmatprep.subr.mxu1 %v3297_v13 }
 0xaf3   : > { %v1485_v54 = vpop.f32.mrb[6].mxu1 }
 0xaf4   : > { %v1489_v55 = vadd.f32 %v1485_v54, %v1246_v35  ;;  %v2982_v56 = vpop.f32.mrb[7].mxu1  ;;  %v2384_v54 = vld [vmem:[%s3801_s4 + $0x1c] sm:$0xf] }
 0xb4e   : > { %v1576_v58 = vpop.xlane.xlu1 %1575 }
 0xb4f   : > { %3211 = vrcp.f32 %v1576_v58 }
 0xb59   : > { %v3212_v59 = vpop.eup %3211 }
 0xb93   : > { %v1650_v60 = vpop.f32.mrb[8].mxu1 }
 0xb94   : > { %v1654_v61 = vmul.f32 %v3212_v59, %v1650_v60  ;;  %v2992_v62 = vpop.f32.mrb[9].mxu1 }
 0xb96   : > { %2996 = vmatmul.mubr.msk.f32.vlgmr.msra.gmra.mrb[20].mxu0 %vm521_vm2, %v1654_v61 }
 0xb97   : > { %3004 = vmatpush3.msra.mxu0 %v1822_v63  ;;  %v1807_v1 = vpop.f32.mrb[10].mxu1  ;;  %3005 = vmatprep.mubr.msk.f32.mxu0 %vm3296_vm1, %v3297_v13  ;;  %v2827_v63 = vld [vmem:[%s3802_s5] ss:$0 sm:$0xff] }
 0xb98   : > { %v3002_v2 = vpop.f32.mrb[11].mxu1  ;;  %v1811_v3 = vsel %vm596_vm3, %v1807_v1, -inf  ;;  %3013 = vmatprep.subr.mxu0 %v3297_v13 }
 0xb99   : > { %1812 = vmax.xlane.f32.xlu0 %v1811_v3 }
 0xbaf   : > { %1978 = vrot.lane.b32.xlu0 %v3476_v24, %s3315_s29  ;;  %s3320_s29 = smov 36  }
 0xbb3   : > { %1976 = vrot.lane.b32.xlu0 %v3476_v24, %s3316_s15  ;;  %s2834_s15 = sshll.u32 %s3409_s25, 7 }
 0xbb4   : > { %s3754_s0 = scalar_lea.hbm %s3809_s12, %s2834_s15 }
 0xc26   : > { %v1813_v4 = vpop.xlane.xlu0 %1812 }
 0xc27   : > { %v1814_v5 = vsub.f32 %v1807_v1, %v1813_v4 }
 0xc29   : > { %v1815_v6 = vmul.f32 1.442695, %v1814_v5 }
 0xc2a   : > { %v1979_v7 = vpop.permute.xlu0 %1978 }
 0xc2b   : > { %3213 = vpow2.f32 %v1815_v6 }
 0xc2e   : > { %v1977_v11 = vpop.permute.xlu0 %1976 }
 0xc35   : > { %v3214_v8 = vpop.eup %3213 }
 0xc36   : > { %3006 = vmatmul.mubr.msk.f32.vlgmr.msra.gmra.mrb[22].mxu0 %vm596_vm3, %v3214_v8  ;;  %v1817_v9 = vsel %vm596_vm3, %v3214_v8, 0.0  ;;  %v2500_v8 = vld [vmem:[%s3805_s8] sm:$0xff] }
 0xc37   : > { %3014 = vmatpush3.xpose.msk.msra.mxu0 %vm521_vm2, %v1979_v7  ;;  %1818 = vadd.xlane.f32.xlu1 %v1817_v9 }
 0xc38   : > { %3015 = vmatprep.mubr.msk.f32.mxu0 %vm3296_vm1, %v3297_v13  ;;  %3023 = vmatprep.subr.mxu0 %v3297_v13 }
 0xc3a   : > { %3016 = vmatmul.mubr.msk.f32.vlgmr.msra.gmra.mrb[24].mxu0 %vm521_vm2, %v1977_v11  ;;  %v2502_v11 = vld [vmem:[%s3805_s8 + $0x10] sm:$0xff] }
 0xc3b   : > { %3025 = vmatprep.mubr.msk.f32.mxu0 %vm3296_vm1, %v3297_v13  ;;  %3024 = vmatpush3.msk.msra.mxu0 %vm854_vm4, %v2141_v37  ;;  %v2618_v37 = vld [vmem:[%s3807_s10 + $0x40] sm:$0xff] }
 0xc3c   : > { %3033 = vmatprep.subr.mxu0 %v3297_v13 }
 0xc48   : > { %2064 = vrot.lane.b32.xlu1 %v3476_v24, %s3317_s16  ;;  %s404_s16 = scalar_lea.vmem [#allocation2], %s2782_s26  ;;  %s3322_s26 = smov [#allocation2]  }
 0xc4c   : > { %2221 = vrot.lane.b32.xlu1 %v3476_v24, %s3318_s17  ;;  %s2719_s17 = sshll.u32 %s404_s16, 4  ;;  %s3756_s17 = int_to_ptr.vmem [resolvable:$true] %s2719_s17 }
 0xc4d   : > { %s3231_s25 = scalar_lea.vmem %s3756_s17, 128 }
 0xc4e   : > { %p3232_p11 = scmp.ne.s32.totalorder %s3756_s17, %s3231_s25 }
 0xc50   : > { %2219 = vrot.lane.b32.xlu1 %v3476_v24, %s3319_s18  ;;  %p3233_p12 = pnand %p3232_p11, %p3426_p5 }
 0xc52   : > { %p3234_p13 = pneg %p3233_p12 }
 0xc69   : > { %v1728_v12 = vpop.f32.mrb[20].mxu0 }
 0xc6a   : > { %v1732_v14 = vadd.f32 %v1728_v12, %v1489_v55  ;;  %v2997_v15 = vpop.f32.mrb[21].mxu0  ;;  %v2503_v12 = vld [vmem:[%s3805_s8 + $0x18] sm:$0xff] }
 0xcc4   : > { %v1819_v17 = vpop.xlane.xlu1 %1818 }
 0xcc5   : > { %3215 = vrcp.f32 %v1819_v17 }
 0xcc8   : > { %v2065_v22 = vpop.permute.xlu1 %2064 }
 0xccc   : > { %v2222_v30 = vpop.permute.xlu1 %2221 }
 0xccf   : > { %v3216_v18 = vpop.eup %3215 }
 0xcd0   : > { %v2220_v33 = vpop.permute.xlu1 %2219 }
 0xd09   : > { %v1893_v19 = vpop.f32.mrb[22].mxu0 }
 0xd0a   : > { %v1897_v20 = vmul.f32 %v3216_v18, %v1893_v19  ;;  %v3007_v21 = vpop.f32.mrb[23].mxu0  ;;  %v2828_v19 = vld [vmem:[%s3803_s6] ss:$0 sm:$0xff] }
 0xd0b   : > { %v2829_v21 = vld [vmem:[%s3804_s7] ss:$0 sm:$0xff] }
 0xd0c   : > { %3011 = vmatmul.mubr.msk.f32.vlgmr.msra.gmra.mrb[12].mxu1 %vm521_vm2, %v1897_v20 }
 0xd0d   : > { %3019 = vmatpush3.msra.mxu1 %v2065_v22  ;;  %v2050_v23 = vpop.f32.mrb[24].mxu0  ;;  %3020 = vmatprep.mubr.msk.f32.mxu1 %vm3296_vm1, %v3297_v13 }
 0xd0e   : > { %v3017_v25 = vpop.f32.mrb[25].mxu0  ;;  %v2054_v26 = vsel %vm596_vm3, %v2050_v23, -inf  ;;  %3028 = vmatprep.subr.mxu1 %v3297_v13 }
 0xd0f   : > { %2055 = vmax.xlane.f32.xlu0 %v2054_v26  ;;  %v2610_v25 = vld [vmem:[%s3807_s10] sm:$0xff]  ;;  %v2611_v26 = vld [vmem:[%s3807_s10 + $0x8] sm:$0xff] }
 0xd9c   : > { %v2056_v27 = vpop.xlane.xlu0 %2055 }
 0xd9d   : > { %v2057_v28 = vsub.f32 %v2050_v23, %v2056_v27  ;;  %v3102_v27 = vpack.c.bf16 %v2611_v26, %v2610_v25 }
 0xd9f   : > { %v2058_v29 = vmul.f32 1.442695, %v2057_v28  ;;  %v2612_v28 = vld [vmem:[%s3807_s10 + $0x10] sm:$0xff] }
 0xda1   : > { %3217 = vpow2.f32 %v2058_v29  ;;  %v2613_v29 = vld [vmem:[%s3807_s10 + $0x18] sm:$0xff] }
 0xdab   : > { %v3218_v31 = vpop.eup %3217 }
 0xdac   : > { %3021 = vmatmul.mubr.msk.f32.vlgmr.msra.gmra.mrb[14].mxu1 %vm596_vm3, %v3218_v31  ;;  %v2060_v32 = vsel %vm596_vm3, %v3218_v31, 0.0  ;;  %v2614_v31 = vld [vmem:[%s3807_s10 + $0x20] sm:$0xff] }
 0xdad   : > { %3029 = vmatpush3.xpose.msk.msra.mxu1 %vm521_vm2, %v2222_v30  ;;  %2061 = vadd.xlane.f32.xlu1 %v2060_v32  ;;  %v3105_v30 = vpack.c.bf16 %v2613_v29, %v2612_v28  ;;  %v2615_v32 = vld [vmem:[%s3807_s10 + $0x28] sm:$0xff] }
 0xdae   : > { %3030 = vmatprep.mubr.msk.f32.mxu1 %vm3296_vm1, %v3297_v13  ;;  %3038 = vmatprep.subr.mxu1 %v3297_v13 }
 0xdb0   : > { %3031 = vmatmul.mubr.msk.f32.vlgmr.msra.gmra.mrb[16].mxu1 %vm521_vm2, %v2220_v33  ;;  %v3108_v33 = vpack.c.bf16 %v2615_v32, %v2614_v31 }
 0xdb1   : > { %3040 = vmatprep.mubr.msk.f32.mxu1 %vm3296_vm1, %v3297_v13  ;;  %3039 = vmatpush3.msk.msra.mxu1 %vm854_vm4, %v2384_v54 }
 0xdb2   : > { %3101 = vmatprep.subr.bf16.mxu1 %v3295_v10 }
 0xddf   : > { %v1971_v34 = vpop.f32.mrb[12].mxu1 }
 0xde0   : > { %v1975_v35 = vadd.f32 %v1971_v34, %v1732_v14  ;;  %v3012_v36 = vpop.f32.mrb[13].mxu1  ;;  %v3099_v14 = vpack.c.bf16 %v2503_v12, %v2502_v11  ;;  %v2616_v34 = vld [vmem:[%s3807_s10 + $0x30] sm:$0xff] }
 0xe3a   : > { %v2062_v38 = vpop.xlane.xlu1 %2061 }
 0xe3b   : > { %3219 = vrcp.f32 %v2062_v38  ;;  %v2619_v38 = vld [vmem:[%s3807_s10 + $0x48] sm:$0xff] }
 0xe45   : > { %v3220_v39 = vpop.eup %3219 }
 0xe7f   : > { %v2136_v40 = vpop.f32.mrb[14].mxu1 }
 0xe80   : > { %v2140_v41 = vmul.f32 %v3220_v39, %v2136_v40  ;;  %v3022_v42 = vpop.f32.mrb[15].mxu1  ;;  %v3114_v39 = vpack.c.bf16 %v2619_v38, %v2618_v37  ;;  %v2620_v40 = vld [vmem:[%s3807_s10 + $0x50] sm:$0xff] }
 0xe82   : > { %3026 = vmatmul.mubr.msk.f32.vlgmr.msra.gmra.mrb[26].mxu0 %vm521_vm2, %v2140_v41  ;;  %v2621_v41 = vld [vmem:[%s3807_s10 + $0x58] sm:$0xff] }
 0xe83   : > { %v2293_v43 = vpop.f32.mrb[16].mxu1  ;;  %3035 = vmatprep.mubr.msk.f32.mxu0 %vm3296_vm1, %v3297_v13  ;;  %v3117_v42 = vpack.c.bf16 %v2621_v41, %v2620_v40 }
 0xe84   : > { %v3032_v44 = vpop.f32.mrb[17].mxu1  ;;  %v2297_v45 = vsel %vm596_vm3, %v2293_v43, -inf }
 0xe85   : > { %2298 = vmax.xlane.f32.xlu0 %v2297_v45  ;;  %v2623_v44 = vld [vmem:[%s3807_s10 + $0x68] sm:$0xff] }
 0xe9b   : > { %2307 = vrot.lane.b32.xlu0 %v3476_v24, %s3320_s29  ;;  %s3235_s29 = sshll.u32 %s3322_s26, 4  ;;  %s3236_s29 = int_to_ptr.vmem [resolvable:$false] %s3235_s29 }
 0xe9c   : > { %s3237_s1 = scalar_lea.vmem %s3236_s29, 256  ;;  %p3238_p0 = scmp.lt.s32.totalorder %s3756_s17, %s3236_s29 }
 0xe9d   : > { %p3239_p1 = scmp.lt.s32.totalorder %s3237_s1, %s3231_s25 }
 0xe9f   : > { %p3240_p2 = por %p3239_p1, %p3238_p0 }
 0xea1   : > { %p3241_p3 = pnand %p3240_p2, %p3234_p13 }
 0xf12   : > { %v2299_v46 = vpop.xlane.xlu0 %2298 }
 0xf13   : > { %v2300_v47 = vsub.f32 %v2293_v43, %v2299_v46  ;;  %v2622_v43 = vld [vmem:[%s3807_s10 + $0x60] sm:$0xff]  ;;  %v2624_v46 = vld [vmem:[%s3807_s10 + $0x70] sm:$0xff] }
 0xf14   : > { %v3120_v45 = vpack.c.bf16 %v2623_v44, %v2622_v43 }
 0xf15   : > { %v2301_v48 = vmul.f32 1.442695, %v2300_v47  ;;  %v2625_v47 = vld [vmem:[%s3807_s10 + $0x78] sm:$0xff] }
 0xf16   : > { %v2308_v49 = vpop.permute.xlu0 %2307 }
 0xf17   : > { %3221 = vpow2.f32 %v2301_v48  ;;  %3034 = vmatpush3.msra.mxu0 %v2308_v49  ;;  %v3123_v48 = vpack.c.bf16 %v2625_v47, %v2624_v46  ;;  %v2830_v49 = vld [vmem:[%s3806_s9] ss:$0 sm:$0xff] }
 0xf18   : > { %3095 = vmatprep.subr.bf16.mxu0 %v3295_v10 }
 0xf21   : > { %v3222_v50 = vpop.eup %3221 }
 0xf22   : > { %3036 = vmatmul.mubr.msk.f32.vlgmr.msra.gmra.mrb[28].mxu0 %vm596_vm3, %v3222_v50  ;;  %v2303_v51 = vsel %vm596_vm3, %v3222_v50, 0.0 }
 0xf23   : > { %2304 = vadd.xlane.f32.xlu0 %v2303_v51  ;;  %3051 = vmatprep.mubr.msk.f32.mxu0 %vm3296_vm1, %v3297_v13 }
 0xf55   : > { %v2214_v52 = vpop.f32.mrb[26].mxu0 }
 0xf56   : > { %v2218_v53 = vadd.f32 %v2214_v52, %v1975_v35  ;;  %v3027_v24 = vpop.f32.mrb[27].mxu0  ;;  %v2617_v35 = vld [vmem:[%s3807_s10 + $0x38] sm:$0xff] }
 0xf57   : > { %v3111_v36 = vpack.c.bf16 %v2617_v35, %v2616_v34 }
 0xfb0   : > { %v2305_v55 = vpop.xlane.xlu0 %2304 }
 0xfb1   : > { %3223 = vrcp.f32 %v2305_v55 }
 0xfbb   : > { %v3224_v56 = vpop.eup %3223 }
 0xff5   : > { %v2379_v57 = vpop.f32.mrb[28].mxu0 }
 0xff6   : > { %v2383_v58 = vmul.f32 %v3224_v56, %v2379_v57  ;;  %v3037_v59 = vpop.f32.mrb[29].mxu0 }
 0xff8   : > { %3041 = vmatmul.mubr.msk.f32.vlgmr.msra.gmra.mrb[18].mxu1 %vm521_vm2, %v2383_v58 }
 0xff9   : > { %3086 = vmatprep.mubr.msk.f32.mxu1 %vm3296_vm1, %v3297_v13  ;;  %3103 = vmatpush3.bf16.msra.mxu1 %v3102_v27 }
 0xffa   : > { %3104 = vmatprep.subr.bf16.mxu1 %v3295_v10 }
 0xffd   : > { %3106 = vmatpush3.bf16.msra.mxu1 %v3105_v30 }
 0xffe   : > { %3107 = vmatprep.subr.bf16.mxu1 %v3295_v10 }
0x1001   : > { %3109 = vmatpush3.bf16.msra.mxu1 %v3108_v33 }
0x1002   : > { %3110 = vmatprep.subr.bf16.mxu1 %v3295_v10 }
0x1005   : > { %3112 = vmatpush3.bf16.msra.mxu1 %v3111_v36 }
0x1006   : > { %3113 = vmatprep.subr.bf16.mxu1 %v3295_v10 }
0x1009   : > { %3115 = vmatpush3.bf16.msra.mxu1 %v3114_v39 }
0x100a   : > { %3116 = vmatprep.subr.bf16.mxu1 %v3295_v10 }
0x100d   : > { %3118 = vmatpush3.bf16.msra.mxu1 %v3117_v42 }
0x100e   : > { %3119 = vmatprep.subr.bf16.mxu1 %v3295_v10 }
0x1011   : > { %3121 = vmatpush3.bf16.msra.mxu1 %v3120_v45 }
0x1012   : > { %3122 = vmatprep.subr.bf16.mxu1 %v3295_v10 }
0x1015   : > { %3124 = vmatpush3.bf16.msra.mxu1 %v3123_v48 }
0x10cb   : > { %v2457_v60 = vpop.f32.mrb[18].mxu1 }
0x10cc   : > { %v2461_v61 = vadd.f32 %v2457_v60, %v2218_v53  ;;  %v3042_v62 = vpop.f32.mrb[19].mxu1 }
0x10ce   : > { %v2462_v1 = vadd.f32 %v2461_v61, %v3441_v0  ;;  %v2501_v0 = vld [vmem:[%s3805_s8 + $0x8] sm:$0xff] }
0x10cf   : > { %v3096_v9 = vpack.c.bf16 %v2501_v0, %v2500_v8  ;;  %v3321_v8 = vmov -1.0  }
0x10d0   : > { %v3661_v2 = vadd.f32 %v2827_v63, %v2462_v1 }
0x10d1   : > { %3097 = vmatpush3.bf16.msra.mxu0 %v3096_v9 }
0x10d2   : > { %v2473_v3 = vsel %vm412_vm0, %v3661_v2, 0.0  ;;  %3098 = vmatprep.subr.bf16.mxu0 %v3295_v10 }
0x10d3   : > { %2474 = vadd.xlane.f32.xlu1 %v2473_v3 }
0x10d5   : > { %3100 = vmatpush3.bf16.msra.mxu0 %v3099_v14 }
0x1160   : > { %v2475_v4 = vpop.xlane.xlu1 %2474 }
0x1161   : > { %v2476_v5 = vmul.f32 0.03125, %v2475_v4 }
0x1163   : > { %v2477_v6 = vsub.f32 %v3661_v2, %v2476_v5 }
0x1165   : > { %v2478_v13 = vmul.f32 %v2477_v6, %v2477_v6 }
0x1167   : > { %v2479_v7 = vsel %vm412_vm0, %v2478_v13, 0.0 }
0x1168   : > { %2480 = vadd.xlane.f32.xlu1 %v2479_v7 }
0x11f5   : > { %v2481_v15 = vpop.xlane.xlu1 %2480 }
0x11f6   : > { %v2482_v16 = vmul.f32 0.03125, %v2481_v15  ;;  %v2832_v15 = vld [vmem:[%s3808_s11] ss:$0 sm:$0xff] }
0x11f8   : > { %v2483_v17 = vadd.f32 1e-05, %v2482_v16 }
0x11fa   : > { %3225 = vrsqrt.f32 %v2483_v17 }
0x1204   : > { %v3226_v18 = vpop.eup %3225 }
0x1205   : > { %v2485_v20 = vmul.f32 %v3226_v18, %v2477_v6 }
0x1207   : > { %v2492_v22 = vmul.f32 %v2828_v19, %v2485_v20 }
0x1209   : > { %v2499_v23 = vadd.f32 %v2829_v21, %v2492_v22 }
0x120b   : > { %3052 = vmatmul.mubr.msk.f32.vlgmr.msra.gmra.mrb[30].mxu0 %vm412_vm0, %v2499_v23 }
0x12de   : > { %v2580_v50 = vpop.f32.mrb[30].mxu0 }
0x12df   : > { %v2581_v51 = vadd.f32 %v2830_v49, %v2580_v50  ;;  %v3053_v52 = vpop.f32.mrb[31].mxu0 }
0x12e1   : > { %v2585_v53 = vmul.f32 0.70710677, %v2581_v51  ;;  %v2584_v11 = vmul.f32 0.5, %v2581_v51 }
0x12e3   : > { %v2588_v24 = vand.u32 2147483647, %v2585_v53  ;;  %vm2586_vm5 = vcmp.ge.f32.partialorder %v2585_v53, 0.0 }
0x12e4   : > { %v2587_v0 = vsel %vm2586_vm5, 1.0, %v3321_v8 }
0x12e5   : > { %v2589_v10 = vmul.f32 0.3275911, %v2588_v24  ;;  %v2601_v55 = vsub.f32 0.0, %v2588_v24 }
0x12e7   : > { %v2590_v54 = vadd.f32 1.0, %v2589_v10  ;;  %v2602_v57 = vmul.f32 %v2601_v55, %v2588_v24 }
0x12e9   : > { %3227 = vrcp.f32 %v2590_v54  ;;  %v2603_v60 = vmul.f32 1.442695, %v2602_v57 }
0x12eb   : > { %3229 = vpow2.f32 %v2603_v60 }
0x12f3   : > { %v3228_v56 = vpop.eup %3227 }
0x12f4   : > { %v2592_v58 = vmul.f32 1.0614054, %v3228_v56 }
0x12f5   : > { %v3230_v6 = vpop.eup %3229 }
0x12f6   : > { %v2593_v59 = vadd.f32 -1.4531521, %v2592_v58 }
0x12f8   : > { %v2594_v61 = vmul.f32 %v3228_v56, %v2593_v59 }
0x12fa   : > { %v2595_v62 = vadd.f32 1.4214138, %v2594_v61 }
0x12fc   : > { %v2596_v63 = vmul.f32 %v3228_v56, %v2595_v62 }
0x12fe   : > { %v2597_v1 = vadd.f32 -0.28449672, %v2596_v63 }
0x1300   : > { %v2598_v3 = vmul.f32 %v3228_v56, %v2597_v1 }
0x1302   : > { %v2599_v4 = vadd.f32 0.2548296, %v2598_v3 }
0x1304   : > { %v2600_v5 = vmul.f32 %v3228_v56, %v2599_v4 }
0x1306   : > { %v2605_v13 = vmul.f32 %v3230_v6, %v2600_v5 }
0x1308   : > { %v2606_v7 = vsub.f32 1.0, %v2605_v13 }
0x130a   : > { %v2607_v9 = vmul.f32 %v2606_v7, %v2587_v0 }
0x130c   : > { %v2608_v12 = vadd.f32 1.0, %v2607_v9 }
0x130e   : > { %v2609_v14 = vmul.f32 %v2608_v12, %v2584_v11 }
0x1310   : > { %3087 = vmatmul.mubr.f32.vlgmr.msra.gmra.mrb[20].mxu1 %v2609_v14 }
0x13e3   : > { %v2699_v16 = vpop.f32.mrb[20].mxu1 }
0x13e4   : > { %v2700_v17 = vadd.f32 %v2832_v15, %v2699_v16  ;;  %v3088_v18 = vpop.f32.mrb[21].mxu1 }
0x13e6   : > { %v2703_v19 = vadd.f32 %v2700_v17, %v3661_v2 }
0x13e8   : > { %2704 = vst.msk [vmem:[%s404_s16] sm:$0xff] %vm412_vm0, %v2703_v19 }
0x13e9   : > { %3244 = shalt.err (!%p3241_p3)
}
0x13ea   : > { %s3245_s20 = scalar_lea.hbm %s3754_s0, 128  ;;  %s3249_s18 = scalar_lea.hbm %s3809_s12, 256 }
0x13eb   : > { %p3246_p4 = scmp.ne.s32.totalorder %s3754_s0, %s3245_s20  ;;  %p3250_p9 = scmp.lt.u32.totalorder %s3754_s0, %s3809_s12 }
0x13ec   : > { %p3251_p10 = scmp.lt.u32.totalorder %s3249_s18, %s3245_s20  ;;  %p3253_p12 = scmp.lt.u32.totalorder %s3245_s20, %s3754_s0 }
0x13ed   : > { %p3247_p7 = pnand %p3246_p4, %p3426_p5 }
0x13ee   : > { %p3252_p11 = por %p3251_p10, %p3250_p9 }
0x13ef   : > { %p3248_p8 = pneg %p3247_p7 }
0x13f0   : > { %p3254_p13 = por %p3253_p12, %p3252_p11 }
0x13f2   : > { %p3255_p0 = pnand %p3254_p13, %p3248_p8 }
0x13f4   : > { %3258 = shalt.err (!%p3255_p0)
}
0x13f5   : > { %3125 = dma.vmem_to_hbm [thread:$0]  (%p3426_p5), %s3756_s17, 128, %s3754_s0, %s2706_s28  }
0x13f6 PF: > { %p3131_p1 = scmp.ge.s32.totalorder %s3293_s24, 2  ;;  %s2731_s1 = sand.u32 1, %s3281_s21  }
0x13f7   : > { %s2732_s25 = scalar_lea.sflag [#allocation3], %s2731_s1 }
0x13f8   : > { %p3128_p2 = pnand %p3131_p1, %p3430_p6 }
0x13fa   : > { %3276 = dma.done.wait (!%p3128_p2), %s2732_s25, 128  }
0x13fb   : > { %3278 = vsyncadd (!%p3128_p2), %s2732_s25, 4294967168  ;;  %p22_p3 = scmp.ge.s32.totalorder %s3413_s27, 4   ;;  %s3816_s21 = smov %s3285_s22 }
0x13fc   : > { %s3817_s22 = smov %s3289_s23  ;;  %s3818_s23 = smov %s3424_s30 }
0x13fd   : > { %s3819_s24 = smov %s3413_s27  ;;  %24 = sbr.rel (!%p22_p3) target bundleno = 6 (0x6), region = 103 }
0x1404   :  { %2737 = vsyncpa [#allocation3], 1 }
0x1405   :  { %2739 = vsyncpa [#allocation3 + $0x1], 1 }

</bundles_post_ra>
